<compile_context>
chip_gen: v7x
topology: tpu7x:2x2x1
jax: 0.10.0
libtpu: 0.0.40
codegen_flags: <defaults>
</compile_context>

<pallas_src>
import functools

import jax
import jax.numpy as jnp
from jax.experimental import pallas as pl
from jax.experimental.pallas import tpu as pltpu

HIDDEN = 256
OUT_FEATURES = 2
NUM_LAYERS = 7          # Linear(in,256) + 5x Linear(256,256) (+ReLU+Dropout) + Linear(256,2)
LANE = 128              # TPU lane width: pad first-layer K and last-layer N to this
DEFAULT_TB = 256        # batch tile = M dimension fed to the MXU each grid step


def mlp_kernel(x_ref, *refs):
    """refs = (w0, b0, w1, b1, ..., w6, b6, out_ref).

    Weights are bf16 (in, out) and VMEM-resident (constant index_map across the
    batch grid); biases are f32 (1, out).  Activations never leave VMEM/vregs.
    """
    out_ref = refs[-1]
    param_refs = refs[:-1]
    n_layers = len(param_refs) // 2

    h = x_ref[...]                                     # bf16 (TB, 128)
    for i in range(n_layers):
        w = param_refs[2 * i][...]                     # bf16 (in, out)
        b = param_refs[2 * i + 1][...]                 # f32  (1, out)
        acc = jnp.dot(h, w, preferred_element_type=jnp.float32) + b
        if i < n_layers - 1:
            acc = jnp.maximum(acc, 0.0)                # ReLU (Dropout = identity in eval)
            h = acc.astype(jnp.bfloat16)               # bf16 operands for next MXU pass
        else:
            out_ref[...] = acc.astype(out_ref.dtype)   # lane-dense (TB, 128) store


def init_params(key, input_size, dtype=jnp.float32):
    """PyTorch-default-style init, weights stored as (in_features, out_features)."""
    dims = [input_size] + [HIDDEN] * (NUM_LAYERS - 1) + [OUT_FEATURES]
    params = []
    for i in range(NUM_LAYERS):
        fan_in, fan_out = dims[i], dims[i + 1]
        bound = 1.0 / (fan_in ** 0.5)
        key, kw, kb = jax.random.split(key, 3)
        w = jax.random.uniform(kw, (fan_in, fan_out), dtype, minval=-bound, maxval=bound)
        b = jax.random.uniform(kb, (fan_out,), dtype, minval=-bound, maxval=bound)
        params.append((w, b))
    return params


def prepare_params(params):
    """Cast weights to bf16, zero-pad layer-0 K and last-layer N to LANE,
    reshape biases to (1, out) f32.  Zero padding keeps sliced outputs exact."""
    flat = []
    n = len(params)
    for i, (w, b) in enumerate(params):
        w = w.astype(jnp.float32)
        b = b.astype(jnp.float32)
        if i == 0 and w.shape[0] < LANE:
            w = jnp.pad(w, ((0, LANE - w.shape[0]), (0, 0)))
        if i == n - 1 and w.shape[1] < LANE:
            pad_n = LANE - w.shape[1]
            w = jnp.pad(w, ((0, 0), (0, pad_n)))
            b = jnp.pad(b, ((0, pad_n),))
        flat.append(w.astype(jnp.bfloat16))
        flat.append(b.reshape(1, -1))
    return tuple(flat)


@functools.partial(jax.jit, static_argnames=("tb",))
def simple_mlp_forward(x, flat_params, *, tb=DEFAULT_TB):
    batch, in_dim = x.shape
    pad_in = flat_params[0].shape[0]        # LANE-padded K of layer 0
    out_pad = flat_params[-2].shape[1]      # LANE-padded N of the final layer
    n_layers = len(flat_params) // 2

    # Pad batch up to a multiple of the batch tile and features up to pad_in.
    nb = pl.cdiv(batch, tb)
    b_pad = nb * tb
    x_p = jnp.pad(x.astype(jnp.bfloat16),
                  ((0, b_pad - batch), (0, pad_in - in_dim)))

    # x / out streamed per grid step; params resident (constant block index).
    in_specs = [pl.BlockSpec((tb, pad_in), lambda i: (i, 0))]
    for p in flat_params:
        in_specs.append(pl.BlockSpec(p.shape, lambda i: (0, 0)))
    out_spec = pl.BlockSpec((tb, out_pad), lambda i: (i, 0))

    flops = 2 * b_pad * sum(
        flat_params[2 * j].shape[0] * flat_params[2 * j].shape[1]
        for j in range(n_layers))
    bytes_accessed = (x_p.size * x_p.dtype.itemsize + b_pad * out_pad * 4
                      + sum(int(p.size) * p.dtype.itemsize for p in flat_params))

    out = pl.pallas_call(
        mlp_kernel,
        out_shape=jax.ShapeDtypeStruct((b_pad, out_pad), jnp.float32),
        grid=(nb,),
        in_specs=in_specs,
        out_specs=out_spec,
        compiler_params=pltpu.CompilerParams(
            dimension_semantics=("parallel",)),
        cost_estimate=pl.CostEstimate(
            flops=flops, transcendentals=0, bytes_accessed=bytes_accessed),
    )(x_p, *flat_params)

    return out[:batch, :OUT_FEATURES]


def reference_forward(x, params):
    h = x.astype(jnp.float32)
    for i, (w, b) in enumerate(params):
        h = h @ w + b
        if i < len(params) - 1:
            h = jnp.maximum(h, 0.0)
    return h


if __name__ == "__main__":
    key = jax.random.PRNGKey(0)
    key_x, key_p = jax.random.split(key)

    batch = 512          # 2 grid steps of TB=256
    input_size = 32

    x = jax.random.normal(key_x, (batch, input_size), jnp.float32)
    params = init_params(key_p, input_size)
    flat_params = prepare_params(params)

    out = simple_mlp_forward(x, flat_params)
    out = jax.block_until_ready(out)

    ref = reference_forward(x, params)
    assert out.shape == (batch, OUT_FEATURES), out.shape
    # bf16 matmul operands (f32 accumulation) -> loosen tolerance vs f32 reference.
    rel_err = float(jnp.max(jnp.abs(out - ref)) / (jnp.max(jnp.abs(ref)) + 1e-6))
    assert rel_err < 3e-2, rel_err

    print("KERNEL_OK")
</pallas_src>

<mosaic_0001>
module attributes {stable_mosaic.version = 11 : i64} {
  func.func @mlp_kernel(%arg0: i32, %arg1: memref<256x128xbf16, #tpu.memory_space<vmem>>, %arg2: memref<128x256xbf16, #tpu.memory_space<vmem>>, %arg3: memref<1x256xf32, #tpu.memory_space<vmem>>, %arg4: memref<256x256xbf16, #tpu.memory_space<vmem>>, %arg5: memref<1x256xf32, #tpu.memory_space<vmem>>, %arg6: memref<256x256xbf16, #tpu.memory_space<vmem>>, %arg7: memref<1x256xf32, #tpu.memory_space<vmem>>, %arg8: memref<256x256xbf16, #tpu.memory_space<vmem>>, %arg9: memref<1x256xf32, #tpu.memory_space<vmem>>, %arg10: memref<256x256xbf16, #tpu.memory_space<vmem>>, %arg11: memref<1x256xf32, #tpu.memory_space<vmem>>, %arg12: memref<256x256xbf16, #tpu.memory_space<vmem>>, %arg13: memref<1x256xf32, #tpu.memory_space<vmem>>, %arg14: memref<256x128xbf16, #tpu.memory_space<vmem>>, %arg15: memref<1x128xf32, #tpu.memory_space<vmem>>, %arg16: memref<256x128xf32, #tpu.memory_space<vmem>>) attributes {dimension_semantics = [#tpu.dimension_semantics<parallel>], iteration_bounds = array<i64: 2>, scalar_prefetch = 0 : i64, scratch_operands = 0 : i64, tpu.core_type = #tpu.core_type<tc>, window_params = [{transform_indices = @transform_0, window_bounds = array<i64: 256, 128>}, {pipeline_mode = #tpu.pipeline_mode<synchronous>, transform_indices = @transform_1, window_bounds = array<i64: 128, 256>}, {pipeline_mode = #tpu.pipeline_mode<synchronous>, transform_indices = @transform_2, window_bounds = array<i64: 1, 256>}, {pipeline_mode = #tpu.pipeline_mode<synchronous>, transform_indices = @transform_3, window_bounds = array<i64: 256, 256>}, {pipeline_mode = #tpu.pipeline_mode<synchronous>, transform_indices = @transform_4, window_bounds = array<i64: 1, 256>}, {pipeline_mode = #tpu.pipeline_mode<synchronous>, transform_indices = @transform_5, window_bounds = array<i64: 256, 256>}, {pipeline_mode = #tpu.pipeline_mode<synchronous>, transform_indices = @transform_6, window_bounds = array<i64: 1, 256>}, {pipeline_mode = #tpu.pipeline_mode<synchronous>, transform_indices = @transform_7, window_bounds = array<i64: 256, 256>}, {pipeline_mode = #tpu.pipeline_mode<synchronous>, transform_indices = @transform_8, window_bounds = array<i64: 1, 256>}, {pipeline_mode = #tpu.pipeline_mode<synchronous>, transform_indices = @transform_9, window_bounds = array<i64: 256, 256>}, {pipeline_mode = #tpu.pipeline_mode<synchronous>, transform_indices = @transform_10, window_bounds = array<i64: 1, 256>}, {pipeline_mode = #tpu.pipeline_mode<synchronous>, transform_indices = @transform_11, window_bounds = array<i64: 256, 256>}, {pipeline_mode = #tpu.pipeline_mode<synchronous>, transform_indices = @transform_12, window_bounds = array<i64: 1, 256>}, {pipeline_mode = #tpu.pipeline_mode<synchronous>, transform_indices = @transform_13, window_bounds = array<i64: 256, 128>}, {pipeline_mode = #tpu.pipeline_mode<synchronous>, transform_indices = @transform_14, window_bounds = array<i64: 1, 128>}, {transform_indices = @transform_15, window_bounds = array<i64: 256, 128>}]} {
    %c0 = arith.constant 0 : index
    %c0_0 = arith.constant 0 : index
    %0 = vector.load %arg1[%c0, %c0_0] : memref<256x128xbf16, #tpu.memory_space<vmem>>, vector<256x128xbf16>
    %c0_1 = arith.constant 0 : index
    %c0_2 = arith.constant 0 : index
    %1 = vector.load %arg2[%c0_1, %c0_2] : memref<128x256xbf16, #tpu.memory_space<vmem>>, vector<128x256xbf16>
    %c0_3 = arith.constant 0 : index
    %c0_4 = arith.constant 0 : index
    %2 = vector.load %arg3[%c0_3, %c0_4] : memref<1x256xf32, #tpu.memory_space<vmem>>, vector<1x256xf32>
    %cst = arith.constant dense<0.000000e+00> : vector<256x256xf32>
    %3 = tpu.matmul %0, %1, %cst {dimension_numbers = #tpu.dot_dimension_numbers<[1], [0], [0], [1], [0, 0, 1, 1], [], []>} : vector<256x128xbf16>, vector<128x256xbf16>, vector<256x256xf32> -> vector<256x256xf32>
    %4 = vector.broadcast %2 : vector<1x256xf32> to vector<256x256xf32>
    %5 = arith.addf %3, %4 : vector<256x256xf32>
    %cst_5 = arith.constant 0.000000e+00 : f32
    %6 = vector.broadcast %cst_5 : f32 to vector<256x256xf32>
    %7 = arith.maximumf %5, %6 : vector<256x256xf32>
    %8 = arith.truncf %7 : vector<256x256xf32> to vector<256x256xbf16>
    %c0_6 = arith.constant 0 : index
    %c0_7 = arith.constant 0 : index
    %9 = vector.load %arg4[%c0_6, %c0_7] : memref<256x256xbf16, #tpu.memory_space<vmem>>, vector<256x256xbf16>
    %c0_8 = arith.constant 0 : index
    %c0_9 = arith.constant 0 : index
    %10 = vector.load %arg5[%c0_8, %c0_9] : memref<1x256xf32, #tpu.memory_space<vmem>>, vector<1x256xf32>
    %cst_10 = arith.constant dense<0.000000e+00> : vector<256x256xf32>
    %11 = tpu.matmul %8, %9, %cst_10 {dimension_numbers = #tpu.dot_dimension_numbers<[1], [0], [0], [1], [0, 0, 1, 1], [], []>} : vector<256x256xbf16>, vector<256x256xbf16>, vector<256x256xf32> -> vector<256x256xf32>
    %12 = vector.broadcast %10 : vector<1x256xf32> to vector<256x256xf32>
    %13 = arith.addf %11, %12 : vector<256x256xf32>
    %cst_11 = arith.constant 0.000000e+00 : f32
    %14 = vector.broadcast %cst_11 : f32 to vector<256x256xf32>
    %15 = arith.maximumf %13, %14 : vector<256x256xf32>
    %16 = arith.truncf %15 : vector<256x256xf32> to vector<256x256xbf16>
    %c0_12 = arith.constant 0 : index
    %c0_13 = arith.constant 0 : index
    %17 = vector.load %arg6[%c0_12, %c0_13] : memref<256x256xbf16, #tpu.memory_space<vmem>>, vector<256x256xbf16>
    %c0_14 = arith.constant 0 : index
    %c0_15 = arith.constant 0 : index
    %18 = vector.load %arg7[%c0_14, %c0_15] : memref<1x256xf32, #tpu.memory_space<vmem>>, vector<1x256xf32>
    %cst_16 = arith.constant dense<0.000000e+00> : vector<256x256xf32>
    %19 = tpu.matmul %16, %17, %cst_16 {dimension_numbers = #tpu.dot_dimension_numbers<[1], [0], [0], [1], [0, 0, 1, 1], [], []>} : vector<256x256xbf16>, vector<256x256xbf16>, vector<256x256xf32> -> vector<256x256xf32>
    %20 = vector.broadcast %18 : vector<1x256xf32> to vector<256x256xf32>
    %21 = arith.addf %19, %20 : vector<256x256xf32>
    %cst_17 = arith.constant 0.000000e+00 : f32
    %22 = vector.broadcast %cst_17 : f32 to vector<256x256xf32>
    %23 = arith.maximumf %21, %22 : vector<256x256xf32>
    %24 = arith.truncf %23 : vector<256x256xf32> to vector<256x256xbf16>
    %c0_18 = arith.constant 0 : index
    %c0_19 = arith.constant 0 : index
    %25 = vector.load %arg8[%c0_18, %c0_19] : memref<256x256xbf16, #tpu.memory_space<vmem>>, vector<256x256xbf16>
    %c0_20 = arith.constant 0 : index
    %c0_21 = arith.constant 0 : index
    %26 = vector.load %arg9[%c0_20, %c0_21] : memref<1x256xf32, #tpu.memory_space<vmem>>, vector<1x256xf32>
    %cst_22 = arith.constant dense<0.000000e+00> : vector<256x256xf32>
    %27 = tpu.matmul %24, %25, %cst_22 {dimension_numbers = #tpu.dot_dimension_numbers<[1], [0], [0], [1], [0, 0, 1, 1], [], []>} : vector<256x256xbf16>, vector<256x256xbf16>, vector<256x256xf32> -> vector<256x256xf32>
    %28 = vector.broadcast %26 : vector<1x256xf32> to vector<256x256xf32>
    %29 = arith.addf %27, %28 : vector<256x256xf32>
    %cst_23 = arith.constant 0.000000e+00 : f32
    %30 = vector.broadcast %cst_23 : f32 to vector<256x256xf32>
    %31 = arith.maximumf %29, %30 : vector<256x256xf32>
    %32 = arith.truncf %31 : vector<256x256xf32> to vector<256x256xbf16>
    %c0_24 = arith.constant 0 : index
    %c0_25 = arith.constant 0 : index
    %33 = vector.load %arg10[%c0_24, %c0_25] : memref<256x256xbf16, #tpu.memory_space<vmem>>, vector<256x256xbf16>
    %c0_26 = arith.constant 0 : index
    %c0_27 = arith.constant 0 : index
    %34 = vector.load %arg11[%c0_26, %c0_27] : memref<1x256xf32, #tpu.memory_space<vmem>>, vector<1x256xf32>
    %cst_28 = arith.constant dense<0.000000e+00> : vector<256x256xf32>
    %35 = tpu.matmul %32, %33, %cst_28 {dimension_numbers = #tpu.dot_dimension_numbers<[1], [0], [0], [1], [0, 0, 1, 1], [], []>} : vector<256x256xbf16>, vector<256x256xbf16>, vector<256x256xf32> -> vector<256x256xf32>
    %36 = vector.broadcast %34 : vector<1x256xf32> to vector<256x256xf32>
    %37 = arith.addf %35, %36 : vector<256x256xf32>
    %cst_29 = arith.constant 0.000000e+00 : f32
    %38 = vector.broadcast %cst_29 : f32 to vector<256x256xf32>
    %39 = arith.maximumf %37, %38 : vector<256x256xf32>
    %40 = arith.truncf %39 : vector<256x256xf32> to vector<256x256xbf16>
    %c0_30 = arith.constant 0 : index
    %c0_31 = arith.constant 0 : index
    %41 = vector.load %arg12[%c0_30, %c0_31] : memref<256x256xbf16, #tpu.memory_space<vmem>>, vector<256x256xbf16>
    %c0_32 = arith.constant 0 : index
    %c0_33 = arith.constant 0 : index
    %42 = vector.load %arg13[%c0_32, %c0_33] : memref<1x256xf32, #tpu.memory_space<vmem>>, vector<1x256xf32>
    %cst_34 = arith.constant dense<0.000000e+00> : vector<256x256xf32>
    %43 = tpu.matmul %40, %41, %cst_34 {dimension_numbers = #tpu.dot_dimension_numbers<[1], [0], [0], [1], [0, 0, 1, 1], [], []>} : vector<256x256xbf16>, vector<256x256xbf16>, vector<256x256xf32> -> vector<256x256xf32>
    %44 = vector.broadcast %42 : vector<1x256xf32> to vector<256x256xf32>
    %45 = arith.addf %43, %44 : vector<256x256xf32>
    %cst_35 = arith.constant 0.000000e+00 : f32
    %46 = vector.broadcast %cst_35 : f32 to vector<256x256xf32>
    %47 = arith.maximumf %45, %46 : vector<256x256xf32>
    %48 = arith.truncf %47 : vector<256x256xf32> to vector<256x256xbf16>
    %c0_36 = arith.constant 0 : index
    %c0_37 = arith.constant 0 : index
    %49 = vector.load %arg14[%c0_36, %c0_37] : memref<256x128xbf16, #tpu.memory_space<vmem>>, vector<256x128xbf16>
    %c0_38 = arith.constant 0 : index
    %c0_39 = arith.constant 0 : index
    %50 = vector.load %arg15[%c0_38, %c0_39] : memref<1x128xf32, #tpu.memory_space<vmem>>, vector<1x128xf32>
    %cst_40 = arith.constant dense<0.000000e+00> : vector<256x128xf32>
    %51 = tpu.matmul %48, %49, %cst_40 {dimension_numbers = #tpu.dot_dimension_numbers<[1], [0], [0], [1], [0, 0, 1, 1], [], []>} : vector<256x256xbf16>, vector<256x128xbf16>, vector<256x128xf32> -> vector<256x128xf32>
    %52 = vector.broadcast %50 : vector<1x128xf32> to vector<256x128xf32>
    %53 = arith.addf %51, %52 : vector<256x128xf32>
    %c0_41 = arith.constant 0 : index
    %c0_42 = arith.constant 0 : index
    %54 = vector.load %arg16[%c0_41, %c0_42] : memref<256x128xf32, #tpu.memory_space<vmem>>, vector<256x128xf32>
    tpu.vector_store %arg16[%c0_41, %c0_42], %53 {strides = array<i32>} : memref<256x128xf32, #tpu.memory_space<vmem>>, vector<256x128xf32>,
    return
  }
  func.func @transform_0(%arg0: i32) -> (i32, i32) {
    %c0_i32 = arith.constant 0 : i32
    %c0_i32_0 = arith.constant 0 : i32
    return %arg0, %c0_i32 : i32, i32
  }
  func.func @transform_1(%arg0: i32) -> (i32, i32) {
    %c0_i32 = arith.constant 0 : i32
    %c0_i32_0 = arith.constant 0 : i32
    %c0_i32_1 = arith.constant 0 : i32
    return %c0_i32, %c0_i32_0 : i32, i32
  }
  func.func @transform_2(%arg0: i32) -> (i32, i32) {
    %c0_i32 = arith.constant 0 : i32
    %c0_i32_0 = arith.constant 0 : i32
    %c0_i32_1 = arith.constant 0 : i32
    return %c0_i32, %c0_i32_0 : i32, i32
  }
  func.func @transform_3(%arg0: i32) -> (i32, i32) {
    %c0_i32 = arith.constant 0 : i32
    %c0_i32_0 = arith.constant 0 : i32
    %c0_i32_1 = arith.constant 0 : i32
    return %c0_i32, %c0_i32_0 : i32, i32
  }
  func.func @transform_4(%arg0: i32) -> (i32, i32) {
    %c0_i32 = arith.constant 0 : i32
    %c0_i32_0 = arith.constant 0 : i32
    %c0_i32_1 = arith.constant 0 : i32
    return %c0_i32, %c0_i32_0 : i32, i32
  }
  func.func @transform_5(%arg0: i32) -> (i32, i32) {
    %c0_i32 = arith.constant 0 : i32
    %c0_i32_0 = arith.constant 0 : i32
    %c0_i32_1 = arith.constant 0 : i32
    return %c0_i32, %c0_i32_0 : i32, i32
  }
  func.func @transform_6(%arg0: i32) -> (i32, i32) {
    %c0_i32 = arith.constant 0 : i32
    %c0_i32_0 = arith.constant 0 : i32
    %c0_i32_1 = arith.constant 0 : i32
    return %c0_i32, %c0_i32_0 : i32, i32
  }
  func.func @transform_7(%arg0: i32) -> (i32, i32) {
    %c0_i32 = arith.constant 0 : i32
    %c0_i32_0 = arith.constant 0 : i32
    %c0_i32_1 = arith.constant 0 : i32
    return %c0_i32, %c0_i32_0 : i32, i32
  }
  func.func @transform_8(%arg0: i32) -> (i32, i32) {
    %c0_i32 = arith.constant 0 : i32
    %c0_i32_0 = arith.constant 0 : i32
    %c0_i32_1 = arith.constant 0 : i32
    return %c0_i32, %c0_i32_0 : i32, i32
  }
  func.func @transform_9(%arg0: i32) -> (i32, i32) {
    %c0_i32 = arith.constant 0 : i32
    %c0_i32_0 = arith.constant 0 : i32
    %c0_i32_1 = arith.constant 0 : i32
    return %c0_i32, %c0_i32_0 : i32, i32
  }
  func.func @transform_10(%arg0: i32) -> (i32, i32) {
    %c0_i32 = arith.constant 0 : i32
    %c0_i32_0 = arith.constant 0 : i32
    %c0_i32_1 = arith.constant 0 : i32
    return %c0_i32, %c0_i32_0 : i32, i32
  }
  func.func @transform_11(%arg0: i32) -> (i32, i32) {
    %c0_i32 = arith.constant 0 : i32
    %c0_i32_0 = arith.constant 0 : i32
    %c0_i32_1 = arith.constant 0 : i32
    return %c0_i32, %c0_i32_0 : i32, i32
  }
  func.func @transform_12(%arg0: i32) -> (i32, i32) {
    %c0_i32 = arith.constant 0 : i32
    %c0_i32_0 = arith.constant 0 : i32
    %c0_i32_1 = arith.constant 0 : i32
    return %c0_i32, %c0_i32_0 : i32, i32
  }
  func.func @transform_13(%arg0: i32) -> (i32, i32) {
    %c0_i32 = arith.constant 0 : i32
    %c0_i32_0 = arith.constant 0 : i32
    %c0_i32_1 = arith.constant 0 : i32
    return %c0_i32, %c0_i32_0 : i32, i32
  }
  func.func @transform_14(%arg0: i32) -> (i32, i32) {
    %c0_i32 = arith.constant 0 : i32
    %c0_i32_0 = arith.constant 0 : i32
    %c0_i32_1 = arith.constant 0 : i32
    return %c0_i32, %c0_i32_0 : i32, i32
  }
  func.func @transform_15(%arg0: i32) -> (i32, i32) {
    %c0_i32 = arith.constant 0 : i32
    %c0_i32_0 = arith.constant 0 : i32
    return %arg0, %c0_i32 : i32, i32
  }
}

</mosaic_0001>

<bundles_post_ra>
// kernel: simple_mlp_forward.1
= control target key start
LH: loop header
LB: loop body
LE: loop exit
PB: predicated region body
PF: predicated region fallthrough
CT: control target
= control target key end

     0   :  { %s6019_s0 = inlined_call_operand.vmem [shape: bf16[512,128], index: 0, kind: input, shape index: {}]   ;;  %s6020_s1 = inlined_call_operand.hbm [shape: bf16[128,256], index: 1, kind: input, shape index: {}]   ;;  %s6021_s2 = inlined_call_operand.hbm [shape: f32[1,256], index: 2, kind: input, shape index: {}]   ;;  %s6022_s3 = inlined_call_operand.vmem [shape: bf16[256,256], index: 3, kind: input, shape index: {}]   ;;  %s6023_s4 = inlined_call_operand.vmem [shape: f32[1,256], index: 4, kind: input, shape index: {}]   ;;  %s6024_s5 = inlined_call_operand.vmem [shape: bf16[256,256], index: 5, kind: input, shape index: {}]   ;;  %s6025_s6 = inlined_call_operand.vmem [shape: f32[1,256], index: 6, kind: input, shape index: {}]   ;;  %s6026_s7 = inlined_call_operand.vmem [shape: bf16[256,256], index: 7, kind: input, shape index: {}]   ;;  %s6027_s8 = inlined_call_operand.vmem [shape: f32[1,256], index: 8, kind: input, shape index: {}]   ;;  %s6028_s9 = inlined_call_operand.vmem [shape: bf16[256,256], index: 9, kind: input, shape index: {}]   ;;  %s6029_s10 = inlined_call_operand.vmem [shape: f32[1,256], index: 10, kind: input, shape index: {}]   ;;  %s6030_s11 = inlined_call_operand.hbm [shape: bf16[256,256], index: 11, kind: input, shape index: {}]   ;;  %s6031_s12 = inlined_call_operand.vmem [shape: f32[1,256], index: 12, kind: input, shape index: {}]   ;;  %s6032_s13 = inlined_call_operand.hbm [shape: bf16[256,128], index: 13, kind: input, shape index: {}]   ;;  %s6033_s14 = inlined_call_operand.vmem [shape: f32[1,128], index: 14, kind: input, shape index: {}]   ;;  %s6034_s15 = inlined_call_operand.vmem [shape: f32[512,128], index: 15, kind: output, shape index: {}]  }
   0x1   :  { %6039 = sst [smem:[#allocation12_spill]] %s6021_s2 }
   0x2   :  { %6040 = sst [smem:[#allocation13_spill]] %s6031_s12 }
   0x3   :  { %6041 = sst [smem:[#allocation14_spill]] %s6033_s14 }
   0x4   :  { %6042 = sst [smem:[#allocation15_spill]] %s6034_s15 }
   0x5   :  { %20 = vsyncpa [#allocation3], 0 }
   0x6   :  { %21 = vsyncpa [#allocation5], 0 }
   0x7   :  { %22 = vsyncpa [#allocation8], 0  ;;  %s4898_s18 = smov 0  }
   0x8 LB: > { %s4809_s19 = smov [#allocation4]   ;;  %s6035_s21 = sadd.s32 4294967295, %s4807_s18   ;;  %s4807_s18 = sphi %s4898_s18, %s28_s18  }
   0x9   : > { %s405_s20 = sshll.u32 %s4809_s19, 4  ;;  %p3973_p0 = scmp.ge.s32.totalorder %s4807_s18, 1  ;;  %s4912_s20 = int_to_ptr.vmem [resolvable:$true] %s405_s20 }
   0xa   : > { %p379_p1 = scmp.lt.s32.totalorder %s4807_s18, 3  ;;  %p4908_p2 = scmp.eq.s32.totalorder %s6035_s21, 0 }
   0xb   : > { %s4810_s24 = smov [#allocation2]   ;;  %s4811_s27 = smov [#allocation6]  }
   0xc   : > { %s6043_s22 = scalar_select %p4908_p2, 1, 0 }
   0xd   : > { %p4914_p3 = pnand %p3973_p0, %p379_p1  ;;  %s391_s25 = sshll.u32 %s4810_s24, 4  ;;  %s4920_s25 = int_to_ptr.vmem [resolvable:$true] %s391_s25 }
   0xe   : > { %s439_s28 = sshll.u32 %s4811_s27, 4  ;;  %s4812_s29 = smov [#allocation7]   ;;  %s4928_s28 = int_to_ptr.vmem [resolvable:$true] %s439_s28 }
   0xf   : > { %s6044_s23 = scalar_select %p4914_p3, 1, 0 }
  0x10   : > { %p4343_p4 = pneg %p4914_p3  ;;  %s4930_s30 = sshll.u32 %s4812_s29, 4  ;;  %s456_s30 = int_to_ptr.vmem [resolvable:$true] %s4930_s30 }
  0x11   : > { %s6046_s2 = sld [smem:[#allocation12_spill]] }
  0x12   : > { %p4924_p5 = pnand %p4908_p2, %p4343_p4 }
  0x14   : > { %p4940_p7 = pneg %p4924_p5 }
  0x17   : > { %s4677_s19 = scalar_lea.hbm %s6046_s2, 32 }
  0x18   : > { %p4678_p6 = scmp.ne.s32.totalorder %s6046_s2, %s4677_s19  ;;  %p4684_p10 = scmp.lt.u32.totalorder %s4677_s19, %s6046_s2 }
  0x1a   : > { %p4680_p8 = pnand %p4940_p7, %p4678_p6 }
  0x1c   : > { %p4681_p9 = pneg %p4680_p8 }
  0x1e   : > { %p4686_p11 = pnand %p4684_p10, %p4681_p9 }
  0x20   : > { %4689 = shalt.err (!%p4686_p11)
}
  0x21   : > { %s4690_s21 = scalar_lea.vmem %s4912_s20, 32  ;;  %p4698_p1 = scmp.lt.s32.totalorder %s4912_s20, %s4912_s20 }
  0x22   : > { %p4691_p12 = scmp.ne.s32.totalorder %s4912_s20, %s4690_s21  ;;  %p4699_p4 = scmp.lt.s32.totalorder %s4690_s21, %s4690_s21 }
  0x24   : > { %p4693_p13 = pnand %p4691_p12, %p4940_p7  ;;  %p4700_p6 = por %p4699_p4, %p4698_p1 }
  0x26   : > { %p4694_p0 = pneg %p4693_p13 }
  0x28   : > { %p4701_p8 = pnand %p4700_p6, %p4694_p0 }
  0x2a   : > { %4704 = shalt.err (!%p4701_p8)
}
  0x2b   : > { %4349 = dma.hbm_to_vmem [thread:$0]  (!%p4924_p5), %s6046_s2, 32, %s4912_s20, [#allocation5]  }
  0x2c   : > { %s4705_s27 = scalar_lea.hbm %s6020_s1, 2048 }
  0x2d   : > { %p4706_p9 = scmp.ne.s32.totalorder %s6020_s1, %s4705_s27  ;;  %p4712_p12 = scmp.lt.u32.totalorder %s4705_s27, %s6020_s1 }
  0x2f   : > { %p4708_p10 = pnand %p4706_p9, %p4940_p7 }
  0x31   : > { %p4709_p11 = pneg %p4708_p10 }
  0x33   : > { %p4714_p13 = pnand %p4712_p12, %p4709_p11 }
  0x35   : > { %4717 = shalt.err (!%p4714_p13)
}
  0x36   : > { %s4718_s20 = scalar_lea.vmem %s4920_s25, 2048  ;;  %p4726_p6 = scmp.lt.s32.totalorder %s4920_s25, %s4920_s25 }
  0x37   : > { %p4719_p0 = scmp.ne.s32.totalorder %s4920_s25, %s4718_s20  ;;  %p4727_p8 = scmp.lt.s32.totalorder %s4718_s20, %s4718_s20 }
  0x39   : > { %p4721_p1 = pnand %p4719_p0, %p4940_p7  ;;  %p4728_p9 = por %p4727_p8, %p4726_p6 }
  0x3b   : > { %p4722_p4 = pneg %p4721_p1 }
  0x3d   : > { %p4729_p10 = pnand %p4728_p9, %p4722_p4 }
  0x3f   : > { %4732 = shalt.err (!%p4729_p10)
}
  0x40   : > { %s4813_s14 = smov 128   ;;  %s4814_s12 = smov 8  }
  0x41   : > { %4346 = dma.hbm_to_vmem [thread:$0]  (!%p4924_p5), %s6020_s1, 2048, %s4920_s25, [#allocation3], %s4813_s14, %s4813_s14, %s4814_s12  }
  0x42   : > { %s4733_s27 = scalar_lea.hbm %s6030_s11, 4096 }
  0x43   : > { %p4734_p11 = scmp.ne.s32.totalorder %s6030_s11, %s4733_s27  ;;  %p4740_p0 = scmp.lt.u32.totalorder %s4733_s27, %s6030_s11 }
  0x45   : > { %p4736_p12 = pnand %p4734_p11, %p4940_p7 }
  0x47   : > { %p4737_p13 = pneg %p4736_p12 }
  0x49   : > { %p4742_p1 = pnand %p4740_p0, %p4737_p13 }
  0x4b   : > { %4745 = shalt.err (!%p4742_p1)
}
  0x4c   : > { %s4746_s25 = scalar_lea.vmem %s4928_s28, 4096  ;;  %p4754_p9 = scmp.lt.s32.totalorder %s4928_s28, %s4928_s28 }
  0x4d   : > { %p4747_p4 = scmp.ne.s32.totalorder %s4928_s28, %s4746_s25  ;;  %p4755_p10 = scmp.lt.s32.totalorder %s4746_s25, %s4746_s25 }
  0x4f   : > { %p4749_p6 = pnand %p4747_p4, %p4940_p7  ;;  %p4756_p11 = por %p4755_p10, %p4754_p9 }
  0x51   : > { %p4750_p8 = pneg %p4749_p6 }
  0x53   : > { %p4757_p12 = pnand %p4756_p11, %p4750_p8 }
  0x55   : > { %4760 = shalt.err (!%p4757_p12)
}
  0x56   : > { %4352 = dma.hbm_to_vmem [thread:$0]  (!%p4924_p5), %s6030_s11, 4096, %s4928_s28, [#allocation5], %s4813_s14, %s4813_s14, %s4814_s12  }
  0x57   : > { %s4761_s24 = scalar_lea.hbm %s6032_s13, 2048 }
  0x58   : > { %p4762_p13 = scmp.ne.s32.totalorder %s6032_s13, %s4761_s24  ;;  %p4768_p4 = scmp.lt.u32.totalorder %s4761_s24, %s6032_s13 }
  0x5a   : > { %p4764_p0 = pnand %p4762_p13, %p4940_p7 }
  0x5c   : > { %p4765_p1 = pneg %p4764_p0 }
  0x5e   : > { %p4770_p6 = pnand %p4768_p4, %p4765_p1 }
  0x60   : > { %4773 = shalt.err (!%p4770_p6)
}
  0x61   : > { %s4774_s25 = scalar_lea.vmem %s456_s30, 2048  ;;  %p4782_p11 = scmp.lt.s32.totalorder %s456_s30, %s456_s30 }
  0x62   : > { %p4775_p8 = scmp.ne.s32.totalorder %s456_s30, %s4774_s25  ;;  %p4783_p12 = scmp.lt.s32.totalorder %s4774_s25, %s4774_s25 }
  0x64   : > { %p4777_p9 = pnand %p4775_p8, %p4940_p7  ;;  %p4784_p2 = por %p4783_p12, %p4782_p11 }
  0x66   : > { %p4778_p10 = pneg %p4777_p9 }
  0x68   : > { %p4785_p3 = pnand %p4784_p2, %p4778_p10 }
  0x6a   : > { %4788 = shalt.err (!%p4785_p3)
}
  0x6b   : > { %s4815_s28 = smov 64   ;;  %s4816_s14 = smov 4  }
  0x6c   : > { %4355 = dma.hbm_to_vmem [thread:$0]  (!%p4924_p5), %s6032_s13, 2048, %s456_s30, [#allocation8], %s4815_s28, %s4815_s28, %s4816_s14  }
  0x6d   : > { %p6048_p13 = scmp.ne.s32.totalorder %s6044_s23, 0 }
  0x6e   : > { %p6049_p0 = scmp.ne.s32.totalorder (!%p6048_p13), %s6043_s22, 0 }
  0x6f   : > { %483 = sbr.rel (%p6048_p13) target bundleno = 1829 (0x725), region = 80 }
  0x76   : > { %4794 = dma.done.wait (%p6049_p0), [#allocation3], 2048  }
  0x77   : > { %4796 = vsyncadd (%p6049_p0), [#allocation3], 4294965248 }
  0x78   : > { %4798 = dma.done.wait (%p6049_p0), [#allocation5], 4128  }
  0x79   : > { %4800 = vsyncadd (%p6049_p0), [#allocation5], 4294963168 }
  0x7a   : > { %4802 = dma.done.wait (%p6049_p0), [#allocation8], 2048  }
  0x7b   : > { %4804 = vsyncadd (%p6049_p0), [#allocation8], 4294965248  ;;  %v4817_v0 = vmov 0   ;;  %s6050_s15 = sadd.s32 4294967295, %s4807_s18   ;;  %v4381_v1 = vld [vmem:[#allocation2 + $0x4] ss:$8 sps:$4 sm:$0xff]  }
  0x7c   : > { %824 = vmatprep.mubr.bf16.mxu0 %v4817_v0  ;;  %904 = vmatprep.mubr.bf16.mxu1 %v4817_v0  ;;  %s3984_s23 = sshll.u32 %s6050_s15, 5  ;;  %v4383_v2 = vld [vmem:[#allocation2] ss:$8 sps:$4 sm:$0xff]   ;;  %v4384_v3 = vld [vmem:[#allocation2 + $0x14] ss:$8 sps:$4 sm:$0xff]   ;;  %s6052_s19 = sld [smem:[#allocation14_spill]] }
  0x7d   : > { %p544_p2 = scmp.lt.s32.totalorder %s3984_s23, 63  ;;  %792 = vmatprep.subr.bf16.mxu0 %v4381_v1  ;;  %4311 = vmatprep.subr.bf16.mxu1 %v4381_v1  ;;  %v4386_v4 = vld [vmem:[#allocation2 + $0x10] ss:$8 sps:$4 sm:$0xff]   ;;  %v4387_v5 = vld [vmem:[#allocation2 + $0x24] ss:$8 sps:$4 sm:$0xff]   ;;  %v606_v1 = vlaneseq  ;;  %s6053_s29 = sld [smem:[#allocation15_spill]] }
  0x7e   : > { %793 = vmatpush1.bf16.msra.mxu0 %v4383_v2  ;;  %4319 = vmatpush1.bf16.msra.mxu1 %v4383_v2  ;;  %v4389_v6 = vld [vmem:[#allocation2 + $0x20] ss:$8 sps:$4 sm:$0xff]   ;;  %v4390_v7 = vld [vmem:[#allocation2 + $0x34] ss:$8 sps:$4 sm:$0xff]   ;;  %v4392_v8 = vld [vmem:[#allocation2 + $0x30] ss:$8 sps:$4 sm:$0xff]  }
  0x7f   : > { %s6055_s23 = smov (!%p544_p2, %s3984_s23), 63  ;;  %794 = vmatprep.subr.bf16.mxu0 %v4384_v3  ;;  %4312 = vmatprep.subr.bf16.mxu1 %v4384_v3  ;;  %v4393_v9 = vld [vmem:[#allocation2 + $0x44] ss:$8 sps:$4 sm:$0xff]   ;;  %v4395_v10 = vld [vmem:[#allocation2 + $0x40] ss:$8 sps:$4 sm:$0xff]   ;;  %v607_v2 = vshrl.u32 %v606_v1, 7 }
  0x80   : > { %s3985_s22 = sshll.u32 %s6055_s23, 2  ;;  %v4396_v11 = vld [vmem:[#allocation2 + $0x54] ss:$8 sps:$4 sm:$0xff]   ;;  %v4398_v12 = vld [vmem:[#allocation2 + $0x50] ss:$8 sps:$4 sm:$0xff]   ;;  %s3987_s26 = sshll.u32 %s6055_s23, 3 }
  0x81   : > { %s5050_s16 = scalar_lea.vmem %s6019_s0, %s3985_s22  ;;  %v4399_v13 = vld [vmem:[#allocation2 + $0x64] ss:$8 sps:$4 sm:$0xff]   ;;  %v4401_v14 = vld [vmem:[#allocation2 + $0x60] ss:$8 sps:$4 sm:$0xff]   ;;  %v4402_v15 = vld [vmem:[#allocation2 + $0x74] ss:$8 sps:$4 sm:$0xff]  }
  0x82   : > { %795 = vmatpush1.bf16.msra.mxu0 %v4386_v4  ;;  %4320 = vmatpush1.bf16.msra.mxu1 %v4386_v4  ;;  %v4404_v16 = vld [vmem:[#allocation2 + $0x70] ss:$8 sps:$4 sm:$0xff]   ;;  %v4423_v17 = vld [vmem:[%s6022_s3 + $0x4] ss:$8 sps:$4 sm:$0xff]   ;;  %v4421_v20 = vld [vmem:[%s6022_s3] ss:$8 sps:$4 sm:$0xff]  }
  0x83   : > { %796 = vmatprep.subr.bf16.mxu0 %v4387_v5  ;;  %4313 = vmatprep.subr.bf16.mxu1 %v4387_v5  ;;  %v4405_v18 = vld [vmem:[%s5050_s16] sm:$0xff]   ;;  %v4426_v21 = vld [vmem:[%s6022_s3 + $0x14] ss:$8 sps:$4 sm:$0xff]   ;;  %v4424_v22 = vld [vmem:[%s6022_s3 + $0x10] ss:$8 sps:$4 sm:$0xff]   ;;  %v5178_v3 = vsub.s32 0, %v607_v2  ;;  %s5950_s21 = scalar_lea.vmem %s6053_s29, %s3987_s26 }
  0x84   : > { %v4413_v19 = vld [vmem:[%s5050_s16 + $0x40] sm:$0xff]   ;;  %v4406_v24 = vld [vmem:[%s5050_s16 + $0x8] sm:$0xff]   ;;  %v4432_v27 = vld [vmem:[%s6022_s3 + $0x34] ss:$8 sps:$4 sm:$0xff]   ;;  %v5180_v5 = vsub.s32 1, %v607_v2 }
  0x85   : > { %v4429_v23 = vld [vmem:[%s6022_s3 + $0x24] ss:$8 sps:$4 sm:$0xff]   ;;  %v4427_v26 = vld [vmem:[%s6022_s3 + $0x20] ss:$8 sps:$4 sm:$0xff]   ;;  %v4407_v28 = vld [vmem:[%s5050_s16 + $0x10] sm:$0xff]  }
  0x86   : > { %797 = vmatpush1.bf16.msra.mxu0 %v4389_v6  ;;  %4321 = vmatpush1.bf16.msra.mxu1 %v4389_v6  ;;  %v4414_v25 = vld [vmem:[%s5050_s16 + $0x48] sm:$0xff]   ;;  %v4430_v29 = vld [vmem:[%s6022_s3 + $0x30] ss:$8 sps:$4 sm:$0xff]   ;;  %v4438_v33 = vld [vmem:[%s6022_s3 + $0x54] ss:$8 sps:$4 sm:$0xff]  }
  0x87   : > { %798 = vmatprep.subr.bf16.mxu0 %v4390_v7  ;;  %4314 = vmatprep.subr.bf16.mxu1 %v4390_v7  ;;  %v4415_v30 = vld [vmem:[%s5050_s16 + $0x50] sm:$0xff]   ;;  %v4435_v31 = vld [vmem:[%s6022_s3 + $0x44] ss:$8 sps:$4 sm:$0xff]   ;;  %v4433_v32 = vld [vmem:[%s6022_s3 + $0x40] ss:$8 sps:$4 sm:$0xff]  }
  0x88   : > { %v4436_v34 = vld [vmem:[%s6022_s3 + $0x50] ss:$8 sps:$4 sm:$0xff]   ;;  %v4441_v35 = vld [vmem:[%s6022_s3 + $0x64] ss:$8 sps:$4 sm:$0xff]   ;;  %v4439_v38 = vld [vmem:[%s6022_s3 + $0x60] ss:$8 sps:$4 sm:$0xff]  }
  0x89   : > { %v4408_v36 = vld [vmem:[%s5050_s16 + $0x18] sm:$0xff]   ;;  %v4447_v41 = vld [vmem:[%s6022_s3 + $0x84] ss:$8 sps:$4 sm:$0xff]   ;;  %v4445_v44 = vld [vmem:[%s6022_s3 + $0x80] ss:$8 sps:$4 sm:$0xff]  }
  0x8a   : > { %799 = vmatpush1.bf16.msra.mxu0 %v4392_v8  ;;  %4322 = vmatpush1.bf16.msra.mxu1 %v4392_v8  ;;  %v4416_v37 = vld [vmem:[%s5050_s16 + $0x58] sm:$0xff]   ;;  %v4409_v42 = vld [vmem:[%s5050_s16 + $0x20] sm:$0xff]   ;;  %v4410_v48 = vld [vmem:[%s5050_s16 + $0x28] sm:$0xff]  }
  0x8b   : > { %800 = vmatprep.subr.bf16.mxu0 %v4393_v9  ;;  %4315 = vmatprep.subr.bf16.mxu1 %v4393_v9  ;;  %v4444_v39 = vld [vmem:[%s6022_s3 + $0x74] ss:$8 sps:$4 sm:$0xff]   ;;  %v4442_v40 = vld [vmem:[%s6022_s3 + $0x70] ss:$8 sps:$4 sm:$0xff]   ;;  %v4417_v43 = vld [vmem:[%s5050_s16 + $0x60] sm:$0xff]  }
  0x8c   : > { %v4450_v45 = vld [vmem:[%s6022_s3 + $0x94] ss:$8 sps:$4 sm:$0xff]   ;;  %v4448_v46 = vld [vmem:[%s6022_s3 + $0x90] ss:$8 sps:$4 sm:$0xff]   ;;  %v4453_v47 = vld [vmem:[%s6022_s3 + $0xa4] ss:$8 sps:$4 sm:$0xff]  }
  0x8d   : > { %v4418_v49 = vld [vmem:[%s5050_s16 + $0x68] sm:$0xff]   ;;  %v4456_v51 = vld [vmem:[%s6022_s3 + $0xb4] ss:$8 sps:$4 sm:$0xff]   ;;  %v4454_v52 = vld [vmem:[%s6022_s3 + $0xb0] ss:$8 sps:$4 sm:$0xff]  }
  0x8e   : > { %801 = vmatpush1.bf16.msra.mxu0 %v4395_v10  ;;  %4323 = vmatpush1.bf16.msra.mxu1 %v4395_v10  ;;  %v4451_v50 = vld [vmem:[%s6022_s3 + $0xa0] ss:$8 sps:$4 sm:$0xff]   ;;  %v4459_v53 = vld [vmem:[%s6022_s3 + $0xc4] ss:$8 sps:$4 sm:$0xff]   ;;  %v4411_v54 = vld [vmem:[%s5050_s16 + $0x30] sm:$0xff]  }
  0x8f   : > { %802 = vmatprep.subr.bf16.mxu0 %v4396_v11  ;;  %4316 = vmatprep.subr.bf16.mxu1 %v4396_v11  ;;  %v4419_v55 = vld [vmem:[%s5050_s16 + $0x70] sm:$0xff]   ;;  %v4457_v56 = vld [vmem:[%s6022_s3 + $0xc0] ss:$8 sps:$4 sm:$0xff]   ;;  %v4412_v59 = vld [vmem:[%s5050_s16 + $0x38] sm:$0xff]  }
  0x90   : > { %v4462_v57 = vld [vmem:[%s6022_s3 + $0xd4] ss:$8 sps:$4 sm:$0xff]   ;;  %v4460_v58 = vld [vmem:[%s6022_s3 + $0xd0] ss:$8 sps:$4 sm:$0xff]   ;;  %v4465_v61 = vld [vmem:[%s6022_s3 + $0xe4] ss:$8 sps:$4 sm:$0xff]  }
  0x91   : > { %v4420_v60 = vld [vmem:[%s5050_s16 + $0x78] sm:$0xff]   ;;  %v4463_v62 = vld [vmem:[%s6022_s3 + $0xe0] ss:$8 sps:$4 sm:$0xff]   ;;  %s6051_s16 = sld [smem:[#allocation13_spill]] }
  0x92   : > { %803 = vmatpush1.bf16.msra.mxu0 %v4398_v12  ;;  %4324 = vmatpush1.bf16.msra.mxu1 %v4398_v12  ;;  %v4468_v63 = vld [vmem:[%s6022_s3 + $0xf4] ss:$8 sps:$4 sm:$0xff]   ;;  %v604_v4 = vld [vmem:[#allocation4] sm:$0x3] }
  0x93   : > { %804 = vmatprep.subr.bf16.mxu0 %v4399_v13  ;;  %4317 = vmatprep.subr.bf16.mxu1 %v4399_v13  ;;  %v5183_v6 = vrot.slane %v604_v4, %v5178_v3  ;;  %v5186_v7 = vrot.slane %v604_v4, %v5180_v5 }
  0x96   : > { %805 = vmatpush1.bf16.msra.mxu0 %v4401_v14  ;;  %4325 = vmatpush1.bf16.msra.mxu1 %v4401_v14 }
  0x97   : > { %806 = vmatprep.subr.bf16.mxu0 %v4402_v15  ;;  %4318 = vmatprep.subr.bf16.mxu1 %v4402_v15 }
  0x9a   : > { %807 = vmatpush1.bf16.msra.mxu0 %v4404_v16  ;;  %4326 = vmatpush1.bf16.msra.mxu1 %v4404_v16 }
  0x9b   : > { %1285 = vmatprep.subr.bf16.mxu1 %v4423_v17 }
  0x9d   : > { %825 = vmatmul.mubr.bf16.vlgmr.msra.gmra.mrb[0].mxu0 %v4405_v18  ;;  %905 = vmatmul.mubr.bf16.vlgmr.msra.gmra.mrb[0].mxu1 %v4413_v19 }
  0x9e   : > { %834 = vmatprep.mubr.bf16.mxu0 %v4817_v0  ;;  %914 = vmatprep.mubr.bf16.mxu1 %v4817_v0 }
  0x9f   : > { %1286 = vmatpush1.bf16.msra.mxu1 %v4421_v20 }
  0xa0   : > { %1287 = vmatprep.subr.bf16.mxu1 %v4426_v21 }
  0xa3   : > { %1288 = vmatpush1.bf16.msra.mxu1 %v4424_v22 }
  0xa4   : > { %1289 = vmatprep.subr.bf16.mxu1 %v4429_v23  ;;  %v4469_v23 = vld [vmem:[%s6024_s5] ss:$8 sps:$4 sm:$0xff]  }
  0xa5   : > { %835 = vmatmul.mubr.bf16.gmra.mrb[4].mxu0 %v4406_v24  ;;  %915 = vmatmul.mubr.bf16.gmra.mrb[4].mxu1 %v4414_v25 }
  0xa6   : > { %844 = vmatprep.mubr.bf16.mxu0 %v4817_v0  ;;  %924 = vmatprep.mubr.bf16.mxu1 %v4817_v0 }
  0xa7   : > { %1290 = vmatpush1.bf16.msra.mxu1 %v4427_v26 }
  0xa8   : > { %1291 = vmatprep.subr.bf16.mxu1 %v4432_v27  ;;  %v4471_v27 = vld [vmem:[%s6024_s5 + $0x4] ss:$8 sps:$4 sm:$0xff]  }
  0xa9   : > { %1778 = vmatprep.subr.bf16.mxu0 %v4471_v27 }
  0xaa   : > { %1779 = vmatpush1.bf16.msra.mxu0 %v4469_v23 }
  0xab   : > { %1292 = vmatpush1.bf16.msra.mxu1 %v4430_v29 }
  0xac   : > { %1293 = vmatprep.subr.bf16.mxu1 %v4435_v31  ;;  %v4474_v31 = vld [vmem:[%s6024_s5 + $0x14] ss:$8 sps:$4 sm:$0xff]  }
  0xad   : > { %845 = vmatmul.mubr.bf16.gmra.mrb[8].mxu0 %v4407_v28  ;;  %925 = vmatmul.mubr.bf16.gmra.mrb[8].mxu1 %v4415_v30 }
  0xae   : > { %854 = vmatprep.mubr.bf16.mxu0 %v4817_v0  ;;  %934 = vmatprep.mubr.bf16.mxu1 %v4817_v0 }
  0xaf   : > { %1294 = vmatpush1.bf16.msra.mxu1 %v4433_v32  ;;  %1780 = vmatprep.subr.bf16.mxu0 %v4474_v31 }
  0xb0   : > { %1295 = vmatprep.subr.bf16.mxu1 %v4438_v33 }
  0xb3   : > { %1296 = vmatpush1.bf16.msra.mxu1 %v4436_v34 }
  0xb4   : > { %1297 = vmatprep.subr.bf16.mxu1 %v4441_v35 }
  0xb5   : > { %855 = vmatmul.mubr.bf16.gmra.mrb[12].mxu0 %v4408_v36  ;;  %935 = vmatmul.mubr.bf16.gmra.mrb[12].mxu1 %v4416_v37  ;;  %v4472_v37 = vld [vmem:[%s6024_s5 + $0x10] ss:$8 sps:$4 sm:$0xff]  }
  0xb6   : > { %864 = vmatprep.mubr.bf16.mxu0 %v4817_v0  ;;  %944 = vmatprep.mubr.bf16.mxu1 %v4817_v0 }
  0xb7   : > { %1298 = vmatpush1.bf16.msra.mxu1 %v4439_v38  ;;  %1781 = vmatpush1.bf16.msra.mxu0 %v4472_v37 }
  0xb8   : > { %1299 = vmatprep.subr.bf16.mxu1 %v4444_v39 }
  0xbb   : > { %1300 = vmatpush1.bf16.msra.mxu1 %v4442_v40 }
  0xbc   : > { %1301 = vmatprep.subr.bf16.mxu1 %v4447_v41 }
  0xbd   : > { %865 = vmatmul.mubr.bf16.gmra.mrb[16].mxu0 %v4409_v42  ;;  %945 = vmatmul.mubr.bf16.gmra.mrb[16].mxu1 %v4417_v43  ;;  %v4477_v42 = vld [vmem:[%s6024_s5 + $0x24] ss:$8 sps:$4 sm:$0xff]  }
  0xbe   : > { %874 = vmatprep.mubr.bf16.mxu0 %v4817_v0  ;;  %954 = vmatprep.mubr.bf16.mxu1 %v4817_v0 }
  0xbf   : > { %1302 = vmatpush1.bf16.msra.mxu1 %v4445_v44  ;;  %1782 = vmatprep.subr.bf16.mxu0 %v4477_v42 }
  0xc0   : > { %1303 = vmatprep.subr.bf16.mxu1 %v4450_v45 }
  0xc3   : > { %1304 = vmatpush1.bf16.msra.mxu1 %v4448_v46 }
  0xc4   : > { %1305 = vmatprep.subr.bf16.mxu1 %v4453_v47 }
  0xc5   : > { %875 = vmatmul.mubr.bf16.gmra.mrb[20].mxu0 %v4410_v48  ;;  %955 = vmatmul.mubr.bf16.gmra.mrb[20].mxu1 %v4418_v49 }
  0xc6   : > { %884 = vmatprep.mubr.bf16.mxu0 %v4817_v0  ;;  %964 = vmatprep.mubr.bf16.mxu1 %v4817_v0 }
  0xc7   : > { %1306 = vmatpush1.bf16.msra.mxu1 %v4451_v50 }
  0xc8   : > { %1307 = vmatprep.subr.bf16.mxu1 %v4456_v51 }
  0xcb   : > { %1308 = vmatpush1.bf16.msra.mxu1 %v4454_v52 }
  0xcc   : > { %1309 = vmatprep.subr.bf16.mxu1 %v4459_v53 }
  0xcd   : > { %885 = vmatmul.mubr.bf16.gmra.mrb[24].mxu0 %v4411_v54  ;;  %965 = vmatmul.mubr.bf16.gmra.mrb[24].mxu1 %v4419_v55 }
  0xce   : > { %894 = vmatprep.mubr.bf16.mxu0 %v4817_v0  ;;  %974 = vmatprep.mubr.bf16.mxu1 %v4817_v0  ;;  %v4466_v0 = vld [vmem:[%s6022_s3 + $0xf0] ss:$8 sps:$4 sm:$0xff]  }
  0xcf   : > { %1310 = vmatpush1.bf16.msra.mxu1 %v4457_v56  ;;  %v4475_v56 = vld [vmem:[%s6024_s5 + $0x20] ss:$8 sps:$4 sm:$0xff]  }
  0xd0   : > { %1311 = vmatprep.subr.bf16.mxu1 %v4462_v57  ;;  %1783 = vmatpush1.bf16.msra.mxu0 %v4475_v56 }
  0xd3   : > { %1312 = vmatpush1.bf16.msra.mxu1 %v4460_v58 }
  0xd4   : > { %1313 = vmatprep.subr.bf16.mxu1 %v4465_v61 }
  0xd5   : > { %895 = vmatmul.mubr.bf16.gmra.mrb[28].mxu0 %v4412_v59  ;;  %975 = vmatmul.mubr.bf16.gmra.mrb[28].mxu1 %v4420_v60  ;;  %v4480_v60 = vld [vmem:[%s6024_s5 + $0x34] ss:$8 sps:$4 sm:$0xff]  }
  0xd6   : > { %1784 = vmatprep.subr.bf16.mxu0 %v4480_v60 }
  0xd7   : > { %1314 = vmatpush1.bf16.msra.mxu1 %v4463_v62 }
  0xd8   : > { %1315 = vmatprep.subr.bf16.mxu1 %v4468_v63 }
  0xdb   : > { %1316 = vmatpush1.bf16.msra.mxu1 %v4466_v0 }
 0x170   : > { %v826_v8 = vpop.f32.mrb[0].mxu0  ;;  %v906_v9 = vpop.f32.mrb[0].mxu1 }
 0x171   : > { %v827_v10 = vadd.f32 %v826_v8, %v5183_v6  ;;  %v828_v11 = vpop.f32.mrb[1].mxu0  ;;  %v907_v12 = vadd.f32 %v906_v9, %v5183_v6  ;;  %v908_v13 = vpop.f32.mrb[1].mxu1  ;;  %v4478_v9 = vld [vmem:[%s6024_s5 + $0x30] ss:$8 sps:$4 sm:$0xff]  }
 0x172   : > { %v829_v14 = vadd.f32 %v828_v11, %v5186_v7  ;;  %v830_v15 = vpop.f32.mrb[2].mxu0  ;;  %v909_v16 = vadd.f32 %v908_v13, %v5186_v7  ;;  %v910_v17 = vpop.f32.mrb[2].mxu1  ;;  %1785 = vmatpush1.bf16.msra.mxu0 %v4478_v9 }
 0x173   : > { %v831_v18 = vadd.f32 %v830_v15, %v5183_v6  ;;  %v832_v19 = vpop.f32.mrb[3].mxu0  ;;  %v1017_v20 = vmax.f32 %v907_v12, 0.0  ;;  %v911_v21 = vadd.f32 %v910_v17, %v5183_v6  ;;  %v912_v22 = vpop.f32.mrb[3].mxu1  ;;  %v985_v28 = vmax.f32 %v827_v10, 0.0 }
 0x174   : > { %v833_v24 = vadd.f32 %v832_v19, %v5186_v7  ;;  %v1018_v25 = vmax.f32 %v909_v16, 0.0  ;;  %v913_v26 = vadd.f32 %v912_v22, %v5186_v7  ;;  %v986_v32 = vmax.f32 %v829_v14, 0.0  ;;  %v4483_v14 = vld [vmem:[%s6024_s5 + $0x44] ss:$8 sps:$4 sm:$0xff]  }
 0x175   : > { %v987_v29 = vmax.f32 %v831_v18, 0.0  ;;  %v1019_v30 = vmax.f32 %v911_v21, 0.0  ;;  %1786 = vmatprep.subr.bf16.mxu0 %v4483_v14 }
 0x176   : > { %v988_v33 = vmax.f32 %v833_v24, 0.0  ;;  %v1020_v34 = vmax.f32 %v913_v26, 0.0 }
 0x177   : > { %v1049_v35 = vpack.c.bf16 %v987_v29, %v985_v28  ;;  %v5205_v36 = vpack.c.bf16 %v1019_v30, %v1017_v20  ;;  %v4481_v28 = vld [vmem:[%s6024_s5 + $0x40] ss:$8 sps:$4 sm:$0xff]  }
 0x178   : > { %v1050_v38 = vpack.c.bf16 %v988_v33, %v986_v32  ;;  %v836_v39 = vpop.f32.mrb[4].mxu0  ;;  %v5210_v40 = vpack.c.bf16 %v1020_v34, %v1018_v25  ;;  %v916_v41 = vpop.f32.mrb[4].mxu1  ;;  %v4486_v32 = vld [vmem:[%s6024_s5 + $0x54] ss:$8 sps:$4 sm:$0xff]   ;;  %1787 = vmatpush1.bf16.msra.mxu0 %v4481_v28 }
 0x179   : > { %v837_v43 = vadd.f32 %v836_v39, %v5183_v6  ;;  %v838_v44 = vpop.f32.mrb[5].mxu0  ;;  %v917_v45 = vadd.f32 %v916_v41, %v5183_v6  ;;  %v918_v46 = vpop.f32.mrb[5].mxu1  ;;  %1788 = vmatprep.subr.bf16.mxu0 %v4486_v32 }
 0x17a   : > { %v839_v47 = vadd.f32 %v838_v44, %v5186_v7  ;;  %v840_v48 = vpop.f32.mrb[6].mxu0  ;;  %1317 = vmatprep.mubr.bf16.mxu1 %v1050_v38  ;;  %v919_v49 = vadd.f32 %v918_v46, %v5186_v7  ;;  %v920_v50 = vpop.f32.mrb[6].mxu1 }
 0x17b   : > { %v841_v51 = vadd.f32 %v840_v48, %v5183_v6  ;;  %v842_v52 = vpop.f32.mrb[7].mxu0  ;;  %1318 = vmatmul.mubr.bf16.vlgmr.msra.gmra.mrb[32].mxu1 %v1049_v35  ;;  %v1021_v53 = vmax.f32 %v917_v45, 0.0  ;;  %v921_v54 = vadd.f32 %v920_v50, %v5183_v6  ;;  %v922_v55 = vpop.f32.mrb[7].mxu1  ;;  %v989_v61 = vmax.f32 %v837_v43, 0.0  ;;  %v4484_v43 = vld [vmem:[%s6024_s5 + $0x50] ss:$8 sps:$4 sm:$0xff]  }
 0x17c   : > { %v843_v57 = vadd.f32 %v842_v52, %v5186_v7  ;;  %v1022_v58 = vmax.f32 %v919_v49, 0.0  ;;  %v923_v59 = vadd.f32 %v922_v55, %v5186_v7  ;;  %v990_v0 = vmax.f32 %v839_v47, 0.0  ;;  %v4489_v48 = vld [vmem:[%s6024_s5 + $0x64] ss:$8 sps:$4 sm:$0xff]   ;;  %1789 = vmatpush1.bf16.msra.mxu0 %v4484_v43  ;;  %v4498_v43 = vld [vmem:[%s6024_s5 + $0x94] ss:$8 sps:$4 sm:$0xff]  }
 0x17d   : > { %v991_v62 = vmax.f32 %v841_v51, 0.0  ;;  %v1023_v63 = vmax.f32 %v921_v54, 0.0  ;;  %1790 = vmatprep.subr.bf16.mxu0 %v4489_v48 }
 0x17e   : > { %v992_v1 = vmax.f32 %v843_v57, 0.0  ;;  %v1024_v2 = vmax.f32 %v923_v59, 0.0 }
 0x17f   : > { %v1051_v4 = vpack.c.bf16 %v991_v62, %v989_v61  ;;  %v5229_v8 = vpack.c.bf16 %v1023_v63, %v1021_v53  ;;  %v4487_v62 = vld [vmem:[%s6024_s5 + $0x60] ss:$8 sps:$4 sm:$0xff]  }
 0x180   : > { %v1052_v10 = vpack.c.bf16 %v992_v1, %v990_v0  ;;  %v846_v11 = vpop.f32.mrb[8].mxu0  ;;  %v5234_v12 = vpack.c.bf16 %v1024_v2, %v1022_v58  ;;  %v926_v13 = vpop.f32.mrb[8].mxu1  ;;  %v4492_v2 = vld [vmem:[%s6024_s5 + $0x74] ss:$8 sps:$4 sm:$0xff]   ;;  %1791 = vmatpush1.bf16.msra.mxu0 %v4487_v62 }
 0x181   : > { %v847_v15 = vadd.f32 %v846_v11, %v5183_v6  ;;  %v848_v16 = vpop.f32.mrb[9].mxu0  ;;  %v927_v17 = vadd.f32 %v926_v13, %v5183_v6  ;;  %v928_v18 = vpop.f32.mrb[9].mxu1  ;;  %1792 = vmatprep.subr.bf16.mxu0 %v4492_v2 }
 0x182   : > { %v849_v19 = vadd.f32 %v848_v16, %v5186_v7  ;;  %v850_v20 = vpop.f32.mrb[10].mxu0  ;;  %1327 = vmatprep.mubr.bf16.mxu1 %v1052_v10  ;;  %v929_v21 = vadd.f32 %v928_v18, %v5186_v7  ;;  %v930_v22 = vpop.f32.mrb[10].mxu1 }
 0x183   : > { %v851_v23 = vadd.f32 %v850_v20, %v5183_v6  ;;  %v852_v24 = vpop.f32.mrb[11].mxu0  ;;  %1328 = vmatmul.mubr.bf16.gmra.mrb[36].mxu1 %v1051_v4  ;;  %v1025_v25 = vmax.f32 %v927_v17, 0.0  ;;  %v931_v26 = vadd.f32 %v930_v22, %v5183_v6  ;;  %v932_v27 = vpop.f32.mrb[11].mxu1  ;;  %v993_v33 = vmax.f32 %v847_v15, 0.0  ;;  %v4490_v17 = vld [vmem:[%s6024_s5 + $0x70] ss:$8 sps:$4 sm:$0xff]  }
 0x184   : > { %v853_v29 = vadd.f32 %v852_v24, %v5186_v7  ;;  %v1026_v30 = vmax.f32 %v929_v21, 0.0  ;;  %v933_v31 = vadd.f32 %v932_v27, %v5186_v7  ;;  %v994_v37 = vmax.f32 %v849_v19, 0.0  ;;  %v4495_v22 = vld [vmem:[%s6024_s5 + $0x84] ss:$8 sps:$4 sm:$0xff]   ;;  %1793 = vmatpush1.bf16.msra.mxu0 %v4490_v17 }
 0x185   : > { %v995_v34 = vmax.f32 %v851_v23, 0.0  ;;  %v1027_v35 = vmax.f32 %v931_v26, 0.0  ;;  %1794 = vmatprep.subr.bf16.mxu0 %v4495_v22 }
 0x186   : > { %v996_v38 = vmax.f32 %v853_v29, 0.0  ;;  %v1028_v39 = vmax.f32 %v933_v31, 0.0 }
 0x187   : > { %v1053_v41 = vpack.c.bf16 %v995_v34, %v993_v33  ;;  %v5253_v42 = vpack.c.bf16 %v1027_v35, %v1025_v25 }
 0x188   : > { %v1054_v44 = vpack.c.bf16 %v996_v38, %v994_v37  ;;  %v856_v45 = vpop.f32.mrb[12].mxu0  ;;  %v5258_v46 = vpack.c.bf16 %v1028_v39, %v1026_v30  ;;  %v936_v47 = vpop.f32.mrb[12].mxu1  ;;  %v4493_v37 = vld [vmem:[%s6024_s5 + $0x80] ss:$8 sps:$4 sm:$0xff]  }
 0x189   : > { %v857_v49 = vadd.f32 %v856_v45, %v5183_v6  ;;  %v858_v50 = vpop.f32.mrb[13].mxu0  ;;  %v937_v51 = vadd.f32 %v936_v47, %v5183_v6  ;;  %v938_v52 = vpop.f32.mrb[13].mxu1  ;;  %1795 = vmatpush1.bf16.msra.mxu0 %v4493_v37 }
 0x18a   : > { %v859_v53 = vadd.f32 %v858_v50, %v5186_v7  ;;  %v860_v54 = vpop.f32.mrb[14].mxu0  ;;  %1337 = vmatprep.mubr.bf16.mxu1 %v1054_v44  ;;  %v939_v55 = vadd.f32 %v938_v52, %v5186_v7  ;;  %v940_v56 = vpop.f32.mrb[14].mxu1  ;;  %1796 = vmatprep.subr.bf16.mxu0 %v4498_v43 }
 0x18b   : > { %v861_v57 = vadd.f32 %v860_v54, %v5183_v6  ;;  %v862_v58 = vpop.f32.mrb[15].mxu0  ;;  %1338 = vmatmul.mubr.bf16.gmra.mrb[40].mxu1 %v1053_v41  ;;  %v1029_v59 = vmax.f32 %v937_v51, 0.0  ;;  %v941_v60 = vadd.f32 %v940_v56, %v5183_v6  ;;  %v942_v61 = vpop.f32.mrb[15].mxu1  ;;  %v997_v4 = vmax.f32 %v857_v49, 0.0 }
 0x18c   : > { %v863_v63 = vadd.f32 %v862_v58, %v5186_v7  ;;  %v1030_v0 = vmax.f32 %v939_v55, 0.0  ;;  %v943_v1 = vadd.f32 %v942_v61, %v5186_v7  ;;  %v998_v11 = vmax.f32 %v859_v53, 0.0  ;;  %v4496_v53 = vld [vmem:[%s6024_s5 + $0x90] ss:$8 sps:$4 sm:$0xff]   ;;  %v4501_v58 = vld [vmem:[%s6024_s5 + $0xa4] ss:$8 sps:$4 sm:$0xff]  }
 0x18d   : > { %v999_v9 = vmax.f32 %v861_v57, 0.0  ;;  %v1031_v10 = vmax.f32 %v941_v60, 0.0  ;;  %1797 = vmatpush1.bf16.msra.mxu0 %v4496_v53  ;;  %v4505_v53 = vld [vmem:[%s6024_s5 + $0xc0] ss:$8 sps:$4 sm:$0xff]  }
 0x18e   : > { %v1000_v13 = vmax.f32 %v863_v63, 0.0  ;;  %v1032_v14 = vmax.f32 %v943_v1, 0.0  ;;  %1798 = vmatprep.subr.bf16.mxu0 %v4501_v58  ;;  %v4510_v58 = vld [vmem:[%s6024_s5 + $0xd4] ss:$8 sps:$4 sm:$0xff]  }
 0x18f   : > { %v1055_v15 = vpack.c.bf16 %v999_v9, %v997_v4  ;;  %v5277_v16 = vpack.c.bf16 %v1031_v10, %v1029_v59 }
 0x190   : > { %v1056_v18 = vpack.c.bf16 %v1000_v13, %v998_v11  ;;  %v866_v19 = vpop.f32.mrb[16].mxu0  ;;  %v5282_v20 = vpack.c.bf16 %v1032_v14, %v1030_v0  ;;  %v946_v21 = vpop.f32.mrb[16].mxu1  ;;  %v4499_v14 = vld [vmem:[%s6024_s5 + $0xa0] ss:$8 sps:$4 sm:$0xff]  }
 0x191   : > { %v867_v23 = vadd.f32 %v866_v19, %v5183_v6  ;;  %v868_v24 = vpop.f32.mrb[17].mxu0  ;;  %v947_v25 = vadd.f32 %v946_v21, %v5183_v6  ;;  %v948_v26 = vpop.f32.mrb[17].mxu1  ;;  %v4504_v19 = vld [vmem:[%s6024_s5 + $0xb4] ss:$8 sps:$4 sm:$0xff]   ;;  %1799 = vmatpush1.bf16.msra.mxu0 %v4499_v14 }
 0x192   : > { %v869_v27 = vadd.f32 %v868_v24, %v5186_v7  ;;  %v870_v28 = vpop.f32.mrb[18].mxu0  ;;  %1347 = vmatprep.mubr.bf16.mxu1 %v1056_v18  ;;  %v949_v29 = vadd.f32 %v948_v26, %v5186_v7  ;;  %v950_v30 = vpop.f32.mrb[18].mxu1  ;;  %1800 = vmatprep.subr.bf16.mxu0 %v4504_v19 }
 0x193   : > { %v871_v31 = vadd.f32 %v870_v28, %v5183_v6  ;;  %v872_v32 = vpop.f32.mrb[19].mxu0  ;;  %1348 = vmatmul.mubr.bf16.gmra.mrb[44].mxu1 %v1055_v15  ;;  %v1033_v33 = vmax.f32 %v947_v25, 0.0  ;;  %v951_v34 = vadd.f32 %v950_v30, %v5183_v6  ;;  %v952_v35 = vpop.f32.mrb[19].mxu1  ;;  %v1001_v44 = vmax.f32 %v867_v23, 0.0 }
 0x194   : > { %v873_v38 = vadd.f32 %v872_v32, %v5186_v7  ;;  %v1034_v39 = vmax.f32 %v949_v29, 0.0  ;;  %v953_v41 = vadd.f32 %v952_v35, %v5186_v7  ;;  %v1002_v48 = vmax.f32 %v869_v27, 0.0  ;;  %v4502_v29 = vld [vmem:[%s6024_s5 + $0xb0] ss:$8 sps:$4 sm:$0xff]  }
 0x195   : > { %v1003_v45 = vmax.f32 %v871_v31, 0.0  ;;  %v1035_v47 = vmax.f32 %v951_v34, 0.0  ;;  %v4507_v34 = vld [vmem:[%s6024_s5 + $0xc4] ss:$8 sps:$4 sm:$0xff]   ;;  %1801 = vmatpush1.bf16.msra.mxu0 %v4502_v29 }
 0x196   : > { %v1004_v49 = vmax.f32 %v873_v38, 0.0  ;;  %v1036_v50 = vmax.f32 %v953_v41, 0.0  ;;  %1802 = vmatprep.subr.bf16.mxu0 %v4507_v34 }
 0x197   : > { %v1057_v51 = vpack.c.bf16 %v1003_v45, %v1001_v44  ;;  %v5301_v52 = vpack.c.bf16 %v1035_v47, %v1033_v33 }
 0x198   : > { %v1058_v54 = vpack.c.bf16 %v1004_v49, %v1002_v48  ;;  %v876_v55 = vpop.f32.mrb[20].mxu0  ;;  %v5306_v56 = vpack.c.bf16 %v1036_v50, %v1034_v39  ;;  %v956_v57 = vpop.f32.mrb[20].mxu1 }
 0x199   : > { %v877_v59 = vadd.f32 %v876_v55, %v5183_v6  ;;  %v878_v60 = vpop.f32.mrb[21].mxu0  ;;  %v957_v61 = vadd.f32 %v956_v57, %v5183_v6  ;;  %v958_v62 = vpop.f32.mrb[21].mxu1  ;;  %1803 = vmatpush1.bf16.msra.mxu0 %v4505_v53 }
 0x19a   : > { %v879_v63 = vadd.f32 %v878_v60, %v5186_v7  ;;  %v880_v0 = vpop.f32.mrb[22].mxu0  ;;  %1357 = vmatprep.mubr.bf16.mxu1 %v1058_v54  ;;  %v959_v1 = vadd.f32 %v958_v62, %v5186_v7  ;;  %v960_v2 = vpop.f32.mrb[22].mxu1  ;;  %1804 = vmatprep.subr.bf16.mxu0 %v4510_v58  ;;  %v4529_v58 = vld [vmem:[%s6026_s7 + $0x40] ss:$8 sps:$4 sm:$0xff]  }
 0x19b   : > { %v881_v4 = vadd.f32 %v880_v0, %v5183_v6  ;;  %v882_v9 = vpop.f32.mrb[23].mxu0  ;;  %1358 = vmatmul.mubr.bf16.gmra.mrb[48].mxu1 %v1057_v51  ;;  %v1037_v10 = vmax.f32 %v957_v61, 0.0  ;;  %v961_v11 = vadd.f32 %v960_v2, %v5183_v6  ;;  %v962_v13 = vpop.f32.mrb[23].mxu1  ;;  %v1005_v21 = vmax.f32 %v877_v59, 0.0 }
 0x19c   : > { %v883_v15 = vadd.f32 %v882_v9, %v5186_v7  ;;  %v1038_v17 = vmax.f32 %v959_v1, 0.0  ;;  %v963_v18 = vadd.f32 %v962_v13, %v5186_v7  ;;  %v1006_v24 = vmax.f32 %v879_v63, 0.0 }
 0x19d   : > { %v1007_v22 = vmax.f32 %v881_v4, 0.0  ;;  %v1039_v23 = vmax.f32 %v961_v11, 0.0  ;;  %v4508_v4 = vld [vmem:[%s6024_s5 + $0xd0] ss:$8 sps:$4 sm:$0xff]  }
 0x19e   : > { %v1008_v25 = vmax.f32 %v883_v15, 0.0  ;;  %v1040_v26 = vmax.f32 %v963_v18, 0.0  ;;  %1805 = vmatpush1.bf16.msra.mxu0 %v4508_v4  ;;  %v4532_v4 = vld [vmem:[%s6026_s7 + $0x50] ss:$8 sps:$4 sm:$0xff]  }
 0x19f   : > { %v1059_v27 = vpack.c.bf16 %v1007_v22, %v1005_v21  ;;  %v5325_v28 = vpack.c.bf16 %v1039_v23, %v1037_v10 }
 0x1a0   : > { %v1060_v30 = vpack.c.bf16 %v1008_v25, %v1006_v24  ;;  %v886_v31 = vpop.f32.mrb[24].mxu0  ;;  %v5330_v32 = vpack.c.bf16 %v1040_v26, %v1038_v17  ;;  %v966_v33 = vpop.f32.mrb[24].mxu1 }
 0x1a1   : > { %v887_v35 = vadd.f32 %v886_v31, %v5183_v6  ;;  %v888_v37 = vpop.f32.mrb[25].mxu0  ;;  %v967_v38 = vadd.f32 %v966_v33, %v5183_v6  ;;  %v968_v39 = vpop.f32.mrb[25].mxu1 }
 0x1a2   : > { %v889_v41 = vadd.f32 %v888_v37, %v5186_v7  ;;  %v890_v43 = vpop.f32.mrb[26].mxu0  ;;  %1367 = vmatprep.mubr.bf16.mxu1 %v1060_v30  ;;  %v969_v44 = vadd.f32 %v968_v39, %v5186_v7  ;;  %v970_v45 = vpop.f32.mrb[26].mxu1 }
 0x1a3   : > { %v891_v47 = vadd.f32 %v890_v43, %v5183_v6  ;;  %v892_v48 = vpop.f32.mrb[27].mxu0  ;;  %1368 = vmatmul.mubr.bf16.gmra.mrb[52].mxu1 %v1059_v27  ;;  %v1041_v49 = vmax.f32 %v967_v38, 0.0  ;;  %v971_v50 = vadd.f32 %v970_v45, %v5183_v6  ;;  %v972_v51 = vpop.f32.mrb[27].mxu1  ;;  %v1009_v59 = vmax.f32 %v887_v35, 0.0 }
 0x1a4   : > { %v893_v54 = vadd.f32 %v892_v48, %v5186_v7  ;;  %v1042_v55 = vmax.f32 %v969_v44, 0.0  ;;  %v973_v57 = vadd.f32 %v972_v51, %v5186_v7  ;;  %v1010_v62 = vmax.f32 %v889_v41, 0.0  ;;  %v4526_v48 = vld [vmem:[%s6026_s7 + $0x30] ss:$8 sps:$4 sm:$0xff]  }
 0x1a5   : > { %v1011_v60 = vmax.f32 %v891_v47, 0.0  ;;  %v1043_v61 = vmax.f32 %v971_v50, 0.0 }
 0x1a6   : > { %v1012_v63 = vmax.f32 %v893_v54, 0.0  ;;  %v1044_v0 = vmax.f32 %v973_v57, 0.0 }
 0x1a7   : > { %v1061_v1 = vpack.c.bf16 %v1011_v60, %v1009_v59  ;;  %v1077_v2 = vpack.c.bf16 %v1043_v61, %v1041_v49  ;;  %v4528_v49 = vld [vmem:[%s6026_s7 + $0x34] ss:$8 sps:$4 sm:$0xff]   ;;  %v4531_v59 = vld [vmem:[%s6026_s7 + $0x44] ss:$8 sps:$4 sm:$0xff]  }
 0x1a8   : > { %v1062_v9 = vpack.c.bf16 %v1012_v63, %v1010_v62  ;;  %v896_v10 = vpop.f32.mrb[28].mxu0  ;;  %v1078_v11 = vpack.c.bf16 %v1044_v0, %v1042_v55  ;;  %v976_v13 = vpop.f32.mrb[28].mxu1  ;;  %v4534_v61 = vld [vmem:[%s6026_s7 + $0x54] ss:$8 sps:$4 sm:$0xff]  }
 0x1a9   : > { %v897_v14 = vadd.f32 %v896_v10, %v5183_v6  ;;  %v898_v15 = vpop.f32.mrb[29].mxu0  ;;  %v977_v17 = vadd.f32 %v976_v13, %v5183_v6  ;;  %v978_v18 = vpop.f32.mrb[29].mxu1 }
 0x1aa   : > { %v899_v19 = vadd.f32 %v898_v15, %v5186_v7  ;;  %v900_v21 = vpop.f32.mrb[30].mxu0  ;;  %1377 = vmatprep.mubr.bf16.mxu1 %v1062_v9  ;;  %v979_v22 = vadd.f32 %v978_v18, %v5186_v7  ;;  %v980_v23 = vpop.f32.mrb[30].mxu1 }
 0x1ab   : > { %v901_v24 = vadd.f32 %v900_v21, %v5183_v6  ;;  %v902_v25 = vpop.f32.mrb[31].mxu0  ;;  %1378 = vmatmul.mubr.bf16.gmra.mrb[56].mxu1 %v1061_v1  ;;  %v1045_v26 = vmax.f32 %v977_v17, 0.0  ;;  %v981_v27 = vadd.f32 %v980_v23, %v5183_v6  ;;  %v982_v29 = vpop.f32.mrb[31].mxu1  ;;  %v1013_v34 = vmax.f32 %v897_v14, 0.0  ;;  %v4513_v6 = vld [vmem:[%s6024_s5 + $0xe4] ss:$8 sps:$4 sm:$0xff]  }
 0x1ac   : > { %v903_v30 = vadd.f32 %v902_v25, %v5186_v7  ;;  %v1046_v31 = vmax.f32 %v979_v22, 0.0  ;;  %v983_v33 = vadd.f32 %v982_v29, %v5186_v7  ;;  %v1014_v38 = vmax.f32 %v899_v19, 0.0  ;;  %v4511_v7 = vld [vmem:[%s6024_s5 + $0xe0] ss:$8 sps:$4 sm:$0xff]   ;;  %1806 = vmatprep.subr.bf16.mxu0 %v4513_v6  ;;  %v4540_v23 = vld [vmem:[%s6026_s7 + $0x74] ss:$8 sps:$4 sm:$0xff]  }
 0x1ad   : > { %v1015_v35 = vmax.f32 %v901_v24, 0.0  ;;  %v1047_v37 = vmax.f32 %v981_v27, 0.0  ;;  %1807 = vmatpush1.bf16.msra.mxu0 %v4511_v7  ;;  %v4535_v21 = vld [vmem:[%s6026_s7 + $0x60] ss:$8 sps:$4 sm:$0xff]  }
 0x1ae   : > { %v1016_v39 = vmax.f32 %v903_v30, 0.0  ;;  %v1048_v41 = vmax.f32 %v983_v33, 0.0  ;;  %v4538_v30 = vld [vmem:[%s6026_s7 + $0x70] ss:$8 sps:$4 sm:$0xff]  }
 0x1af   : > { %v1063_v43 = vpack.c.bf16 %v1015_v35, %v1013_v34  ;;  %v1079_v44 = vpack.c.bf16 %v1047_v37, %v1045_v26  ;;  %v4543_v34 = vld [vmem:[%s6026_s7 + $0x84] ss:$8 sps:$4 sm:$0xff]  }
 0x1b0   : > { %v1064_v45 = vpack.c.bf16 %v1016_v39, %v1014_v38  ;;  %v1080_v47 = vpack.c.bf16 %v1048_v41, %v1046_v31 }
 0x1b2   : > { %1387 = vmatprep.mubr.bf16.mxu1 %v1064_v45 }
 0x1b3   : > { %1388 = vmatmul.mubr.bf16.gmra.mrb[60].mxu1 %v1063_v43 }
 0x1b4   : > { %1397 = vmatprep.mubr.bf16.mxu1 %v5210_v40  ;;  %v4514_v40 = vld [vmem:[%s6024_s5 + $0xf0] ss:$8 sps:$4 sm:$0xff]  }
 0x1bb   : > { %1398 = vmatmul.mubr.bf16.gmra.mrb[64].mxu1 %v5205_v36  ;;  %v4516_v36 = vld [vmem:[%s6024_s5 + $0xf4] ss:$8 sps:$4 sm:$0xff]  }
 0x1bc   : > { %1407 = vmatprep.mubr.bf16.mxu1 %v5234_v12  ;;  %1808 = vmatprep.subr.bf16.mxu0 %v4516_v36  ;;  %v4519_v12 = vld [vmem:[%s6026_s7 + $0x4] ss:$8 sps:$4 sm:$0xff]  }
 0x1bd   : > { %1809 = vmatpush1.bf16.msra.mxu0 %v4514_v40  ;;  %2271 = vmatprep.subr.bf16.mxu1 %v4519_v12  ;;  %v4544_v12 = vld [vmem:[%s6026_s7 + $0x90] ss:$8 sps:$4 sm:$0xff]  }
 0x1c3   : > { %1408 = vmatmul.mubr.bf16.gmra.mrb[68].mxu1 %v5229_v8  ;;  %v4517_v8 = vld [vmem:[%s6026_s7] ss:$8 sps:$4 sm:$0xff]  }
 0x1c4   : > { %1417 = vmatprep.mubr.bf16.mxu1 %v5258_v46  ;;  %2272 = vmatpush1.bf16.msra.mxu1 %v4517_v8  ;;  %v4522_v46 = vld [vmem:[%s6026_s7 + $0x14] ss:$8 sps:$4 sm:$0xff]  }
 0x1c5   : > { %2273 = vmatprep.subr.bf16.mxu1 %v4522_v46 }
 0x1cb   : > { %1418 = vmatmul.mubr.bf16.gmra.mrb[72].mxu1 %v5253_v42  ;;  %v4520_v42 = vld [vmem:[%s6026_s7 + $0x10] ss:$8 sps:$4 sm:$0xff]  }
 0x1cc   : > { %1427 = vmatprep.mubr.bf16.mxu1 %v5282_v20  ;;  %2274 = vmatpush1.bf16.msra.mxu1 %v4520_v42  ;;  %v4523_v20 = vld [vmem:[%s6026_s7 + $0x20] ss:$8 sps:$4 sm:$0xff]  }
 0x1d3   : > { %1428 = vmatmul.mubr.bf16.gmra.mrb[76].mxu1 %v5277_v16  ;;  %v1113_v16 = vld [vmem:[%s6023_s4] sm:$0x3] }
 0x1d4   : > { %1437 = vmatprep.mubr.bf16.mxu1 %v5306_v56  ;;  %v5406_v56 = vrot.slane %v1113_v16, %v5178_v3 }
 0x1db   : > { %1438 = vmatmul.mubr.bf16.gmra.mrb[80].mxu1 %v5301_v52  ;;  %v4525_v52 = vld [vmem:[%s6026_s7 + $0x24] ss:$8 sps:$4 sm:$0xff]  }
 0x1dc   : > { %1447 = vmatprep.mubr.bf16.mxu1 %v5330_v32  ;;  %2275 = vmatprep.subr.bf16.mxu1 %v4525_v52 }
 0x1dd   : > { %2276 = vmatpush1.bf16.msra.mxu1 %v4523_v20 }
 0x1de   : > { %2277 = vmatprep.subr.bf16.mxu1 %v4528_v49 }
 0x1e1   : > { %2278 = vmatpush1.bf16.msra.mxu1 %v4526_v48 }
 0x1e2   : > { %2279 = vmatprep.subr.bf16.mxu1 %v4531_v59 }
 0x1e3   : > { %1448 = vmatmul.mubr.bf16.gmra.mrb[84].mxu1 %v5325_v28  ;;  %v5409_v28 = vrot.slane %v1113_v16, %v5180_v5  ;;  %v4549_v16 = vld [vmem:[%s6026_s7 + $0xa4] ss:$8 sps:$4 sm:$0xff]  }
 0x1e4   : > { %1457 = vmatprep.mubr.bf16.mxu1 %v1078_v11  ;;  %v4537_v11 = vld [vmem:[%s6026_s7 + $0x64] ss:$8 sps:$4 sm:$0xff]  }
 0x1e5   : > { %2280 = vmatpush1.bf16.msra.mxu1 %v4529_v58 }
 0x1e6   : > { %2281 = vmatprep.subr.bf16.mxu1 %v4534_v61  ;;  %v4550_v61 = vld [vmem:[%s6026_s7 + $0xb0] ss:$8 sps:$4 sm:$0xff]  }
 0x1e9   : > { %2282 = vmatpush1.bf16.msra.mxu1 %v4532_v4 }
 0x1ea   : > { %2283 = vmatprep.subr.bf16.mxu1 %v4537_v11 }
 0x1eb   : > { %1458 = vmatmul.mubr.bf16.gmra.mrb[88].mxu1 %v1077_v2 }
 0x1ec   : > { %1467 = vmatprep.mubr.bf16.mxu1 %v1080_v47  ;;  %v4546_v47 = vld [vmem:[%s6026_s7 + $0x94] ss:$8 sps:$4 sm:$0xff]  }
 0x1ed   : > { %2284 = vmatpush1.bf16.msra.mxu1 %v4535_v21 }
 0x1ee   : > { %2285 = vmatprep.subr.bf16.mxu1 %v4540_v23  ;;  %v4556_v23 = vld [vmem:[%s6026_s7 + $0xd0] ss:$8 sps:$4 sm:$0xff]  }
 0x1f1   : > { %2286 = vmatpush1.bf16.msra.mxu1 %v4538_v30 }
 0x1f2   : > { %2287 = vmatprep.subr.bf16.mxu1 %v4543_v34 }
 0x1f3   : > { %1468 = vmatmul.mubr.bf16.gmra.mrb[92].mxu1 %v1079_v44  ;;  %v4541_v44 = vld [vmem:[%s6026_s7 + $0x80] ss:$8 sps:$4 sm:$0xff]  }
 0x1f5   : > { %2288 = vmatpush1.bf16.msra.mxu1 %v4541_v44 }
 0x1f6   : > { %2289 = vmatprep.subr.bf16.mxu1 %v4546_v47 }
 0x1f9   : > { %2290 = vmatpush1.bf16.msra.mxu1 %v4544_v12 }
 0x1fa   : > { %2291 = vmatprep.subr.bf16.mxu1 %v4549_v16 }
 0x24e   : > { %v1319_v32 = vpop.f32.mrb[32].mxu1 }
 0x24f   : > { %v1320_v50 = vadd.f32 %v1319_v32, %v5406_v56  ;;  %v1321_v51 = vpop.f32.mrb[33].mxu1 }
 0x250   : > { %v1322_v53 = vadd.f32 %v1321_v51, %v5409_v28  ;;  %v1323_v54 = vpop.f32.mrb[34].mxu1  ;;  %v4547_v51 = vld [vmem:[%s6026_s7 + $0xa0] ss:$8 sps:$4 sm:$0xff]  }
 0x251   : > { %v1324_v55 = vadd.f32 %v1323_v54, %v5406_v56  ;;  %v1325_v57 = vpop.f32.mrb[35].mxu1  ;;  %v1478_v62 = vmax.f32 %v1320_v50, 0.0  ;;  %v4552_v54 = vld [vmem:[%s6026_s7 + $0xb4] ss:$8 sps:$4 sm:$0xff]   ;;  %2292 = vmatpush1.bf16.msra.mxu1 %v4547_v51 }
 0x252   : > { %v1326_v60 = vadd.f32 %v1325_v57, %v5409_v28  ;;  %v1479_v0 = vmax.f32 %v1322_v53, 0.0  ;;  %2293 = vmatprep.subr.bf16.mxu1 %v4552_v54 }
 0x253   : > { %v1480_v63 = vmax.f32 %v1324_v55, 0.0 }
 0x254   : > { %v1481_v1 = vmax.f32 %v1326_v60, 0.0 }
 0x255   : > { %v1542_v2 = vpack.c.bf16 %v1480_v63, %v1478_v62  ;;  %2294 = vmatpush1.bf16.msra.mxu1 %v4550_v61 }
 0x256   : > { %v1543_v9 = vpack.c.bf16 %v1481_v1, %v1479_v0  ;;  %v1329_v10 = vpop.f32.mrb[36].mxu1  ;;  %v4555_v0 = vld [vmem:[%s6026_s7 + $0xc4] ss:$8 sps:$4 sm:$0xff]  }
 0x257   : > { %v1330_v13 = vadd.f32 %v1329_v10, %v5406_v56  ;;  %v1331_v14 = vpop.f32.mrb[37].mxu1  ;;  %2295 = vmatprep.subr.bf16.mxu1 %v4555_v0 }
 0x258   : > { %v1332_v15 = vadd.f32 %v1331_v14, %v5409_v28  ;;  %v1333_v17 = vpop.f32.mrb[38].mxu1  ;;  %1810 = vmatprep.mubr.bf16.mxu0 %v1543_v9 }
 0x259   : > { %v1334_v18 = vadd.f32 %v1333_v17, %v5406_v56  ;;  %v1335_v19 = vpop.f32.mrb[39].mxu1  ;;  %1811 = vmatmul.mubr.bf16.vlgmr.msra.gmra.mrb[32].mxu0 %v1542_v2  ;;  %v1482_v24 = vmax.f32 %v1330_v13, 0.0  ;;  %v4553_v13 = vld [vmem:[%s6026_s7 + $0xc0] ss:$8 sps:$4 sm:$0xff]  }
 0x25a   : > { %v1336_v22 = vadd.f32 %v1335_v19, %v5409_v28  ;;  %v1483_v26 = vmax.f32 %v1332_v15, 0.0  ;;  %v4558_v15 = vld [vmem:[%s6026_s7 + $0xd4] ss:$8 sps:$4 sm:$0xff]   ;;  %2296 = vmatpush1.bf16.msra.mxu1 %v4553_v13 }
 0x25b   : > { %v1484_v25 = vmax.f32 %v1334_v18, 0.0  ;;  %2297 = vmatprep.subr.bf16.mxu1 %v4558_v15 }
 0x25c   : > { %v1485_v27 = vmax.f32 %v1336_v22, 0.0 }
 0x25d   : > { %v1544_v29 = vpack.c.bf16 %v1484_v25, %v1482_v24 }
 0x25e   : > { %v1545_v31 = vpack.c.bf16 %v1485_v27, %v1483_v26  ;;  %v1339_v33 = vpop.f32.mrb[40].mxu1  ;;  %v4561_v26 = vld [vmem:[%s6026_s7 + $0xe4] ss:$8 sps:$4 sm:$0xff]   ;;  %2298 = vmatpush1.bf16.msra.mxu1 %v4556_v23 }
 0x25f   : > { %v1340_v35 = vadd.f32 %v1339_v33, %v5406_v56  ;;  %v1341_v37 = vpop.f32.mrb[41].mxu1  ;;  %2299 = vmatprep.subr.bf16.mxu1 %v4561_v26 }
 0x260   : > { %v1342_v38 = vadd.f32 %v1341_v37, %v5409_v28  ;;  %v1343_v39 = vpop.f32.mrb[42].mxu1  ;;  %1820 = vmatprep.mubr.bf16.mxu0 %v1545_v31 }
 0x261   : > { %v1344_v41 = vadd.f32 %v1343_v39, %v5406_v56  ;;  %v1345_v43 = vpop.f32.mrb[43].mxu1  ;;  %1821 = vmatmul.mubr.bf16.gmra.mrb[36].mxu0 %v1544_v29  ;;  %v1486_v6 = vmax.f32 %v1340_v35, 0.0  ;;  %v4559_v35 = vld [vmem:[%s6026_s7 + $0xe0] ss:$8 sps:$4 sm:$0xff]  }
 0x262   : > { %v1346_v45 = vadd.f32 %v1345_v43, %v5409_v28  ;;  %v1487_v36 = vmax.f32 %v1342_v38, 0.0  ;;  %2300 = vmatpush1.bf16.msra.mxu1 %v4559_v35 }
 0x263   : > { %v1488_v7 = vmax.f32 %v1344_v41, 0.0 }
 0x264   : > { %v1489_v40 = vmax.f32 %v1346_v45, 0.0 }
 0x265   : > { %v1546_v8 = vpack.c.bf16 %v1488_v7, %v1486_v6 }
 0x266   : > { %v1547_v42 = vpack.c.bf16 %v1489_v40, %v1487_v36  ;;  %v1349_v46 = vpop.f32.mrb[44].mxu1 }
 0x267   : > { %v1350_v20 = vadd.f32 %v1349_v46, %v5406_v56  ;;  %v1351_v52 = vpop.f32.mrb[45].mxu1 }
 0x268   : > { %v1352_v32 = vadd.f32 %v1351_v52, %v5409_v28  ;;  %v1353_v48 = vpop.f32.mrb[46].mxu1  ;;  %1830 = vmatprep.mubr.bf16.mxu0 %v1547_v42 }
 0x269   : > { %v1354_v49 = vadd.f32 %v1353_v48, %v5406_v56  ;;  %v1355_v50 = vpop.f32.mrb[47].mxu1  ;;  %1831 = vmatmul.mubr.bf16.gmra.mrb[40].mxu0 %v1546_v8  ;;  %v1490_v55 = vmax.f32 %v1350_v20, 0.0 }
 0x26a   : > { %v1356_v53 = vadd.f32 %v1355_v50, %v5409_v28  ;;  %v1491_v58 = vmax.f32 %v1352_v32, 0.0 }
 0x26b   : > { %v1492_v57 = vmax.f32 %v1354_v49, 0.0 }
 0x26c   : > { %v1493_v59 = vmax.f32 %v1356_v53, 0.0 }
 0x26d   : > { %v1548_v60 = vpack.c.bf16 %v1492_v57, %v1490_v55 }
 0x26e   : > { %v1549_v62 = vpack.c.bf16 %v1493_v59, %v1491_v58  ;;  %v1359_v63 = vpop.f32.mrb[48].mxu1 }
 0x26f   : > { %v1360_v1 = vadd.f32 %v1359_v63, %v5406_v56  ;;  %v1361_v2 = vpop.f32.mrb[49].mxu1 }
 0x270   : > { %v1362_v4 = vadd.f32 %v1361_v2, %v5409_v28  ;;  %v1363_v9 = vpop.f32.mrb[50].mxu1  ;;  %1840 = vmatprep.mubr.bf16.mxu0 %v1549_v62 }
 0x271   : > { %v1364_v10 = vadd.f32 %v1363_v9, %v5406_v56  ;;  %v1365_v11 = vpop.f32.mrb[51].mxu1  ;;  %1841 = vmatmul.mubr.bf16.gmra.mrb[44].mxu0 %v1548_v60  ;;  %v1494_v17 = vmax.f32 %v1360_v1, 0.0 }
 0x272   : > { %v1366_v14 = vadd.f32 %v1365_v11, %v5409_v28  ;;  %v1495_v19 = vmax.f32 %v1362_v4, 0.0 }
 0x273   : > { %v1496_v18 = vmax.f32 %v1364_v10, 0.0 }
 0x274   : > { %v1497_v21 = vmax.f32 %v1366_v14, 0.0 }
 0x275   : > { %v1550_v22 = vpack.c.bf16 %v1496_v18, %v1494_v17 }
 0x276   : > { %v1551_v24 = vpack.c.bf16 %v1497_v21, %v1495_v19  ;;  %v1369_v25 = vpop.f32.mrb[52].mxu1 }
 0x277   : > { %v1370_v27 = vadd.f32 %v1369_v25, %v5406_v56  ;;  %v1371_v29 = vpop.f32.mrb[53].mxu1 }
 0x278   : > { %v1372_v30 = vadd.f32 %v1371_v29, %v5409_v28  ;;  %v1373_v31 = vpop.f32.mrb[54].mxu1  ;;  %1850 = vmatprep.mubr.bf16.mxu0 %v1551_v24 }
 0x279   : > { %v1374_v33 = vadd.f32 %v1373_v31, %v5406_v56  ;;  %v1375_v34 = vpop.f32.mrb[55].mxu1  ;;  %1851 = vmatmul.mubr.bf16.gmra.mrb[48].mxu0 %v1550_v22  ;;  %v1498_v38 = vmax.f32 %v1370_v27, 0.0 }
 0x27a   : > { %v1376_v37 = vadd.f32 %v1375_v34, %v5409_v28  ;;  %v1499_v41 = vmax.f32 %v1372_v30, 0.0 }
 0x27b   : > { %v1500_v39 = vmax.f32 %v1374_v33, 0.0 }
 0x27c   : > { %v1501_v43 = vmax.f32 %v1376_v37, 0.0 }
 0x27d   : > { %v1552_v44 = vpack.c.bf16 %v1500_v39, %v1498_v38 }
 0x27e   : > { %v1553_v45 = vpack.c.bf16 %v1501_v43, %v1499_v41  ;;  %v1379_v47 = vpop.f32.mrb[56].mxu1 }
 0x27f   : > { %v1380_v6 = vadd.f32 %v1379_v47, %v5406_v56  ;;  %v1381_v7 = vpop.f32.mrb[57].mxu1 }
 0x280   : > { %v1382_v36 = vadd.f32 %v1381_v7, %v5409_v28  ;;  %v1383_v40 = vpop.f32.mrb[58].mxu1  ;;  %1860 = vmatprep.mubr.bf16.mxu0 %v1553_v45 }
 0x281   : > { %v1384_v8 = vadd.f32 %v1383_v40, %v5406_v56  ;;  %v1385_v12 = vpop.f32.mrb[59].mxu1  ;;  %1861 = vmatmul.mubr.bf16.gmra.mrb[52].mxu0 %v1552_v44  ;;  %v1502_v46 = vmax.f32 %v1380_v6, 0.0 }
 0x282   : > { %v1386_v42 = vadd.f32 %v1385_v12, %v5409_v28  ;;  %v1503_v20 = vmax.f32 %v1382_v36, 0.0 }
 0x283   : > { %v1504_v16 = vmax.f32 %v1384_v8, 0.0 }
 0x284   : > { %v1505_v52 = vmax.f32 %v1386_v42, 0.0 }
 0x285   : > { %v1554_v32 = vpack.c.bf16 %v1504_v16, %v1502_v46 }
 0x286   : > { %v1555_v48 = vpack.c.bf16 %v1505_v52, %v1503_v20  ;;  %v1389_v49 = vpop.f32.mrb[60].mxu1 }
 0x287   : > { %v1390_v50 = vadd.f32 %v1389_v49, %v5406_v56  ;;  %v1391_v51 = vpop.f32.mrb[61].mxu1 }
 0x288   : > { %v1392_v53 = vadd.f32 %v1391_v51, %v5409_v28  ;;  %v1393_v54 = vpop.f32.mrb[62].mxu1  ;;  %1870 = vmatprep.mubr.bf16.mxu0 %v1555_v48 }
 0x289   : > { %v1394_v55 = vadd.f32 %v1393_v54, %v5406_v56  ;;  %v1395_v57 = vpop.f32.mrb[63].mxu1  ;;  %1871 = vmatmul.mubr.bf16.gmra.mrb[56].mxu0 %v1554_v32  ;;  %v1506_v59 = vmax.f32 %v1390_v50, 0.0 }
 0x28a   : > { %v1396_v58 = vadd.f32 %v1395_v57, %v5409_v28  ;;  %v1507_v61 = vmax.f32 %v1392_v53, 0.0 }
 0x28b   : > { %v1508_v60 = vmax.f32 %v1394_v55, 0.0 }
 0x28c   : > { %v1509_v62 = vmax.f32 %v1396_v58, 0.0 }
 0x28d   : > { %v1556_v63 = vpack.c.bf16 %v1508_v60, %v1506_v59 }
 0x28e   : > { %v1557_v0 = vpack.c.bf16 %v1509_v62, %v1507_v61  ;;  %v1399_v1 = vpop.f32.mrb[64].mxu1 }
 0x28f   : > { %v1400_v2 = vadd.f32 %v1399_v1, %v5406_v56  ;;  %v1401_v4 = vpop.f32.mrb[65].mxu1 }
 0x290   : > { %v1402_v9 = vadd.f32 %v1401_v4, %v5409_v28  ;;  %v1403_v10 = vpop.f32.mrb[66].mxu1  ;;  %1880 = vmatprep.mubr.bf16.mxu0 %v1557_v0 }
 0x291   : > { %v1404_v11 = vadd.f32 %v1403_v10, %v5406_v56  ;;  %v1405_v13 = vpop.f32.mrb[67].mxu1  ;;  %1881 = vmatmul.mubr.bf16.gmra.mrb[60].mxu0 %v1556_v63  ;;  %v1510_v15 = vmax.f32 %v1400_v2, 0.0 }
 0x292   : > { %v1406_v14 = vadd.f32 %v1405_v13, %v5409_v28  ;;  %v1511_v18 = vmax.f32 %v1402_v9, 0.0  ;;  %v4564_v9 = vld [vmem:[%s6026_s7 + $0xf4] ss:$8 sps:$4 sm:$0xff]  }
 0x293   : > { %v1512_v17 = vmax.f32 %v1404_v11, 0.0  ;;  %v4562_v11 = vld [vmem:[%s6026_s7 + $0xf0] ss:$8 sps:$4 sm:$0xff]   ;;  %2301 = vmatprep.subr.bf16.mxu1 %v4564_v9  ;;  %v4576_v9 = vld [vmem:[%s6028_s9 + $0x34] ss:$8 sps:$4 sm:$0xff]  }
 0x294   : > { %v1513_v19 = vmax.f32 %v1406_v14, 0.0  ;;  %2302 = vmatpush1.bf16.msra.mxu1 %v4562_v11 }
 0x295   : > { %v1558_v21 = vpack.c.bf16 %v1512_v17, %v1510_v15 }
 0x296   : > { %v1559_v22 = vpack.c.bf16 %v1513_v19, %v1511_v18  ;;  %v1409_v23 = vpop.f32.mrb[68].mxu1 }
 0x297   : > { %v1410_v24 = vadd.f32 %v1409_v23, %v5406_v56  ;;  %v1411_v25 = vpop.f32.mrb[69].mxu1 }
 0x298   : > { %v1412_v26 = vadd.f32 %v1411_v25, %v5409_v28  ;;  %v1413_v27 = vpop.f32.mrb[70].mxu1  ;;  %1890 = vmatprep.mubr.bf16.mxu0 %v1559_v22 }
 0x299   : > { %v1414_v29 = vadd.f32 %v1413_v27, %v5406_v56  ;;  %v1415_v30 = vpop.f32.mrb[71].mxu1  ;;  %1891 = vmatmul.mubr.bf16.gmra.mrb[64].mxu0 %v1558_v21  ;;  %v1514_v33 = vmax.f32 %v1410_v24, 0.0 }
 0x29a   : > { %v1416_v31 = vadd.f32 %v1415_v30, %v5409_v28  ;;  %v1515_v35 = vmax.f32 %v1412_v26, 0.0 }
 0x29b   : > { %v1516_v34 = vmax.f32 %v1414_v29, 0.0 }
 0x29c   : > { %v1517_v37 = vmax.f32 %v1416_v31, 0.0 }
 0x29d   : > { %v1560_v38 = vpack.c.bf16 %v1516_v34, %v1514_v33 }
 0x29e   : > { %v1561_v39 = vpack.c.bf16 %v1517_v37, %v1515_v35  ;;  %v1419_v41 = vpop.f32.mrb[72].mxu1 }
 0x29f   : > { %v1420_v43 = vadd.f32 %v1419_v41, %v5406_v56  ;;  %v1421_v44 = vpop.f32.mrb[73].mxu1 }
 0x2a0   : > { %v1422_v45 = vadd.f32 %v1421_v44, %v5409_v28  ;;  %v1423_v47 = vpop.f32.mrb[74].mxu1  ;;  %1900 = vmatprep.mubr.bf16.mxu0 %v1561_v39 }
 0x2a1   : > { %v1424_v6 = vadd.f32 %v1423_v47, %v5406_v56  ;;  %v1425_v7 = vpop.f32.mrb[75].mxu1  ;;  %1901 = vmatmul.mubr.bf16.gmra.mrb[68].mxu0 %v1560_v38  ;;  %v1518_v40 = vmax.f32 %v1420_v43, 0.0 }
 0x2a2   : > { %v1426_v36 = vadd.f32 %v1425_v7, %v5409_v28  ;;  %v1519_v12 = vmax.f32 %v1422_v45, 0.0 }
 0x2a3   : > { %v1520_v8 = vmax.f32 %v1424_v6, 0.0 }
 0x2a4   : > { %v1521_v42 = vmax.f32 %v1426_v36, 0.0 }
 0x2a5   : > { %v1562_v46 = vpack.c.bf16 %v1520_v8, %v1518_v40 }
 0x2a6   : > { %v1563_v16 = vpack.c.bf16 %v1521_v42, %v1519_v12  ;;  %v1429_v20 = vpop.f32.mrb[76].mxu1 }
 0x2a7   : > { %v1430_v52 = vadd.f32 %v1429_v20, %v5406_v56  ;;  %v1431_v32 = vpop.f32.mrb[77].mxu1 }
 0x2a8   : > { %v1432_v48 = vadd.f32 %v1431_v32, %v5409_v28  ;;  %v1433_v49 = vpop.f32.mrb[78].mxu1  ;;  %1910 = vmatprep.mubr.bf16.mxu0 %v1563_v16 }
 0x2a9   : > { %v1434_v50 = vadd.f32 %v1433_v49, %v5406_v56  ;;  %v1435_v51 = vpop.f32.mrb[79].mxu1  ;;  %1911 = vmatmul.mubr.bf16.gmra.mrb[72].mxu0 %v1562_v46  ;;  %v1522_v54 = vmax.f32 %v1430_v52, 0.0 }
 0x2aa   : > { %v1436_v53 = vadd.f32 %v1435_v51, %v5409_v28  ;;  %v1523_v57 = vmax.f32 %v1432_v48, 0.0 }
 0x2ab   : > { %v1524_v55 = vmax.f32 %v1434_v50, 0.0 }
 0x2ac   : > { %v1525_v58 = vmax.f32 %v1436_v53, 0.0 }
 0x2ad   : > { %v1564_v59 = vpack.c.bf16 %v1524_v55, %v1522_v54 }
 0x2ae   : > { %v1565_v60 = vpack.c.bf16 %v1525_v58, %v1523_v57  ;;  %v1439_v61 = vpop.f32.mrb[80].mxu1 }
 0x2af   : > { %v1440_v62 = vadd.f32 %v1439_v61, %v5406_v56  ;;  %v1441_v63 = vpop.f32.mrb[81].mxu1  ;;  %v1606_v61 = vld [vmem:[%s6025_s6] sm:$0x3] }
 0x2b0   : > { %v1442_v0 = vadd.f32 %v1441_v63, %v5409_v28  ;;  %v1443_v1 = vpop.f32.mrb[82].mxu1  ;;  %1920 = vmatprep.mubr.bf16.mxu0 %v1565_v60  ;;  %v4570_v60 = vld [vmem:[%s6028_s9 + $0x14] ss:$8 sps:$4 sm:$0xff]   ;;  %v4573_v63 = vld [vmem:[%s6028_s9 + $0x24] ss:$8 sps:$4 sm:$0xff]  }
 0x2b1   : > { %v1444_v2 = vadd.f32 %v1443_v1, %v5406_v56  ;;  %v1445_v4 = vpop.f32.mrb[83].mxu1  ;;  %1921 = vmatmul.mubr.bf16.gmra.mrb[76].mxu0 %v1564_v59  ;;  %v1526_v13 = vmax.f32 %v1440_v62, 0.0  ;;  %v4565_v59 = vld [vmem:[%s6028_s9] ss:$8 sps:$4 sm:$0xff]   ;;  %v5578_v1 = vrot.slane %v1606_v61, %v5180_v5 }
 0x2b2   : > { %v1446_v10 = vadd.f32 %v1445_v4, %v5409_v28  ;;  %v1527_v15 = vmax.f32 %v1442_v0, 0.0  ;;  %v4571_v62 = vld [vmem:[%s6028_s9 + $0x20] ss:$8 sps:$4 sm:$0xff]   ;;  %v5575_v0 = vrot.slane %v1606_v61, %v5178_v3  ;;  %v4574_v4 = vld [vmem:[%s6028_s9 + $0x30] ss:$8 sps:$4 sm:$0xff]  }
 0x2b3   : > { %v1528_v14 = vmax.f32 %v1444_v2, 0.0  ;;  %v4597_v61 = vld [vmem:[%s6028_s9 + $0xa4] ss:$8 sps:$4 sm:$0xff]  }
 0x2b4   : > { %v1529_v17 = vmax.f32 %v1446_v10, 0.0 }
 0x2b5   : > { %v1566_v18 = vpack.c.bf16 %v1528_v14, %v1526_v13 }
 0x2b6   : > { %v1567_v19 = vpack.c.bf16 %v1529_v17, %v1527_v15  ;;  %v1449_v21 = vpop.f32.mrb[84].mxu1 }
 0x2b7   : > { %v1450_v22 = vadd.f32 %v1449_v21, %v5406_v56  ;;  %v1451_v23 = vpop.f32.mrb[85].mxu1 }
 0x2b8   : > { %v1452_v24 = vadd.f32 %v1451_v23, %v5409_v28  ;;  %v1453_v25 = vpop.f32.mrb[86].mxu1  ;;  %1930 = vmatprep.mubr.bf16.mxu0 %v1567_v19  ;;  %v4579_v19 = vld [vmem:[%s6028_s9 + $0x44] ss:$8 sps:$4 sm:$0xff]  }
 0x2b9   : > { %v1454_v26 = vadd.f32 %v1453_v25, %v5406_v56  ;;  %v1455_v27 = vpop.f32.mrb[87].mxu1  ;;  %1931 = vmatmul.mubr.bf16.gmra.mrb[80].mxu0 %v1566_v18  ;;  %v1530_v30 = vmax.f32 %v1450_v22, 0.0  ;;  %v4577_v18 = vld [vmem:[%s6028_s9 + $0x40] ss:$8 sps:$4 sm:$0xff]   ;;  %v4582_v22 = vld [vmem:[%s6028_s9 + $0x54] ss:$8 sps:$4 sm:$0xff]  }
 0x2ba   : > { %v1456_v29 = vadd.f32 %v1455_v27, %v5409_v28  ;;  %v1531_v33 = vmax.f32 %v1452_v24, 0.0 }
 0x2bb   : > { %v1532_v31 = vmax.f32 %v1454_v26, 0.0 }
 0x2bc   : > { %v1533_v34 = vmax.f32 %v1456_v29, 0.0  ;;  %v4580_v29 = vld [vmem:[%s6028_s9 + $0x50] ss:$8 sps:$4 sm:$0xff]  }
 0x2bd   : > { %v1568_v35 = vpack.c.bf16 %v1532_v31, %v1530_v30 }
 0x2be   : > { %v1569_v37 = vpack.c.bf16 %v1533_v34, %v1531_v33  ;;  %v1459_v38 = vpop.f32.mrb[88].mxu1  ;;  %v4585_v33 = vld [vmem:[%s6028_s9 + $0x64] ss:$8 sps:$4 sm:$0xff]  }
 0x2bf   : > { %v1460_v39 = vadd.f32 %v1459_v38, %v5406_v56  ;;  %v1461_v41 = vpop.f32.mrb[89].mxu1 }
 0x2c0   : > { %v1462_v43 = vadd.f32 %v1461_v41, %v5409_v28  ;;  %v1463_v44 = vpop.f32.mrb[90].mxu1  ;;  %1940 = vmatprep.mubr.bf16.mxu0 %v1569_v37 }
 0x2c1   : > { %v1464_v45 = vadd.f32 %v1463_v44, %v5406_v56  ;;  %v1465_v47 = vpop.f32.mrb[91].mxu1  ;;  %1941 = vmatmul.mubr.bf16.gmra.mrb[84].mxu0 %v1568_v35  ;;  %v1534_v7 = vmax.f32 %v1460_v39, 0.0 }
 0x2c2   : > { %v1466_v6 = vadd.f32 %v1465_v47, %v5409_v28  ;;  %v1535_v40 = vmax.f32 %v1462_v43, 0.0  ;;  %v4583_v43 = vld [vmem:[%s6028_s9 + $0x60] ss:$8 sps:$4 sm:$0xff]  }
 0x2c3   : > { %v1536_v36 = vmax.f32 %v1464_v45, 0.0  ;;  %v4588_v45 = vld [vmem:[%s6028_s9 + $0x74] ss:$8 sps:$4 sm:$0xff]  }
 0x2c4   : > { %v1537_v8 = vmax.f32 %v1466_v6, 0.0 }
 0x2c5   : > { %v1570_v12 = vpack.c.bf16 %v1536_v36, %v1534_v7 }
 0x2c6   : > { %v1571_v42 = vpack.c.bf16 %v1537_v8, %v1535_v40  ;;  %v1469_v46 = vpop.f32.mrb[92].mxu1  ;;  %v4586_v8 = vld [vmem:[%s6028_s9 + $0x70] ss:$8 sps:$4 sm:$0xff]  }
 0x2c7   : > { %v1470_v16 = vadd.f32 %v1469_v46, %v5406_v56  ;;  %v1471_v20 = vpop.f32.mrb[93].mxu1  ;;  %v4591_v46 = vld [vmem:[%s6028_s9 + $0x84] ss:$8 sps:$4 sm:$0xff]  }
 0x2c8   : > { %v1472_v52 = vadd.f32 %v1471_v20, %v5409_v28  ;;  %v1473_v32 = vpop.f32.mrb[94].mxu1  ;;  %1950 = vmatprep.mubr.bf16.mxu0 %v1571_v42 }
 0x2c9   : > { %v1474_v48 = vadd.f32 %v1473_v32, %v5406_v56  ;;  %v1475_v49 = vpop.f32.mrb[95].mxu1  ;;  %1951 = vmatmul.mubr.bf16.gmra.mrb[88].mxu0 %v1570_v12  ;;  %v1538_v51 = vmax.f32 %v1470_v16, 0.0  ;;  %v4567_v56 = vld [vmem:[%s6028_s9 + $0x4] ss:$8 sps:$4 sm:$0xff]  }
 0x2ca   : > { %v1476_v50 = vadd.f32 %v1475_v49, %v5409_v28  ;;  %v1539_v54 = vmax.f32 %v1472_v52, 0.0  ;;  %2764 = vmatprep.subr.bf16.mxu0 %v4567_v56  ;;  %v4568_v28 = vld [vmem:[%s6028_s9 + $0x10] ss:$8 sps:$4 sm:$0xff]  }
 0x2cb   : > { %v1540_v53 = vmax.f32 %v1474_v48, 0.0  ;;  %2765 = vmatpush1.bf16.msra.mxu0 %v4565_v59  ;;  %v4592_v56 = vld [vmem:[%s6028_s9 + $0x90] ss:$8 sps:$4 sm:$0xff]  }
 0x2cc   : > { %v1541_v55 = vmax.f32 %v1476_v50, 0.0  ;;  %2766 = vmatprep.subr.bf16.mxu0 %v4570_v60  ;;  %v4589_v50 = vld [vmem:[%s6028_s9 + $0x80] ss:$8 sps:$4 sm:$0xff]  }
 0x2cd   : > { %v1572_v57 = vpack.c.bf16 %v1540_v53, %v1538_v51  ;;  %v4594_v53 = vld [vmem:[%s6028_s9 + $0x94] ss:$8 sps:$4 sm:$0xff]  }
 0x2ce   : > { %v1573_v58 = vpack.c.bf16 %v1541_v55, %v1539_v54 }
 0x2cf   : > { %2767 = vmatpush1.bf16.msra.mxu0 %v4568_v28 }
 0x2d0   : > { %1960 = vmatprep.mubr.bf16.mxu0 %v1573_v58  ;;  %2768 = vmatprep.subr.bf16.mxu0 %v4573_v63 }
 0x2d1   : > { %1961 = vmatmul.mubr.bf16.gmra.mrb[92].mxu0 %v1572_v57 }
 0x2d3   : > { %2769 = vmatpush1.bf16.msra.mxu0 %v4571_v62 }
 0x2d4   : > { %2770 = vmatprep.subr.bf16.mxu0 %v4576_v9 }
 0x2d7   : > { %2771 = vmatpush1.bf16.msra.mxu0 %v4574_v4 }
 0x2d8   : > { %2772 = vmatprep.subr.bf16.mxu0 %v4579_v19 }
 0x2db   : > { %2773 = vmatpush1.bf16.msra.mxu0 %v4577_v18 }
 0x2dc   : > { %2774 = vmatprep.subr.bf16.mxu0 %v4582_v22  ;;  %v4598_v22 = vld [vmem:[%s6028_s9 + $0xb0] ss:$8 sps:$4 sm:$0xff]  }
 0x2df   : > { %2775 = vmatpush1.bf16.msra.mxu0 %v4580_v29 }
 0x2e0   : > { %2776 = vmatprep.subr.bf16.mxu0 %v4585_v33 }
 0x2e3   : > { %2777 = vmatpush1.bf16.msra.mxu0 %v4583_v43 }
 0x2e4   : > { %2778 = vmatprep.subr.bf16.mxu0 %v4588_v45  ;;  %v4604_v45 = vld [vmem:[%s6028_s9 + $0xd0] ss:$8 sps:$4 sm:$0xff]  }
 0x2e7   : > { %2779 = vmatpush1.bf16.msra.mxu0 %v4586_v8 }
 0x2e8   : > { %2780 = vmatprep.subr.bf16.mxu0 %v4591_v46 }
 0x2eb   : > { %2781 = vmatpush1.bf16.msra.mxu0 %v4589_v50 }
 0x2ec   : > { %2782 = vmatprep.subr.bf16.mxu0 %v4594_v53 }
 0x2ef   : > { %2783 = vmatpush1.bf16.msra.mxu0 %v4592_v56 }
 0x2f0   : > { %2784 = vmatprep.subr.bf16.mxu0 %v4597_v61 }
 0x32c   : > { %v1812_v2 = vpop.f32.mrb[32].mxu0 }
 0x32d   : > { %v1813_v10 = vadd.f32 %v1812_v2, %v5575_v0  ;;  %v1814_v11 = vpop.f32.mrb[33].mxu0 }
 0x32e   : > { %v1815_v13 = vadd.f32 %v1814_v11, %v5578_v1  ;;  %v1816_v14 = vpop.f32.mrb[34].mxu0  ;;  %v4595_v11 = vld [vmem:[%s6028_s9 + $0xa0] ss:$8 sps:$4 sm:$0xff]  }
 0x32f   : > { %v1817_v15 = vadd.f32 %v1816_v14, %v5575_v0  ;;  %v1818_v17 = vpop.f32.mrb[35].mxu0  ;;  %v1971_v23 = vmax.f32 %v1813_v10, 0.0  ;;  %v4600_v14 = vld [vmem:[%s6028_s9 + $0xb4] ss:$8 sps:$4 sm:$0xff]   ;;  %2785 = vmatpush1.bf16.msra.mxu0 %v4595_v11 }
 0x330   : > { %v1819_v21 = vadd.f32 %v1818_v17, %v5578_v1  ;;  %v1972_v25 = vmax.f32 %v1815_v13, 0.0  ;;  %2786 = vmatprep.subr.bf16.mxu0 %v4600_v14 }
 0x331   : > { %v1973_v24 = vmax.f32 %v1817_v15, 0.0 }
 0x332   : > { %v1974_v26 = vmax.f32 %v1819_v21, 0.0 }
 0x333   : > { %v2035_v27 = vpack.c.bf16 %v1973_v24, %v1971_v23  ;;  %2787 = vmatpush1.bf16.msra.mxu0 %v4598_v22 }
 0x334   : > { %v2036_v30 = vpack.c.bf16 %v1974_v26, %v1972_v25  ;;  %v1822_v31 = vpop.f32.mrb[36].mxu0  ;;  %v4603_v25 = vld [vmem:[%s6028_s9 + $0xc4] ss:$8 sps:$4 sm:$0xff]  }
 0x335   : > { %v1823_v34 = vadd.f32 %v1822_v31, %v5575_v0  ;;  %v1824_v35 = vpop.f32.mrb[37].mxu0  ;;  %2788 = vmatprep.subr.bf16.mxu0 %v4603_v25 }
 0x336   : > { %v1825_v37 = vadd.f32 %v1824_v35, %v5578_v1  ;;  %v1826_v38 = vpop.f32.mrb[38].mxu0  ;;  %2303 = vmatprep.mubr.bf16.mxu1 %v2036_v30 }
 0x337   : > { %v1827_v39 = vadd.f32 %v1826_v38, %v5575_v0  ;;  %v1828_v41 = vpop.f32.mrb[39].mxu0  ;;  %2304 = vmatmul.mubr.bf16.vlgmr.msra.gmra.mrb[96].mxu1 %v2035_v27  ;;  %v1975_v47 = vmax.f32 %v1823_v34, 0.0  ;;  %v4601_v34 = vld [vmem:[%s6028_s9 + $0xc0] ss:$8 sps:$4 sm:$0xff]  }
 0x338   : > { %v1829_v44 = vadd.f32 %v1828_v41, %v5578_v1  ;;  %v1976_v7 = vmax.f32 %v1825_v37, 0.0  ;;  %v4606_v37 = vld [vmem:[%s6028_s9 + $0xd4] ss:$8 sps:$4 sm:$0xff]   ;;  %2789 = vmatpush1.bf16.msra.mxu0 %v4601_v34 }
 0x339   : > { %v1977_v6 = vmax.f32 %v1827_v39, 0.0  ;;  %2790 = vmatprep.subr.bf16.mxu0 %v4606_v37 }
 0x33a   : > { %v1978_v36 = vmax.f32 %v1829_v44, 0.0 }
 0x33b   : > { %v2037_v40 = vpack.c.bf16 %v1977_v6, %v1975_v47 }
 0x33c   : > { %v2038_v12 = vpack.c.bf16 %v1978_v36, %v1976_v7  ;;  %v1832_v42 = vpop.f32.mrb[40].mxu0  ;;  %v4609_v7 = vld [vmem:[%s6028_s9 + $0xe4] ss:$8 sps:$4 sm:$0xff]   ;;  %2791 = vmatpush1.bf16.msra.mxu0 %v4604_v45 }
 0x33d   : > { %v1833_v16 = vadd.f32 %v1832_v42, %v5575_v0  ;;  %v1834_v20 = vpop.f32.mrb[41].mxu0  ;;  %2792 = vmatprep.subr.bf16.mxu0 %v4609_v7 }
 0x33e   : > { %v1835_v52 = vadd.f32 %v1834_v20, %v5578_v1  ;;  %v1836_v32 = vpop.f32.mrb[42].mxu0  ;;  %2313 = vmatprep.mubr.bf16.mxu1 %v2038_v12 }
 0x33f   : > { %v1837_v48 = vadd.f32 %v1836_v32, %v5575_v0  ;;  %v1838_v49 = vpop.f32.mrb[43].mxu0  ;;  %2314 = vmatmul.mubr.bf16.gmra.mrb[100].mxu1 %v2037_v40  ;;  %v1979_v54 = vmax.f32 %v1833_v16, 0.0  ;;  %v4607_v16 = vld [vmem:[%s6028_s9 + $0xe0] ss:$8 sps:$4 sm:$0xff]  }
 0x340   : > { %v1839_v51 = vadd.f32 %v1838_v49, %v5578_v1  ;;  %v1980_v57 = vmax.f32 %v1835_v52, 0.0  ;;  %2793 = vmatpush1.bf16.msra.mxu0 %v4607_v16 }
 0x341   : > { %v1981_v55 = vmax.f32 %v1837_v48, 0.0 }
 0x342   : > { %v1982_v58 = vmax.f32 %v1839_v51, 0.0 }
 0x343   : > { %v2039_v59 = vpack.c.bf16 %v1981_v55, %v1979_v54 }
 0x344   : > { %v2040_v28 = vpack.c.bf16 %v1982_v58, %v1980_v57  ;;  %v1842_v60 = vpop.f32.mrb[44].mxu0 }
 0x345   : > { %v1843_v62 = vadd.f32 %v1842_v60, %v5575_v0  ;;  %v1844_v63 = vpop.f32.mrb[45].mxu0 }
 0x346   : > { %v1845_v2 = vadd.f32 %v1844_v63, %v5578_v1  ;;  %v1846_v4 = vpop.f32.mrb[46].mxu0  ;;  %2323 = vmatprep.mubr.bf16.mxu1 %v2040_v28 }
 0x347   : > { %v1847_v9 = vadd.f32 %v1846_v4, %v5575_v0  ;;  %v1848_v10 = vpop.f32.mrb[47].mxu0  ;;  %2324 = vmatmul.mubr.bf16.gmra.mrb[104].mxu1 %v2039_v59  ;;  %v1983_v15 = vmax.f32 %v1843_v62, 0.0 }
 0x348   : > { %v1849_v13 = vadd.f32 %v1848_v10, %v5578_v1  ;;  %v1984_v18 = vmax.f32 %v1845_v2, 0.0 }
 0x349   : > { %v1985_v17 = vmax.f32 %v1847_v9, 0.0 }
 0x34a   : > { %v1986_v19 = vmax.f32 %v1849_v13, 0.0 }
 0x34b   : > { %v2041_v21 = vpack.c.bf16 %v1985_v17, %v1983_v15 }
 0x34c   : > { %v2042_v23 = vpack.c.bf16 %v1986_v19, %v1984_v18  ;;  %v1852_v24 = vpop.f32.mrb[48].mxu0 }
 0x34d   : > { %v1853_v26 = vadd.f32 %v1852_v24, %v5575_v0  ;;  %v1854_v27 = vpop.f32.mrb[49].mxu0 }
 0x34e   : > { %v1855_v29 = vadd.f32 %v1854_v27, %v5578_v1  ;;  %v1856_v30 = vpop.f32.mrb[50].mxu0  ;;  %2333 = vmatprep.mubr.bf16.mxu1 %v2042_v23 }
 0x34f   : > { %v1857_v31 = vadd.f32 %v1856_v30, %v5575_v0  ;;  %v1858_v33 = vpop.f32.mrb[51].mxu0  ;;  %2334 = vmatmul.mubr.bf16.gmra.mrb[108].mxu1 %v2041_v21  ;;  %v1987_v38 = vmax.f32 %v1853_v26, 0.0 }
 0x350   : > { %v1859_v35 = vadd.f32 %v1858_v33, %v5578_v1  ;;  %v1988_v41 = vmax.f32 %v1855_v29, 0.0 }
 0x351   : > { %v1989_v39 = vmax.f32 %v1857_v31, 0.0 }
 0x352   : > { %v1990_v43 = vmax.f32 %v1859_v35, 0.0 }
 0x353   : > { %v2043_v44 = vpack.c.bf16 %v1989_v39, %v1987_v38 }
 0x354   : > { %v2044_v47 = vpack.c.bf16 %v1990_v43, %v1988_v41  ;;  %v1862_v6 = vpop.f32.mrb[52].mxu0 }
 0x355   : > { %v1863_v36 = vadd.f32 %v1862_v6, %v5575_v0  ;;  %v1864_v40 = vpop.f32.mrb[53].mxu0 }
 0x356   : > { %v1865_v8 = vadd.f32 %v1864_v40, %v5578_v1  ;;  %v1866_v12 = vpop.f32.mrb[54].mxu0  ;;  %2343 = vmatprep.mubr.bf16.mxu1 %v2044_v47 }
 0x357   : > { %v1867_v42 = vadd.f32 %v1866_v12, %v5575_v0  ;;  %v1868_v46 = vpop.f32.mrb[55].mxu0  ;;  %2344 = vmatmul.mubr.bf16.gmra.mrb[112].mxu1 %v2043_v44  ;;  %v1991_v52 = vmax.f32 %v1863_v36, 0.0 }
 0x358   : > { %v1869_v20 = vadd.f32 %v1868_v46, %v5578_v1  ;;  %v1992_v48 = vmax.f32 %v1865_v8, 0.0 }
 0x359   : > { %v1993_v32 = vmax.f32 %v1867_v42, 0.0 }
 0x35a   : > { %v1994_v49 = vmax.f32 %v1869_v20, 0.0 }
 0x35b   : > { %v2045_v50 = vpack.c.bf16 %v1993_v32, %v1991_v52 }
 0x35c   : > { %v2046_v51 = vpack.c.bf16 %v1994_v49, %v1992_v48  ;;  %v1872_v53 = vpop.f32.mrb[56].mxu0 }
 0x35d   : > { %v1873_v54 = vadd.f32 %v1872_v53, %v5575_v0  ;;  %v1874_v55 = vpop.f32.mrb[57].mxu0 }
 0x35e   : > { %v1875_v57 = vadd.f32 %v1874_v55, %v5578_v1  ;;  %v1876_v58 = vpop.f32.mrb[58].mxu0  ;;  %2353 = vmatprep.mubr.bf16.mxu1 %v2046_v51 }
 0x35f   : > { %v1877_v59 = vadd.f32 %v1876_v58, %v5575_v0  ;;  %v1878_v56 = vpop.f32.mrb[59].mxu0  ;;  %2354 = vmatmul.mubr.bf16.gmra.mrb[116].mxu1 %v2045_v50  ;;  %v1995_v60 = vmax.f32 %v1873_v54, 0.0 }
 0x360   : > { %v1879_v28 = vadd.f32 %v1878_v56, %v5578_v1  ;;  %v1996_v62 = vmax.f32 %v1875_v57, 0.0 }
 0x361   : > { %v1997_v61 = vmax.f32 %v1877_v59, 0.0 }
 0x362   : > { %v1998_v63 = vmax.f32 %v1879_v28, 0.0 }
 0x363   : > { %v2047_v2 = vpack.c.bf16 %v1997_v61, %v1995_v60 }
 0x364   : > { %v2048_v4 = vpack.c.bf16 %v1998_v63, %v1996_v62  ;;  %v1882_v9 = vpop.f32.mrb[60].mxu0 }
 0x365   : > { %v1883_v10 = vadd.f32 %v1882_v9, %v5575_v0  ;;  %v1884_v11 = vpop.f32.mrb[61].mxu0 }
 0x366   : > { %v1885_v13 = vadd.f32 %v1884_v11, %v5578_v1  ;;  %v1886_v14 = vpop.f32.mrb[62].mxu0  ;;  %2363 = vmatprep.mubr.bf16.mxu1 %v2048_v4 }
 0x367   : > { %v1887_v15 = vadd.f32 %v1886_v14, %v5575_v0  ;;  %v1888_v17 = vpop.f32.mrb[63].mxu0  ;;  %2364 = vmatmul.mubr.bf16.gmra.mrb[120].mxu1 %v2047_v2  ;;  %v1999_v19 = vmax.f32 %v1883_v10, 0.0 }
 0x368   : > { %v1889_v18 = vadd.f32 %v1888_v17, %v5578_v1  ;;  %v2000_v22 = vmax.f32 %v1885_v13, 0.0 }
 0x369   : > { %v2001_v21 = vmax.f32 %v1887_v15, 0.0 }
 0x36a   : > { %v2002_v23 = vmax.f32 %v1889_v18, 0.0 }
 0x36b   : > { %v2049_v24 = vpack.c.bf16 %v2001_v21, %v1999_v19 }
 0x36c   : > { %v2050_v25 = vpack.c.bf16 %v2002_v23, %v2000_v22  ;;  %v1892_v26 = vpop.f32.mrb[64].mxu0 }
 0x36d   : > { %v1893_v27 = vadd.f32 %v1892_v26, %v5575_v0  ;;  %v1894_v29 = vpop.f32.mrb[65].mxu0 }
 0x36e   : > { %v1895_v30 = vadd.f32 %v1894_v29, %v5578_v1  ;;  %v1896_v31 = vpop.f32.mrb[66].mxu0  ;;  %2373 = vmatprep.mubr.bf16.mxu1 %v2050_v25 }
 0x36f   : > { %v1897_v33 = vadd.f32 %v1896_v31, %v5575_v0  ;;  %v1898_v34 = vpop.f32.mrb[67].mxu0  ;;  %2374 = vmatmul.mubr.bf16.gmra.mrb[124].mxu1 %v2049_v24  ;;  %v2003_v37 = vmax.f32 %v1893_v27, 0.0 }
 0x370   : > { %v1899_v35 = vadd.f32 %v1898_v34, %v5578_v1  ;;  %v2004_v39 = vmax.f32 %v1895_v30, 0.0  ;;  %v4612_v30 = vld [vmem:[%s6028_s9 + $0xf4] ss:$8 sps:$4 sm:$0xff]  }
 0x371   : > { %v2005_v38 = vmax.f32 %v1897_v33, 0.0  ;;  %v4610_v33 = vld [vmem:[%s6028_s9 + $0xf0] ss:$8 sps:$4 sm:$0xff]   ;;  %2794 = vmatprep.subr.bf16.mxu0 %v4612_v30 }
 0x372   : > { %v2006_v41 = vmax.f32 %v1899_v35, 0.0  ;;  %2795 = vmatpush1.bf16.msra.mxu0 %v4610_v33  ;;  %v4624_v30 = vld [vmem:[#allocation6 + $0x34] ss:$8 sps:$4 sm:$0xff]  }
 0x373   : > { %v2051_v43 = vpack.c.bf16 %v2005_v38, %v2003_v37 }
 0x374   : > { %v2052_v44 = vpack.c.bf16 %v2006_v41, %v2004_v39  ;;  %v1902_v45 = vpop.f32.mrb[68].mxu0 }
 0x375   : > { %v1903_v47 = vadd.f32 %v1902_v45, %v5575_v0  ;;  %v1904_v6 = vpop.f32.mrb[69].mxu0 }
 0x376   : > { %v1905_v7 = vadd.f32 %v1904_v6, %v5578_v1  ;;  %v1906_v36 = vpop.f32.mrb[70].mxu0  ;;  %2383 = vmatprep.mubr.bf16.mxu1 %v2052_v44 }
 0x377   : > { %v1907_v40 = vadd.f32 %v1906_v36, %v5575_v0  ;;  %v1908_v8 = vpop.f32.mrb[71].mxu0  ;;  %2384 = vmatmul.mubr.bf16.gmra.mrb[128].mxu1 %v2051_v43  ;;  %v2007_v42 = vmax.f32 %v1903_v47, 0.0 }
 0x378   : > { %v1909_v12 = vadd.f32 %v1908_v8, %v5578_v1  ;;  %v2008_v16 = vmax.f32 %v1905_v7, 0.0 }
 0x379   : > { %v2009_v46 = vmax.f32 %v1907_v40, 0.0 }
 0x37a   : > { %v2010_v20 = vmax.f32 %v1909_v12, 0.0 }
 0x37b   : > { %v2053_v52 = vpack.c.bf16 %v2009_v46, %v2007_v42 }
 0x37c   : > { %v2054_v32 = vpack.c.bf16 %v2010_v20, %v2008_v16  ;;  %v1912_v48 = vpop.f32.mrb[72].mxu0 }
 0x37d   : > { %v1913_v49 = vadd.f32 %v1912_v48, %v5575_v0  ;;  %v1914_v50 = vpop.f32.mrb[73].mxu0 }
 0x37e   : > { %v1915_v51 = vadd.f32 %v1914_v50, %v5578_v1  ;;  %v1916_v53 = vpop.f32.mrb[74].mxu0  ;;  %2393 = vmatprep.mubr.bf16.mxu1 %v2054_v32 }
 0x37f   : > { %v1917_v54 = vadd.f32 %v1916_v53, %v5575_v0  ;;  %v1918_v55 = vpop.f32.mrb[75].mxu0  ;;  %2394 = vmatmul.mubr.bf16.gmra.mrb[132].mxu1 %v2053_v52  ;;  %v2011_v58 = vmax.f32 %v1913_v49, 0.0 }
 0x380   : > { %v1919_v57 = vadd.f32 %v1918_v55, %v5578_v1  ;;  %v2012_v56 = vmax.f32 %v1915_v51, 0.0 }
 0x381   : > { %v2013_v59 = vmax.f32 %v1917_v54, 0.0 }
 0x382   : > { %v2014_v28 = vmax.f32 %v1919_v57, 0.0 }
 0x383   : > { %v2055_v60 = vpack.c.bf16 %v2013_v59, %v2011_v58 }
 0x384   : > { %v2056_v61 = vpack.c.bf16 %v2014_v28, %v2012_v56  ;;  %v1922_v62 = vpop.f32.mrb[76].mxu0 }
 0x385   : > { %v1923_v63 = vadd.f32 %v1922_v62, %v5575_v0  ;;  %v1924_v2 = vpop.f32.mrb[77].mxu0 }
 0x386   : > { %v1925_v4 = vadd.f32 %v1924_v2, %v5578_v1  ;;  %v1926_v9 = vpop.f32.mrb[78].mxu0  ;;  %2403 = vmatprep.mubr.bf16.mxu1 %v2056_v61 }
 0x387   : > { %v1927_v10 = vadd.f32 %v1926_v9, %v5575_v0  ;;  %v1928_v11 = vpop.f32.mrb[79].mxu0  ;;  %2404 = vmatmul.mubr.bf16.gmra.mrb[136].mxu1 %v2055_v60  ;;  %v2015_v14 = vmax.f32 %v1923_v63, 0.0 }
 0x388   : > { %v1929_v13 = vadd.f32 %v1928_v11, %v5578_v1  ;;  %v2016_v17 = vmax.f32 %v1925_v4, 0.0 }
 0x389   : > { %v2017_v15 = vmax.f32 %v1927_v10, 0.0 }
 0x38a   : > { %v2018_v18 = vmax.f32 %v1929_v13, 0.0 }
 0x38b   : > { %v2057_v19 = vpack.c.bf16 %v2017_v15, %v2015_v14 }
 0x38c   : > { %v2058_v21 = vpack.c.bf16 %v2018_v18, %v2016_v17  ;;  %v1932_v22 = vpop.f32.mrb[80].mxu0 }
 0x38d   : > { %v1933_v23 = vadd.f32 %v1932_v22, %v5575_v0  ;;  %v1934_v24 = vpop.f32.mrb[81].mxu0  ;;  %v4616_v22 = vld [vmem:[#allocation6 + $0x10] ss:$8 sps:$4 sm:$0xff]  }
 0x38e   : > { %v1935_v25 = vadd.f32 %v1934_v24, %v5578_v1  ;;  %v1936_v26 = vpop.f32.mrb[82].mxu0  ;;  %2413 = vmatprep.mubr.bf16.mxu1 %v2058_v21  ;;  %v4615_v21 = vld [vmem:[#allocation6 + $0x4] ss:$8 sps:$4 sm:$0xff]  }
 0x38f   : > { %v1937_v27 = vadd.f32 %v1936_v26, %v5575_v0  ;;  %v1938_v29 = vpop.f32.mrb[83].mxu0  ;;  %2414 = vmatmul.mubr.bf16.gmra.mrb[140].mxu1 %v2057_v19  ;;  %v2019_v34 = vmax.f32 %v1933_v23, 0.0  ;;  %v4613_v19 = vld [vmem:[#allocation6] ss:$8 sps:$4 sm:$0xff]   ;;  %3257 = vmatprep.subr.bf16.mxu1 %v4615_v21  ;;  %v4618_v23 = vld [vmem:[#allocation6 + $0x14] ss:$8 sps:$4 sm:$0xff]  }
 0x390   : > { %v1939_v31 = vadd.f32 %v1938_v29, %v5578_v1  ;;  %v2020_v37 = vmax.f32 %v1935_v25, 0.0  ;;  %3258 = vmatpush1.bf16.msra.mxu1 %v4613_v19  ;;  %v4621_v24 = vld [vmem:[#allocation6 + $0x24] ss:$8 sps:$4 sm:$0xff]   ;;  %v4622_v29 = vld [vmem:[#allocation6 + $0x30] ss:$8 sps:$4 sm:$0xff]  }
 0x391   : > { %v2021_v35 = vmax.f32 %v1937_v27, 0.0  ;;  %3259 = vmatprep.subr.bf16.mxu1 %v4618_v23  ;;  %v4640_v21 = vld [vmem:[#allocation6 + $0x90] ss:$8 sps:$4 sm:$0xff]  }
 0x392   : > { %v2022_v38 = vmax.f32 %v1939_v31, 0.0 }
 0x393   : > { %v2059_v39 = vpack.c.bf16 %v2021_v35, %v2019_v34 }
 0x394   : > { %v2060_v41 = vpack.c.bf16 %v2022_v38, %v2020_v37  ;;  %v1942_v43 = vpop.f32.mrb[84].mxu0  ;;  %3260 = vmatpush1.bf16.msra.mxu1 %v4616_v22 }
 0x395   : > { %v1943_v44 = vadd.f32 %v1942_v43, %v5575_v0  ;;  %v1944_v45 = vpop.f32.mrb[85].mxu0  ;;  %3261 = vmatprep.subr.bf16.mxu1 %v4621_v24 }
 0x396   : > { %v1945_v47 = vadd.f32 %v1944_v45, %v5578_v1  ;;  %v1946_v6 = vpop.f32.mrb[86].mxu0  ;;  %2423 = vmatprep.mubr.bf16.mxu1 %v2060_v41  ;;  %v4627_v41 = vld [vmem:[#allocation6 + $0x44] ss:$8 sps:$4 sm:$0xff]  }
 0x397   : > { %v1947_v7 = vadd.f32 %v1946_v6, %v5575_v0  ;;  %v1948_v36 = vpop.f32.mrb[87].mxu0  ;;  %2424 = vmatmul.mubr.bf16.gmra.mrb[144].mxu1 %v2059_v39  ;;  %v2023_v8 = vmax.f32 %v1943_v44, 0.0  ;;  %v4625_v39 = vld [vmem:[#allocation6 + $0x40] ss:$8 sps:$4 sm:$0xff]   ;;  %v4630_v44 = vld [vmem:[#allocation6 + $0x54] ss:$8 sps:$4 sm:$0xff]  }
 0x398   : > { %v1949_v40 = vadd.f32 %v1948_v36, %v5578_v1  ;;  %v2024_v42 = vmax.f32 %v1945_v47, 0.0 }
 0x399   : > { %v2025_v12 = vmax.f32 %v1947_v7, 0.0 }
 0x39a   : > { %v2026_v46 = vmax.f32 %v1949_v40, 0.0  ;;  %v4628_v40 = vld [vmem:[#allocation6 + $0x50] ss:$8 sps:$4 sm:$0xff]  }
 0x39b   : > { %v2061_v16 = vpack.c.bf16 %v2025_v12, %v2023_v8 }
 0x39c   : > { %v2062_v20 = vpack.c.bf16 %v2026_v46, %v2024_v42  ;;  %v1952_v52 = vpop.f32.mrb[88].mxu0  ;;  %v4633_v42 = vld [vmem:[#allocation6 + $0x64] ss:$8 sps:$4 sm:$0xff]  }
 0x39d   : > { %v1953_v32 = vadd.f32 %v1952_v52, %v5575_v0  ;;  %v1954_v48 = vpop.f32.mrb[89].mxu0 }
 0x39e   : > { %v1955_v49 = vadd.f32 %v1954_v48, %v5578_v1  ;;  %v1956_v50 = vpop.f32.mrb[90].mxu0  ;;  %2433 = vmatprep.mubr.bf16.mxu1 %v2062_v20 }
 0x39f   : > { %v1957_v51 = vadd.f32 %v1956_v50, %v5575_v0  ;;  %v1958_v53 = vpop.f32.mrb[91].mxu0  ;;  %2434 = vmatmul.mubr.bf16.gmra.mrb[148].mxu1 %v2061_v16  ;;  %v2027_v55 = vmax.f32 %v1953_v32, 0.0 }
 0x3a0   : > { %v1959_v54 = vadd.f32 %v1958_v53, %v5578_v1  ;;  %v2028_v58 = vmax.f32 %v1955_v49, 0.0  ;;  %v4631_v49 = vld [vmem:[#allocation6 + $0x60] ss:$8 sps:$4 sm:$0xff]  }
 0x3a1   : > { %v2029_v57 = vmax.f32 %v1957_v51, 0.0  ;;  %v4636_v51 = vld [vmem:[#allocation6 + $0x74] ss:$8 sps:$4 sm:$0xff]  }
 0x3a2   : > { %v2030_v59 = vmax.f32 %v1959_v54, 0.0 }
 0x3a3   : > { %v2063_v56 = vpack.c.bf16 %v2029_v57, %v2027_v55 }
 0x3a4   : > { %v2064_v28 = vpack.c.bf16 %v2030_v59, %v2028_v58  ;;  %v1962_v60 = vpop.f32.mrb[92].mxu0  ;;  %v4634_v59 = vld [vmem:[#allocation6 + $0x70] ss:$8 sps:$4 sm:$0xff]  }
 0x3a5   : > { %v1963_v61 = vadd.f32 %v1962_v60, %v5575_v0  ;;  %v1964_v62 = vpop.f32.mrb[93].mxu0  ;;  %v4639_v60 = vld [vmem:[#allocation6 + $0x84] ss:$8 sps:$4 sm:$0xff]  }
 0x3a6   : > { %v1965_v63 = vadd.f32 %v1964_v62, %v5578_v1  ;;  %v1966_v2 = vpop.f32.mrb[94].mxu0  ;;  %2443 = vmatprep.mubr.bf16.mxu1 %v2064_v28 }
 0x3a7   : > { %v1967_v4 = vadd.f32 %v1966_v2, %v5575_v0  ;;  %v1968_v9 = vpop.f32.mrb[95].mxu0  ;;  %2444 = vmatmul.mubr.bf16.gmra.mrb[152].mxu1 %v2063_v56  ;;  %v2031_v11 = vmax.f32 %v1963_v61, 0.0  ;;  %v2099_v0 = vld [vmem:[%s6027_s8] sm:$0x3] }
 0x3a8   : > { %v1969_v10 = vadd.f32 %v1968_v9, %v5578_v1  ;;  %v2032_v14 = vmax.f32 %v1965_v63, 0.0  ;;  %v4619_v1 = vld [vmem:[#allocation6 + $0x20] ss:$8 sps:$4 sm:$0xff]   ;;  %v5726_v25 = vrot.slane %v2099_v0, %v5178_v3  ;;  %v5729_v26 = vrot.slane %v2099_v0, %v5180_v5  ;;  %v4645_v0 = vld [vmem:[#allocation6 + $0xa4] ss:$8 sps:$4 sm:$0xff]  }
 0x3a9   : > { %v2033_v13 = vmax.f32 %v1967_v4, 0.0  ;;  %3262 = vmatpush1.bf16.msra.mxu1 %v4619_v1 }
 0x3aa   : > { %v2034_v15 = vmax.f32 %v1969_v10, 0.0  ;;  %3263 = vmatprep.subr.bf16.mxu1 %v4624_v30  ;;  %v4637_v10 = vld [vmem:[#allocation6 + $0x80] ss:$8 sps:$4 sm:$0xff]  }
 0x3ab   : > { %v2065_v17 = vpack.c.bf16 %v2033_v13, %v2031_v11  ;;  %v4642_v13 = vld [vmem:[#allocation6 + $0x94] ss:$8 sps:$4 sm:$0xff]  }
 0x3ac   : > { %v2066_v18 = vpack.c.bf16 %v2034_v15, %v2032_v14 }
 0x3ad   : > { %3264 = vmatpush1.bf16.msra.mxu1 %v4622_v29 }
 0x3ae   : > { %2453 = vmatprep.mubr.bf16.mxu1 %v2066_v18  ;;  %3265 = vmatprep.subr.bf16.mxu1 %v4627_v41 }
 0x3af   : > { %2454 = vmatmul.mubr.bf16.gmra.mrb[156].mxu1 %v2065_v17 }
 0x3b1   : > { %3266 = vmatpush1.bf16.msra.mxu1 %v4625_v39 }
 0x3b2   : > { %3267 = vmatprep.subr.bf16.mxu1 %v4630_v44  ;;  %v4646_v44 = vld [vmem:[#allocation6 + $0xb0] ss:$8 sps:$4 sm:$0xff]  }
 0x3b5   : > { %3268 = vmatpush1.bf16.msra.mxu1 %v4628_v40 }
 0x3b6   : > { %3269 = vmatprep.subr.bf16.mxu1 %v4633_v42 }
 0x3b9   : > { %3270 = vmatpush1.bf16.msra.mxu1 %v4631_v49 }
 0x3ba   : > { %3271 = vmatprep.subr.bf16.mxu1 %v4636_v51  ;;  %v4652_v51 = vld [vmem:[#allocation6 + $0xd0] ss:$8 sps:$4 sm:$0xff]  }
 0x3bd   : > { %3272 = vmatpush1.bf16.msra.mxu1 %v4634_v59 }
 0x3be   : > { %3273 = vmatprep.subr.bf16.mxu1 %v4639_v60 }
 0x3c1   : > { %3274 = vmatpush1.bf16.msra.mxu1 %v4637_v10 }
 0x3c2   : > { %3275 = vmatprep.subr.bf16.mxu1 %v4642_v13 }
 0x3c5   : > { %3276 = vmatpush1.bf16.msra.mxu1 %v4640_v21 }
 0x3c6   : > { %3277 = vmatprep.subr.bf16.mxu1 %v4645_v0 }
 0x40a   : > { %v2305_v27 = vpop.f32.mrb[96].mxu1 }
 0x40b   : > { %v2306_v31 = vadd.f32 %v2305_v27, %v5726_v25  ;;  %v2307_v33 = vpop.f32.mrb[97].mxu1 }
 0x40c   : > { %v2308_v34 = vadd.f32 %v2307_v33, %v5729_v26  ;;  %v2309_v35 = vpop.f32.mrb[98].mxu1  ;;  %v4643_v33 = vld [vmem:[#allocation6 + $0xa0] ss:$8 sps:$4 sm:$0xff]  }
 0x40d   : > { %v2310_v37 = vadd.f32 %v2309_v35, %v5726_v25  ;;  %v2311_v38 = vpop.f32.mrb[99].mxu1  ;;  %v2464_v45 = vmax.f32 %v2306_v31, 0.0  ;;  %v4648_v35 = vld [vmem:[#allocation6 + $0xb4] ss:$8 sps:$4 sm:$0xff]   ;;  %3278 = vmatpush1.bf16.msra.mxu1 %v4643_v33 }
 0x40e   : > { %v2312_v43 = vadd.f32 %v2311_v38, %v5729_v26  ;;  %v2465_v6 = vmax.f32 %v2308_v34, 0.0  ;;  %3279 = vmatprep.subr.bf16.mxu1 %v4648_v35 }
 0x40f   : > { %v2466_v47 = vmax.f32 %v2310_v37, 0.0 }
 0x410   : > { %v2467_v7 = vmax.f32 %v2312_v43, 0.0 }
 0x411   : > { %v2528_v36 = vpack.c.bf16 %v2466_v47, %v2464_v45  ;;  %3280 = vmatpush1.bf16.msra.mxu1 %v4646_v44 }
 0x412   : > { %v2529_v8 = vpack.c.bf16 %v2467_v7, %v2465_v6  ;;  %v2315_v12 = vpop.f32.mrb[100].mxu1  ;;  %v4651_v6 = vld [vmem:[#allocation6 + $0xc4] ss:$8 sps:$4 sm:$0xff]  }
 0x413   : > { %v2316_v46 = vadd.f32 %v2315_v12, %v5726_v25  ;;  %v2317_v16 = vpop.f32.mrb[101].mxu1  ;;  %3281 = vmatprep.subr.bf16.mxu1 %v4651_v6 }
 0x414   : > { %v2318_v20 = vadd.f32 %v2317_v16, %v5729_v26  ;;  %v2319_v52 = vpop.f32.mrb[102].mxu1  ;;  %2796 = vmatprep.mubr.bf16.mxu0 %v2529_v8 }
 0x415   : > { %v2320_v32 = vadd.f32 %v2319_v52, %v5726_v25  ;;  %v2321_v48 = vpop.f32.mrb[103].mxu1  ;;  %2797 = vmatmul.mubr.bf16.vlgmr.msra.gmra.mrb[96].mxu0 %v2528_v36  ;;  %v2468_v53 = vmax.f32 %v2316_v46, 0.0  ;;  %v4649_v46 = vld [vmem:[#allocation6 + $0xc0] ss:$8 sps:$4 sm:$0xff]  }
 0x416   : > { %v2322_v50 = vadd.f32 %v2321_v48, %v5729_v26  ;;  %v2469_v55 = vmax.f32 %v2318_v20, 0.0  ;;  %v4654_v20 = vld [vmem:[#allocation6 + $0xd4] ss:$8 sps:$4 sm:$0xff]   ;;  %3282 = vmatpush1.bf16.msra.mxu1 %v4649_v46 }
 0x417   : > { %v2470_v54 = vmax.f32 %v2320_v32, 0.0  ;;  %3283 = vmatprep.subr.bf16.mxu1 %v4654_v20 }
 0x418   : > { %v2471_v57 = vmax.f32 %v2322_v50, 0.0 }
 0x419   : > { %v2530_v58 = vpack.c.bf16 %v2470_v54, %v2468_v53 }
 0x41a   : > { %v2531_v56 = vpack.c.bf16 %v2471_v57, %v2469_v55  ;;  %v2325_v28 = vpop.f32.mrb[104].mxu1  ;;  %v4657_v55 = vld [vmem:[#allocation6 + $0xe4] ss:$8 sps:$4 sm:$0xff]   ;;  %3284 = vmatpush1.bf16.msra.mxu1 %v4652_v51 }
 0x41b   : > { %v2326_v61 = vadd.f32 %v2325_v28, %v5726_v25  ;;  %v2327_v62 = vpop.f32.mrb[105].mxu1  ;;  %3285 = vmatprep.subr.bf16.mxu1 %v4657_v55 }
 0x41c   : > { %v2328_v63 = vadd.f32 %v2327_v62, %v5729_v26  ;;  %v2329_v2 = vpop.f32.mrb[106].mxu1  ;;  %2806 = vmatprep.mubr.bf16.mxu0 %v2531_v56 }
 0x41d   : > { %v2330_v4 = vadd.f32 %v2329_v2, %v5726_v25  ;;  %v2331_v9 = vpop.f32.mrb[107].mxu1  ;;  %2807 = vmatmul.mubr.bf16.gmra.mrb[100].mxu0 %v2530_v58  ;;  %v2472_v14 = vmax.f32 %v2326_v61, 0.0  ;;  %v4655_v61 = vld [vmem:[#allocation6 + $0xe0] ss:$8 sps:$4 sm:$0xff]  }
 0x41e   : > { %v2332_v11 = vadd.f32 %v2331_v9, %v5729_v26  ;;  %v2473_v17 = vmax.f32 %v2328_v63, 0.0  ;;  %3286 = vmatpush1.bf16.msra.mxu1 %v4655_v61 }
 0x41f   : > { %v2474_v15 = vmax.f32 %v2330_v4, 0.0 }
 0x420   : > { %v2475_v18 = vmax.f32 %v2332_v11, 0.0 }
 0x421   : > { %v2532_v19 = vpack.c.bf16 %v2474_v15, %v2472_v14 }
 0x422   : > { %v2533_v22 = vpack.c.bf16 %v2475_v18, %v2473_v17  ;;  %v2335_v23 = vpop.f32.mrb[108].mxu1 }
 0x423   : > { %v2336_v1 = vadd.f32 %v2335_v23, %v5726_v25  ;;  %v2337_v24 = vpop.f32.mrb[109].mxu1 }
 0x424   : > { %v2338_v27 = vadd.f32 %v2337_v24, %v5729_v26  ;;  %v2339_v29 = vpop.f32.mrb[110].mxu1  ;;  %2816 = vmatprep.mubr.bf16.mxu0 %v2533_v22 }
 0x425   : > { %v2340_v30 = vadd.f32 %v2339_v29, %v5726_v25  ;;  %v2341_v31 = vpop.f32.mrb[111].mxu1  ;;  %2817 = vmatmul.mubr.bf16.gmra.mrb[104].mxu0 %v2532_v19  ;;  %v2476_v37 = vmax.f32 %v2336_v1, 0.0 }
 0x426   : > { %v2342_v34 = vadd.f32 %v2341_v31, %v5729_v26  ;;  %v2477_v39 = vmax.f32 %v2338_v27, 0.0 }
 0x427   : > { %v2478_v38 = vmax.f32 %v2340_v30, 0.0 }
 0x428   : > { %v2479_v41 = vmax.f32 %v2342_v34, 0.0 }
 0x429   : > { %v2534_v43 = vpack.c.bf16 %v2478_v38, %v2476_v37 }
 0x42a   : > { %v2535_v45 = vpack.c.bf16 %v2479_v41, %v2477_v39  ;;  %v2345_v47 = vpop.f32.mrb[112].mxu1 }
 0x42b   : > { %v2346_v7 = vadd.f32 %v2345_v47, %v5726_v25  ;;  %v2347_v36 = vpop.f32.mrb[113].mxu1 }
 0x42c   : > { %v2348_v40 = vadd.f32 %v2347_v36, %v5729_v26  ;;  %v2349_v8 = vpop.f32.mrb[114].mxu1  ;;  %2826 = vmatprep.mubr.bf16.mxu0 %v2535_v45 }
 0x42d   : > { %v2350_v12 = vadd.f32 %v2349_v8, %v5726_v25  ;;  %v2351_v42 = vpop.f32.mrb[115].mxu1  ;;  %2827 = vmatmul.mubr.bf16.gmra.mrb[108].mxu0 %v2534_v43  ;;  %v2480_v52 = vmax.f32 %v2346_v7, 0.0 }
 0x42e   : > { %v2352_v16 = vadd.f32 %v2351_v42, %v5729_v26  ;;  %v2481_v48 = vmax.f32 %v2348_v40, 0.0 }
 0x42f   : > { %v2482_v32 = vmax.f32 %v2350_v12, 0.0 }
 0x430   : > { %v2483_v49 = vmax.f32 %v2352_v16, 0.0 }
 0x431   : > { %v2536_v50 = vpack.c.bf16 %v2482_v32, %v2480_v52 }
 0x432   : > { %v2537_v53 = vpack.c.bf16 %v2483_v49, %v2481_v48  ;;  %v2355_v54 = vpop.f32.mrb[116].mxu1 }
 0x433   : > { %v2356_v57 = vadd.f32 %v2355_v54, %v5726_v25  ;;  %v2357_v58 = vpop.f32.mrb[117].mxu1 }
 0x434   : > { %v2358_v59 = vadd.f32 %v2357_v58, %v5729_v26  ;;  %v2359_v56 = vpop.f32.mrb[118].mxu1  ;;  %2836 = vmatprep.mubr.bf16.mxu0 %v2537_v53 }
 0x435   : > { %v2360_v28 = vadd.f32 %v2359_v56, %v5726_v25  ;;  %v2361_v60 = vpop.f32.mrb[119].mxu1  ;;  %2837 = vmatmul.mubr.bf16.gmra.mrb[112].mxu0 %v2536_v50  ;;  %v2484_v63 = vmax.f32 %v2356_v57, 0.0 }
 0x436   : > { %v2362_v62 = vadd.f32 %v2361_v60, %v5729_v26  ;;  %v2485_v4 = vmax.f32 %v2358_v59, 0.0 }
 0x437   : > { %v2486_v2 = vmax.f32 %v2360_v28, 0.0 }
 0x438   : > { %v2487_v9 = vmax.f32 %v2362_v62, 0.0 }
 0x439   : > { %v2538_v10 = vpack.c.bf16 %v2486_v2, %v2484_v63 }
 0x43a   : > { %v2539_v11 = vpack.c.bf16 %v2487_v9, %v2485_v4  ;;  %v2365_v13 = vpop.f32.mrb[120].mxu1 }
 0x43b   : > { %v2366_v14 = vadd.f32 %v2365_v13, %v5726_v25  ;;  %v2367_v15 = vpop.f32.mrb[121].mxu1 }
 0x43c   : > { %v2368_v17 = vadd.f32 %v2367_v15, %v5729_v26  ;;  %v2369_v18 = vpop.f32.mrb[122].mxu1  ;;  %2846 = vmatprep.mubr.bf16.mxu0 %v2539_v11 }
 0x43d   : > { %v2370_v19 = vadd.f32 %v2369_v18, %v5726_v25  ;;  %v2371_v21 = vpop.f32.mrb[123].mxu1  ;;  %2847 = vmatmul.mubr.bf16.gmra.mrb[116].mxu0 %v2538_v10  ;;  %v2488_v23 = vmax.f32 %v2366_v14, 0.0 }
 0x43e   : > { %v2372_v22 = vadd.f32 %v2371_v21, %v5729_v26  ;;  %v2489_v1 = vmax.f32 %v2368_v17, 0.0 }
 0x43f   : > { %v2490_v0 = vmax.f32 %v2370_v19, 0.0 }
 0x440   : > { %v2491_v24 = vmax.f32 %v2372_v22, 0.0 }
 0x441   : > { %v2540_v27 = vpack.c.bf16 %v2490_v0, %v2488_v23 }
 0x442   : > { %v2541_v29 = vpack.c.bf16 %v2491_v24, %v2489_v1  ;;  %v2375_v30 = vpop.f32.mrb[124].mxu1 }
 0x443   : > { %v2376_v31 = vadd.f32 %v2375_v30, %v5726_v25  ;;  %v2377_v33 = vpop.f32.mrb[125].mxu1 }
 0x444   : > { %v2378_v34 = vadd.f32 %v2377_v33, %v5729_v26  ;;  %v2379_v35 = vpop.f32.mrb[126].mxu1  ;;  %2856 = vmatprep.mubr.bf16.mxu0 %v2541_v29 }
 0x445   : > { %v2380_v37 = vadd.f32 %v2379_v35, %v5726_v25  ;;  %v2381_v38 = vpop.f32.mrb[127].mxu1  ;;  %2857 = vmatmul.mubr.bf16.gmra.mrb[120].mxu0 %v2540_v27  ;;  %v2492_v41 = vmax.f32 %v2376_v31, 0.0 }
 0x446   : > { %v2382_v39 = vadd.f32 %v2381_v38, %v5729_v26  ;;  %v2493_v44 = vmax.f32 %v2378_v34, 0.0 }
 0x447   : > { %v2494_v43 = vmax.f32 %v2380_v37, 0.0 }
 0x448   : > { %v2495_v45 = vmax.f32 %v2382_v39, 0.0 }
 0x449   : > { %v2542_v47 = vpack.c.bf16 %v2494_v43, %v2492_v41 }
 0x44a   : > { %v2543_v6 = vpack.c.bf16 %v2495_v45, %v2493_v44  ;;  %v2385_v7 = vpop.f32.mrb[128].mxu1 }
 0x44b   : > { %v2386_v36 = vadd.f32 %v2385_v7, %v5726_v25  ;;  %v2387_v40 = vpop.f32.mrb[129].mxu1 }
 0x44c   : > { %v2388_v8 = vadd.f32 %v2387_v40, %v5729_v26  ;;  %v2389_v12 = vpop.f32.mrb[130].mxu1  ;;  %2866 = vmatprep.mubr.bf16.mxu0 %v2543_v6 }
 0x44d   : > { %v2390_v42 = vadd.f32 %v2389_v12, %v5726_v25  ;;  %v2391_v46 = vpop.f32.mrb[131].mxu1  ;;  %2867 = vmatmul.mubr.bf16.gmra.mrb[124].mxu0 %v2542_v47  ;;  %v2496_v20 = vmax.f32 %v2386_v36, 0.0 }
 0x44e   : > { %v2392_v16 = vadd.f32 %v2391_v46, %v5729_v26  ;;  %v2497_v32 = vmax.f32 %v2388_v8, 0.0  ;;  %v4660_v8 = vld [vmem:[#allocation6 + $0xf4] ss:$8 sps:$4 sm:$0xff]  }
 0x44f   : > { %v2498_v52 = vmax.f32 %v2390_v42, 0.0  ;;  %v4658_v42 = vld [vmem:[#allocation6 + $0xf0] ss:$8 sps:$4 sm:$0xff]   ;;  %3287 = vmatprep.subr.bf16.mxu1 %v4660_v8 }
 0x450   : > { %v2499_v48 = vmax.f32 %v2392_v16, 0.0  ;;  %3288 = vmatpush1.bf16.msra.mxu1 %v4658_v42 }
 0x451   : > { %v2544_v49 = vpack.c.bf16 %v2498_v52, %v2496_v20 }
 0x452   : > { %v2545_v50 = vpack.c.bf16 %v2499_v48, %v2497_v32  ;;  %v2395_v51 = vpop.f32.mrb[132].mxu1 }
 0x453   : > { %v2396_v53 = vadd.f32 %v2395_v51, %v5726_v25  ;;  %v2397_v54 = vpop.f32.mrb[133].mxu1 }
 0x454   : > { %v2398_v55 = vadd.f32 %v2397_v54, %v5729_v26  ;;  %v2399_v57 = vpop.f32.mrb[134].mxu1  ;;  %2876 = vmatprep.mubr.bf16.mxu0 %v2545_v50 }
 0x455   : > { %v2400_v58 = vadd.f32 %v2399_v57, %v5726_v25  ;;  %v2401_v59 = vpop.f32.mrb[135].mxu1  ;;  %2877 = vmatmul.mubr.bf16.gmra.mrb[128].mxu0 %v2544_v49  ;;  %v2500_v28 = vmax.f32 %v2396_v53, 0.0 }
 0x456   : > { %v2402_v56 = vadd.f32 %v2401_v59, %v5729_v26  ;;  %v2501_v61 = vmax.f32 %v2398_v55, 0.0 }
 0x457   : > { %v2502_v60 = vmax.f32 %v2400_v58, 0.0 }
 0x458   : > { %v2503_v62 = vmax.f32 %v2402_v56, 0.0 }
 0x459   : > { %v2546_v63 = vpack.c.bf16 %v2502_v60, %v2500_v28 }
 0x45a   : > { %v2547_v2 = vpack.c.bf16 %v2503_v62, %v2501_v61  ;;  %v2405_v4 = vpop.f32.mrb[136].mxu1 }
 0x45b   : > { %v2406_v9 = vadd.f32 %v2405_v4, %v5726_v25  ;;  %v2407_v10 = vpop.f32.mrb[137].mxu1 }
 0x45c   : > { %v2408_v11 = vadd.f32 %v2407_v10, %v5729_v26  ;;  %v2409_v13 = vpop.f32.mrb[138].mxu1  ;;  %2886 = vmatprep.mubr.bf16.mxu0 %v2547_v2 }
 0x45d   : > { %v2410_v14 = vadd.f32 %v2409_v13, %v5726_v25  ;;  %v2411_v15 = vpop.f32.mrb[139].mxu1  ;;  %2887 = vmatmul.mubr.bf16.gmra.mrb[132].mxu0 %v2546_v63  ;;  %v2504_v18 = vmax.f32 %v2406_v9, 0.0 }
 0x45e   : > { %v2412_v17 = vadd.f32 %v2411_v15, %v5729_v26  ;;  %v2505_v21 = vmax.f32 %v2408_v11, 0.0 }
 0x45f   : > { %v2506_v19 = vmax.f32 %v2410_v14, 0.0 }
 0x460   : > { %v2507_v22 = vmax.f32 %v2412_v17, 0.0 }
 0x461   : > { %v2548_v23 = vpack.c.bf16 %v2506_v19, %v2504_v18 }
 0x462   : > { %v2549_v0 = vpack.c.bf16 %v2507_v22, %v2505_v21  ;;  %v2415_v1 = vpop.f32.mrb[140].mxu1 }
 0x463   : > { %v2416_v24 = vadd.f32 %v2415_v1, %v5726_v25  ;;  %v2417_v27 = vpop.f32.mrb[141].mxu1 }
 0x464   : > { %v2418_v29 = vadd.f32 %v2417_v27, %v5729_v26  ;;  %v2419_v30 = vpop.f32.mrb[142].mxu1  ;;  %2896 = vmatprep.mubr.bf16.mxu0 %v2549_v0 }
 0x465   : > { %v2420_v31 = vadd.f32 %v2419_v30, %v5726_v25  ;;  %v2421_v33 = vpop.f32.mrb[143].mxu1  ;;  %2897 = vmatmul.mubr.bf16.gmra.mrb[136].mxu0 %v2548_v23  ;;  %v2508_v35 = vmax.f32 %v2416_v24, 0.0 }
 0x466   : > { %v2422_v34 = vadd.f32 %v2421_v33, %v5729_v26  ;;  %v2509_v38 = vmax.f32 %v2418_v29, 0.0 }
 0x467   : > { %v2510_v37 = vmax.f32 %v2420_v31, 0.0 }
 0x468   : > { %v2511_v39 = vmax.f32 %v2422_v34, 0.0 }
 0x469   : > { %v2550_v41 = vpack.c.bf16 %v2510_v37, %v2508_v35 }
 0x46a   : > { %v2551_v43 = vpack.c.bf16 %v2511_v39, %v2509_v38  ;;  %v2425_v44 = vpop.f32.mrb[144].mxu1 }
 0x46b   : > { %v2426_v45 = vadd.f32 %v2425_v44, %v5726_v25  ;;  %v2427_v47 = vpop.f32.mrb[145].mxu1  ;;  %v4663_v44 = vld [vmem:[#allocation7 + $0x48] sm:$0xff]  }
 0x46c   : > { %v2428_v6 = vadd.f32 %v2427_v47, %v5729_v26  ;;  %v2429_v7 = vpop.f32.mrb[146].mxu1  ;;  %2906 = vmatprep.mubr.bf16.mxu0 %v2551_v43  ;;  %v4662_v43 = vld [vmem:[#allocation7] sm:$0xff]  }
 0x46d   : > { %v2430_v36 = vadd.f32 %v2429_v7, %v5726_v25  ;;  %v2431_v40 = vpop.f32.mrb[147].mxu1  ;;  %2907 = vmatmul.mubr.bf16.gmra.mrb[140].mxu0 %v2550_v41  ;;  %v2512_v46 = vmax.f32 %v2426_v45, 0.0  ;;  %v4661_v41 = vld [vmem:[#allocation7 + $0x40] sm:$0xff]   ;;  %v4664_v45 = vld [vmem:[#allocation7 + $0x8] sm:$0xff]  }
 0x46e   : > { %v2432_v12 = vadd.f32 %v2431_v40, %v5729_v26  ;;  %v2513_v20 = vmax.f32 %v2428_v6, 0.0  ;;  %4199 = vmatprep.subr.bf16.mxu0 %v4661_v41 }
 0x46f   : > { %v2514_v16 = vmax.f32 %v2430_v36, 0.0  ;;  %4200 = vmatpush3.bf16.msra.mxu0 %v4662_v43 }
 0x470   : > { %v2515_v52 = vmax.f32 %v2432_v12, 0.0  ;;  %4201 = vmatprep.subr.bf16.mxu0 %v4663_v44 }
 0x471   : > { %v2552_v32 = vpack.c.bf16 %v2514_v16, %v2512_v46  ;;  %v4665_v46 = vld [vmem:[#allocation7 + $0x50] sm:$0xff]  }
 0x472   : > { %v2553_v48 = vpack.c.bf16 %v2515_v52, %v2513_v20  ;;  %v2435_v49 = vpop.f32.mrb[148].mxu1  ;;  %v4666_v16 = vld [vmem:[#allocation7 + $0x10] sm:$0xff]   ;;  %v4667_v20 = vld [vmem:[#allocation7 + $0x58] sm:$0xff]  }
 0x473   : > { %v2436_v50 = vadd.f32 %v2435_v49, %v5726_v25  ;;  %v2437_v51 = vpop.f32.mrb[149].mxu1  ;;  %4202 = vmatpush3.bf16.msra.mxu0 %v4664_v45 }
 0x474   : > { %v2438_v53 = vadd.f32 %v2437_v51, %v5729_v26  ;;  %v2439_v54 = vpop.f32.mrb[150].mxu1  ;;  %2916 = vmatprep.mubr.bf16.mxu0 %v2553_v48  ;;  %4203 = vmatprep.subr.bf16.mxu0 %v4665_v46  ;;  %v4668_v51 = vld [vmem:[#allocation7 + $0x18] sm:$0xff]  }
 0x475   : > { %v2440_v55 = vadd.f32 %v2439_v54, %v5726_v25  ;;  %v2441_v57 = vpop.f32.mrb[151].mxu1  ;;  %2917 = vmatmul.mubr.bf16.gmra.mrb[144].mxu0 %v2552_v32  ;;  %v2516_v59 = vmax.f32 %v2436_v50, 0.0  ;;  %v4669_v54 = vld [vmem:[#allocation7 + $0x60] sm:$0xff]  }
 0x476   : > { %v2442_v58 = vadd.f32 %v2441_v57, %v5729_v26  ;;  %v2517_v28 = vmax.f32 %v2438_v53, 0.0 }
 0x477   : > { %v2518_v56 = vmax.f32 %v2440_v55, 0.0  ;;  %4204 = vmatpush3.bf16.msra.mxu0 %v4666_v16 }
 0x478   : > { %v2519_v60 = vmax.f32 %v2442_v58, 0.0  ;;  %4205 = vmatprep.subr.bf16.mxu0 %v4667_v20 }
 0x479   : > { %v2554_v61 = vpack.c.bf16 %v2518_v56, %v2516_v59 }
 0x47a   : > { %v2555_v62 = vpack.c.bf16 %v2519_v60, %v2517_v28  ;;  %v2445_v63 = vpop.f32.mrb[152].mxu1  ;;  %v4670_v60 = vld [vmem:[#allocation7 + $0x20] sm:$0xff]  }
 0x47b   : > { %v2446_v2 = vadd.f32 %v2445_v63, %v5726_v25  ;;  %v2447_v4 = vpop.f32.mrb[153].mxu1  ;;  %4206 = vmatpush3.bf16.msra.mxu0 %v4668_v51  ;;  %v4671_v63 = vld [vmem:[#allocation7 + $0x68] sm:$0xff]  }
 0x47c   : > { %v2448_v9 = vadd.f32 %v2447_v4, %v5729_v26  ;;  %v2449_v10 = vpop.f32.mrb[154].mxu1  ;;  %2926 = vmatprep.mubr.bf16.mxu0 %v2555_v62  ;;  %4207 = vmatprep.subr.bf16.mxu0 %v4669_v54 }
 0x47d   : > { %v2450_v11 = vadd.f32 %v2449_v10, %v5726_v25  ;;  %v2451_v13 = vpop.f32.mrb[155].mxu1  ;;  %2927 = vmatmul.mubr.bf16.gmra.mrb[148].mxu0 %v2554_v61  ;;  %v2520_v15 = vmax.f32 %v2446_v2, 0.0 }
 0x47e   : > { %v2452_v14 = vadd.f32 %v2451_v13, %v5729_v26  ;;  %v2521_v18 = vmax.f32 %v2448_v9, 0.0  ;;  %v4672_v13 = vld [vmem:[#allocation7 + $0x28] sm:$0xff]  }
 0x47f   : > { %v2522_v17 = vmax.f32 %v2450_v11, 0.0  ;;  %4208 = vmatpush3.bf16.msra.mxu0 %v4670_v60 }
 0x480   : > { %v2523_v19 = vmax.f32 %v2452_v14, 0.0  ;;  %4209 = vmatprep.subr.bf16.mxu0 %v4671_v63 }
 0x481   : > { %v2556_v21 = vpack.c.bf16 %v2522_v17, %v2520_v15  ;;  %v4673_v15 = vld [vmem:[#allocation7 + $0x70] sm:$0xff]  }
 0x482   : > { %v2557_v22 = vpack.c.bf16 %v2523_v19, %v2521_v18  ;;  %v2455_v23 = vpop.f32.mrb[156].mxu1 }
 0x483   : > { %v2456_v0 = vadd.f32 %v2455_v23, %v5726_v25  ;;  %v2457_v1 = vpop.f32.mrb[157].mxu1  ;;  %4210 = vmatpush3.bf16.msra.mxu0 %v4672_v13 }
 0x484   : > { %v2458_v24 = vadd.f32 %v2457_v1, %v5729_v26  ;;  %v2459_v27 = vpop.f32.mrb[158].mxu1  ;;  %2936 = vmatprep.mubr.bf16.mxu0 %v2557_v22  ;;  %4211 = vmatprep.subr.bf16.mxu0 %v4673_v15 }
 0x485   : > { %v2460_v29 = vadd.f32 %v2459_v27, %v5726_v25  ;;  %v2461_v30 = vpop.f32.mrb[159].mxu1  ;;  %2937 = vmatmul.mubr.bf16.gmra.mrb[152].mxu0 %v2556_v21  ;;  %v2524_v33 = vmax.f32 %v2456_v0, 0.0  ;;  %v2592_v25 = vld [vmem:[%s6029_s10] sm:$0x3]  ;;  %v4674_v0 = vld [vmem:[#allocation7 + $0x30] sm:$0xff]  }
 0x486   : > { %v2462_v31 = vadd.f32 %v2461_v30, %v5729_v26  ;;  %v2525_v35 = vmax.f32 %v2458_v24, 0.0  ;;  %v5799_v26 = vrot.slane %v2592_v25, %v5178_v3  ;;  %v5802_v47 = vrot.slane %v2592_v25, %v5180_v5  ;;  %v4675_v27 = vld [vmem:[#allocation7 + $0x78] sm:$0xff]  }
 0x487   : > { %v2526_v34 = vmax.f32 %v2460_v29, 0.0  ;;  %4212 = vmatpush3.bf16.msra.mxu0 %v4674_v0 }
 0x488   : > { %v2527_v37 = vmax.f32 %v2462_v31, 0.0  ;;  %4213 = vmatprep.subr.bf16.mxu0 %v4675_v27 }
 0x489   : > { %v2558_v38 = vpack.c.bf16 %v2526_v34, %v2524_v33 }
 0x48a   : > { %v2559_v39 = vpack.c.bf16 %v2527_v37, %v2525_v35  ;;  %v4676_v35 = vld [vmem:[#allocation7 + $0x38] sm:$0xff]  }
 0x48b   : > { %4214 = vmatpush3.bf16.msra.mxu0 %v4676_v35 }
 0x48c   : > { %2946 = vmatprep.mubr.bf16.mxu0 %v2559_v39 }
 0x48d   : > { %2947 = vmatmul.mubr.bf16.gmra.mrb[156].mxu0 %v2558_v38 }
 0x4e8   : > { %v2798_v6 = vpop.f32.mrb[96].mxu0 }
 0x4e9   : > { %v2799_v7 = vadd.f32 %v2798_v6, %v5799_v26  ;;  %v2800_v36 = vpop.f32.mrb[97].mxu0 }
 0x4ea   : > { %v2801_v40 = vadd.f32 %v2800_v36, %v5802_v47  ;;  %v2802_v8 = vpop.f32.mrb[98].mxu0 }
 0x4eb   : > { %v2803_v12 = vadd.f32 %v2802_v8, %v5799_v26  ;;  %v2804_v42 = vpop.f32.mrb[99].mxu0  ;;  %v2957_v32 = vmax.f32 %v2799_v7, 0.0 }
 0x4ec   : > { %v2805_v52 = vadd.f32 %v2804_v42, %v5802_v47  ;;  %v2958_v49 = vmax.f32 %v2801_v40, 0.0 }
 0x4ed   : > { %v2959_v48 = vmax.f32 %v2803_v12, 0.0 }
 0x4ee   : > { %v2960_v50 = vmax.f32 %v2805_v52, 0.0 }
 0x4ef   : > { %v3021_v53 = vpack.c.bf16 %v2959_v48, %v2957_v32 }
 0x4f0   : > { %v3022_v55 = vpack.c.bf16 %v2960_v50, %v2958_v49  ;;  %v2808_v57 = vpop.f32.mrb[100].mxu0 }
 0x4f1   : > { %v2809_v58 = vadd.f32 %v2808_v57, %v5799_v26  ;;  %v2810_v59 = vpop.f32.mrb[101].mxu0 }
 0x4f2   : > { %v2811_v56 = vadd.f32 %v2810_v59, %v5802_v47  ;;  %v2812_v28 = vpop.f32.mrb[102].mxu0  ;;  %3289 = vmatprep.mubr.bf16.mxu1 %v3022_v55 }
 0x4f3   : > { %v2813_v61 = vadd.f32 %v2812_v28, %v5799_v26  ;;  %v2814_v62 = vpop.f32.mrb[103].mxu0  ;;  %3290 = vmatmul.mubr.bf16.vlgmr.msra.gmra.mrb[160].mxu1 %v3021_v53  ;;  %v2961_v4 = vmax.f32 %v2809_v58, 0.0 }
 0x4f4   : > { %v2815_v2 = vadd.f32 %v2814_v62, %v5802_v47  ;;  %v2962_v10 = vmax.f32 %v2811_v56, 0.0 }
 0x4f5   : > { %v2963_v9 = vmax.f32 %v2813_v61, 0.0 }
 0x4f6   : > { %v2964_v11 = vmax.f32 %v2815_v2, 0.0 }
 0x4f7   : > { %v3023_v14 = vpack.c.bf16 %v2963_v9, %v2961_v4 }
 0x4f8   : > { %v3024_v17 = vpack.c.bf16 %v2964_v11, %v2962_v10  ;;  %v2818_v18 = vpop.f32.mrb[104].mxu0 }
 0x4f9   : > { %v2819_v19 = vadd.f32 %v2818_v18, %v5799_v26  ;;  %v2820_v21 = vpop.f32.mrb[105].mxu0 }
 0x4fa   : > { %v2821_v22 = vadd.f32 %v2820_v21, %v5802_v47  ;;  %v2822_v23 = vpop.f32.mrb[106].mxu0  ;;  %3299 = vmatprep.mubr.bf16.mxu1 %v3024_v17 }
 0x4fb   : > { %v2823_v1 = vadd.f32 %v2822_v23, %v5799_v26  ;;  %v2824_v24 = vpop.f32.mrb[107].mxu0  ;;  %3300 = vmatmul.mubr.bf16.gmra.mrb[164].mxu1 %v3023_v14  ;;  %v2965_v30 = vmax.f32 %v2819_v19, 0.0 }
 0x4fc   : > { %v2825_v29 = vadd.f32 %v2824_v24, %v5802_v47  ;;  %v2966_v33 = vmax.f32 %v2821_v22, 0.0 }
 0x4fd   : > { %v2967_v31 = vmax.f32 %v2823_v1, 0.0 }
 0x4fe   : > { %v2968_v34 = vmax.f32 %v2825_v29, 0.0 }
 0x4ff   : > { %v3025_v37 = vpack.c.bf16 %v2967_v31, %v2965_v30 }
 0x500   : > { %v3026_v38 = vpack.c.bf16 %v2968_v34, %v2966_v33  ;;  %v2828_v39 = vpop.f32.mrb[108].mxu0 }
 0x501   : > { %v2829_v41 = vadd.f32 %v2828_v39, %v5799_v26  ;;  %v2830_v43 = vpop.f32.mrb[109].mxu0 }
 0x502   : > { %v2831_v25 = vadd.f32 %v2830_v43, %v5802_v47  ;;  %v2832_v44 = vpop.f32.mrb[110].mxu0  ;;  %3309 = vmatprep.mubr.bf16.mxu1 %v3026_v38 }
 0x503   : > { %v2833_v45 = vadd.f32 %v2832_v44, %v5799_v26  ;;  %v2834_v6 = vpop.f32.mrb[111].mxu0  ;;  %3310 = vmatmul.mubr.bf16.gmra.mrb[168].mxu1 %v3025_v37  ;;  %v2969_v36 = vmax.f32 %v2829_v41, 0.0 }
 0x504   : > { %v2835_v7 = vadd.f32 %v2834_v6, %v5802_v47  ;;  %v2970_v8 = vmax.f32 %v2831_v25, 0.0 }
 0x505   : > { %v2971_v40 = vmax.f32 %v2833_v45, 0.0 }
 0x506   : > { %v2972_v12 = vmax.f32 %v2835_v7, 0.0 }
 0x507   : > { %v3027_v42 = vpack.c.bf16 %v2971_v40, %v2969_v36 }
 0x508   : > { %v3028_v46 = vpack.c.bf16 %v2972_v12, %v2970_v8  ;;  %v2838_v16 = vpop.f32.mrb[112].mxu0 }
 0x509   : > { %v2839_v20 = vadd.f32 %v2838_v16, %v5799_v26  ;;  %v2840_v52 = vpop.f32.mrb[113].mxu0 }
 0x50a   : > { %v2841_v32 = vadd.f32 %v2840_v52, %v5802_v47  ;;  %v2842_v48 = vpop.f32.mrb[114].mxu0  ;;  %3319 = vmatprep.mubr.bf16.mxu1 %v3028_v46 }
 0x50b   : > { %v2843_v49 = vadd.f32 %v2842_v48, %v5799_v26  ;;  %v2844_v50 = vpop.f32.mrb[115].mxu0  ;;  %3320 = vmatmul.mubr.bf16.gmra.mrb[172].mxu1 %v3027_v42  ;;  %v2973_v53 = vmax.f32 %v2839_v20, 0.0 }
 0x50c   : > { %v2845_v51 = vadd.f32 %v2844_v50, %v5802_v47  ;;  %v2974_v55 = vmax.f32 %v2841_v32, 0.0 }
 0x50d   : > { %v2975_v54 = vmax.f32 %v2843_v49, 0.0 }
 0x50e   : > { %v2976_v57 = vmax.f32 %v2845_v51, 0.0 }
 0x50f   : > { %v3029_v58 = vpack.c.bf16 %v2975_v54, %v2973_v53 }
 0x510   : > { %v3030_v59 = vpack.c.bf16 %v2976_v57, %v2974_v55  ;;  %v2848_v56 = vpop.f32.mrb[116].mxu0 }
 0x511   : > { %v2849_v28 = vadd.f32 %v2848_v56, %v5799_v26  ;;  %v2850_v60 = vpop.f32.mrb[117].mxu0 }
 0x512   : > { %v2851_v61 = vadd.f32 %v2850_v60, %v5802_v47  ;;  %v2852_v62 = vpop.f32.mrb[118].mxu0  ;;  %3329 = vmatprep.mubr.bf16.mxu1 %v3030_v59 }
 0x513   : > { %v2853_v63 = vadd.f32 %v2852_v62, %v5799_v26  ;;  %v2854_v2 = vpop.f32.mrb[119].mxu0  ;;  %3330 = vmatmul.mubr.bf16.gmra.mrb[176].mxu1 %v3029_v58  ;;  %v2977_v9 = vmax.f32 %v2849_v28, 0.0 }
 0x514   : > { %v2855_v4 = vadd.f32 %v2854_v2, %v5802_v47  ;;  %v2978_v11 = vmax.f32 %v2851_v61, 0.0 }
 0x515   : > { %v2979_v10 = vmax.f32 %v2853_v63, 0.0 }
 0x516   : > { %v2980_v13 = vmax.f32 %v2855_v4, 0.0 }
 0x517   : > { %v3031_v14 = vpack.c.bf16 %v2979_v10, %v2977_v9 }
 0x518   : > { %v3032_v15 = vpack.c.bf16 %v2980_v13, %v2978_v11  ;;  %v2858_v17 = vpop.f32.mrb[120].mxu0 }
 0x519   : > { %v2859_v18 = vadd.f32 %v2858_v17, %v5799_v26  ;;  %v2860_v19 = vpop.f32.mrb[121].mxu0 }
 0x51a   : > { %v2861_v21 = vadd.f32 %v2860_v19, %v5802_v47  ;;  %v2862_v22 = vpop.f32.mrb[122].mxu0  ;;  %3339 = vmatprep.mubr.bf16.mxu1 %v3032_v15 }
 0x51b   : > { %v2863_v23 = vadd.f32 %v2862_v22, %v5799_v26  ;;  %v2864_v0 = vpop.f32.mrb[123].mxu0  ;;  %3340 = vmatmul.mubr.bf16.gmra.mrb[180].mxu1 %v3031_v14  ;;  %v2981_v24 = vmax.f32 %v2859_v18, 0.0 }
 0x51c   : > { %v2865_v1 = vadd.f32 %v2864_v0, %v5802_v47  ;;  %v2982_v29 = vmax.f32 %v2861_v21, 0.0 }
 0x51d   : > { %v2983_v27 = vmax.f32 %v2863_v23, 0.0 }
 0x51e   : > { %v2984_v30 = vmax.f32 %v2865_v1, 0.0 }
 0x51f   : > { %v3033_v31 = vpack.c.bf16 %v2983_v27, %v2981_v24 }
 0x520   : > { %v3034_v33 = vpack.c.bf16 %v2984_v30, %v2982_v29  ;;  %v2868_v34 = vpop.f32.mrb[124].mxu0 }
 0x521   : > { %v2869_v35 = vadd.f32 %v2868_v34, %v5799_v26  ;;  %v2870_v37 = vpop.f32.mrb[125].mxu0 }
 0x522   : > { %v2871_v38 = vadd.f32 %v2870_v37, %v5802_v47  ;;  %v2872_v39 = vpop.f32.mrb[126].mxu0  ;;  %3349 = vmatprep.mubr.bf16.mxu1 %v3034_v33 }
 0x523   : > { %v2873_v41 = vadd.f32 %v2872_v39, %v5799_v26  ;;  %v2874_v43 = vpop.f32.mrb[127].mxu0  ;;  %3350 = vmatmul.mubr.bf16.gmra.mrb[184].mxu1 %v3033_v31  ;;  %v2985_v44 = vmax.f32 %v2869_v35, 0.0 }
 0x524   : > { %v2875_v25 = vadd.f32 %v2874_v43, %v5802_v47  ;;  %v2986_v6 = vmax.f32 %v2871_v38, 0.0 }
 0x525   : > { %v2987_v45 = vmax.f32 %v2873_v41, 0.0 }
 0x526   : > { %v2988_v7 = vmax.f32 %v2875_v25, 0.0 }
 0x527   : > { %v3035_v36 = vpack.c.bf16 %v2987_v45, %v2985_v44 }
 0x528   : > { %v3036_v40 = vpack.c.bf16 %v2988_v7, %v2986_v6  ;;  %v2878_v8 = vpop.f32.mrb[128].mxu0 }
 0x529   : > { %v2879_v12 = vadd.f32 %v2878_v8, %v5799_v26  ;;  %v2880_v42 = vpop.f32.mrb[129].mxu0 }
 0x52a   : > { %v2881_v46 = vadd.f32 %v2880_v42, %v5802_v47  ;;  %v2882_v16 = vpop.f32.mrb[130].mxu0  ;;  %3359 = vmatprep.mubr.bf16.mxu1 %v3036_v40 }
 0x52b   : > { %v2883_v20 = vadd.f32 %v2882_v16, %v5799_v26  ;;  %v2884_v52 = vpop.f32.mrb[131].mxu0  ;;  %3360 = vmatmul.mubr.bf16.gmra.mrb[188].mxu1 %v3035_v36  ;;  %v2989_v48 = vmax.f32 %v2879_v12, 0.0 }
 0x52c   : > { %v2885_v32 = vadd.f32 %v2884_v52, %v5802_v47  ;;  %v2990_v50 = vmax.f32 %v2881_v46, 0.0 }
 0x52d   : > { %v2991_v49 = vmax.f32 %v2883_v20, 0.0 }
 0x52e   : > { %v2992_v51 = vmax.f32 %v2885_v32, 0.0 }
 0x52f   : > { %v3037_v53 = vpack.c.bf16 %v2991_v49, %v2989_v48 }
 0x530   : > { %v3038_v54 = vpack.c.bf16 %v2992_v51, %v2990_v50  ;;  %v2888_v55 = vpop.f32.mrb[132].mxu0 }
 0x531   : > { %v2889_v57 = vadd.f32 %v2888_v55, %v5799_v26  ;;  %v2890_v58 = vpop.f32.mrb[133].mxu0 }
 0x532   : > { %v2891_v59 = vadd.f32 %v2890_v58, %v5802_v47  ;;  %v2892_v56 = vpop.f32.mrb[134].mxu0  ;;  %3369 = vmatprep.mubr.bf16.mxu1 %v3038_v54 }
 0x533   : > { %v2893_v28 = vadd.f32 %v2892_v56, %v5799_v26  ;;  %v2894_v60 = vpop.f32.mrb[135].mxu0  ;;  %3370 = vmatmul.mubr.bf16.gmra.mrb[192].mxu1 %v3037_v53  ;;  %v2993_v62 = vmax.f32 %v2889_v57, 0.0 }
 0x534   : > { %v2895_v61 = vadd.f32 %v2894_v60, %v5802_v47  ;;  %v2994_v2 = vmax.f32 %v2891_v59, 0.0 }
 0x535   : > { %v2995_v63 = vmax.f32 %v2893_v28, 0.0 }
 0x536   : > { %v2996_v4 = vmax.f32 %v2895_v61, 0.0 }
 0x537   : > { %v3039_v9 = vpack.c.bf16 %v2995_v63, %v2993_v62 }
 0x538   : > { %v3040_v10 = vpack.c.bf16 %v2996_v4, %v2994_v2  ;;  %v2898_v11 = vpop.f32.mrb[136].mxu0 }
 0x539   : > { %v2899_v13 = vadd.f32 %v2898_v11, %v5799_v26  ;;  %v2900_v14 = vpop.f32.mrb[137].mxu0 }
 0x53a   : > { %v2901_v15 = vadd.f32 %v2900_v14, %v5802_v47  ;;  %v2902_v17 = vpop.f32.mrb[138].mxu0  ;;  %3379 = vmatprep.mubr.bf16.mxu1 %v3040_v10 }
 0x53b   : > { %v2903_v18 = vadd.f32 %v2902_v17, %v5799_v26  ;;  %v2904_v19 = vpop.f32.mrb[139].mxu0  ;;  %3380 = vmatmul.mubr.bf16.gmra.mrb[196].mxu1 %v3039_v9  ;;  %v2997_v22 = vmax.f32 %v2899_v13, 0.0 }
 0x53c   : > { %v2905_v21 = vadd.f32 %v2904_v19, %v5802_v47  ;;  %v2998_v0 = vmax.f32 %v2901_v15, 0.0 }
 0x53d   : > { %v2999_v23 = vmax.f32 %v2903_v18, 0.0 }
 0x53e   : > { %v3000_v1 = vmax.f32 %v2905_v21, 0.0 }
 0x53f   : > { %v3041_v24 = vpack.c.bf16 %v2999_v23, %v2997_v22 }
 0x540   : > { %v3042_v27 = vpack.c.bf16 %v3000_v1, %v2998_v0  ;;  %v2908_v29 = vpop.f32.mrb[140].mxu0 }
 0x541   : > { %v2909_v30 = vadd.f32 %v2908_v29, %v5799_v26  ;;  %v2910_v31 = vpop.f32.mrb[141].mxu0 }
 0x542   : > { %v2911_v33 = vadd.f32 %v2910_v31, %v5802_v47  ;;  %v2912_v34 = vpop.f32.mrb[142].mxu0  ;;  %3389 = vmatprep.mubr.bf16.mxu1 %v3042_v27 }
 0x543   : > { %v2913_v35 = vadd.f32 %v2912_v34, %v5799_v26  ;;  %v2914_v37 = vpop.f32.mrb[143].mxu0  ;;  %3390 = vmatmul.mubr.bf16.gmra.mrb[200].mxu1 %v3041_v24  ;;  %v3001_v39 = vmax.f32 %v2909_v30, 0.0 }
 0x544   : > { %v2915_v38 = vadd.f32 %v2914_v37, %v5802_v47  ;;  %v3002_v43 = vmax.f32 %v2911_v33, 0.0 }
 0x545   : > { %v3003_v41 = vmax.f32 %v2913_v35, 0.0 }
 0x546   : > { %v3004_v25 = vmax.f32 %v2915_v38, 0.0 }
 0x547   : > { %v3043_v44 = vpack.c.bf16 %v3003_v41, %v3001_v39 }
 0x548   : > { %v3044_v45 = vpack.c.bf16 %v3004_v25, %v3002_v43  ;;  %v2918_v6 = vpop.f32.mrb[144].mxu0  ;;  %v3085_v43 = vld [vmem:[%s6051_s16] sm:$0x3] }
 0x549   : > { %v2919_v7 = vadd.f32 %v2918_v6, %v5799_v26  ;;  %v2920_v36 = vpop.f32.mrb[145].mxu0  ;;  %v5872_v25 = vrot.slane %v3085_v43, %v5178_v3 }
 0x54a   : > { %v2921_v40 = vadd.f32 %v2920_v36, %v5802_v47  ;;  %v2922_v8 = vpop.f32.mrb[146].mxu0  ;;  %3399 = vmatprep.mubr.bf16.mxu1 %v3044_v45 }
 0x54b   : > { %v2923_v12 = vadd.f32 %v2922_v8, %v5799_v26  ;;  %v2924_v42 = vpop.f32.mrb[147].mxu0  ;;  %3400 = vmatmul.mubr.bf16.gmra.mrb[204].mxu1 %v3043_v44  ;;  %v3005_v16 = vmax.f32 %v2919_v7, 0.0 }
 0x54c   : > { %v2925_v46 = vadd.f32 %v2924_v42, %v5802_v47  ;;  %v3006_v52 = vmax.f32 %v2921_v40, 0.0 }
 0x54d   : > { %v3007_v20 = vmax.f32 %v2923_v12, 0.0 }
 0x54e   : > { %v3008_v32 = vmax.f32 %v2925_v46, 0.0 }
 0x54f   : > { %v3045_v48 = vpack.c.bf16 %v3007_v20, %v3005_v16 }
 0x550   : > { %v3046_v49 = vpack.c.bf16 %v3008_v32, %v3006_v52  ;;  %v2928_v50 = vpop.f32.mrb[148].mxu0 }
 0x551   : > { %v2929_v51 = vadd.f32 %v2928_v50, %v5799_v26  ;;  %v2930_v53 = vpop.f32.mrb[149].mxu0 }
 0x552   : > { %v2931_v54 = vadd.f32 %v2930_v53, %v5802_v47  ;;  %v2932_v55 = vpop.f32.mrb[150].mxu0  ;;  %3409 = vmatprep.mubr.bf16.mxu1 %v3046_v49 }
 0x553   : > { %v2933_v57 = vadd.f32 %v2932_v55, %v5799_v26  ;;  %v2934_v58 = vpop.f32.mrb[151].mxu0  ;;  %3410 = vmatmul.mubr.bf16.gmra.mrb[208].mxu1 %v3045_v48  ;;  %v3009_v56 = vmax.f32 %v2929_v51, 0.0 }
 0x554   : > { %v2935_v59 = vadd.f32 %v2934_v58, %v5802_v47  ;;  %v3010_v60 = vmax.f32 %v2931_v54, 0.0 }
 0x555   : > { %v3011_v28 = vmax.f32 %v2933_v57, 0.0 }
 0x556   : > { %v3012_v61 = vmax.f32 %v2935_v59, 0.0 }
 0x557   : > { %v3047_v62 = vpack.c.bf16 %v3011_v28, %v3009_v56 }
 0x558   : > { %v3048_v63 = vpack.c.bf16 %v3012_v61, %v3010_v60  ;;  %v2938_v2 = vpop.f32.mrb[152].mxu0 }
 0x559   : > { %v2939_v4 = vadd.f32 %v2938_v2, %v5799_v26  ;;  %v2940_v9 = vpop.f32.mrb[153].mxu0 }
 0x55a   : > { %v2941_v10 = vadd.f32 %v2940_v9, %v5802_v47  ;;  %v2942_v11 = vpop.f32.mrb[154].mxu0  ;;  %3419 = vmatprep.mubr.bf16.mxu1 %v3048_v63 }
 0x55b   : > { %v2943_v13 = vadd.f32 %v2942_v11, %v5799_v26  ;;  %v2944_v14 = vpop.f32.mrb[155].mxu0  ;;  %3420 = vmatmul.mubr.bf16.gmra.mrb[212].mxu1 %v3047_v62  ;;  %v3013_v17 = vmax.f32 %v2939_v4, 0.0 }
 0x55c   : > { %v2945_v15 = vadd.f32 %v2944_v14, %v5802_v47  ;;  %v3014_v19 = vmax.f32 %v2941_v10, 0.0 }
 0x55d   : > { %v3015_v18 = vmax.f32 %v2943_v13, 0.0 }
 0x55e   : > { %v3016_v21 = vmax.f32 %v2945_v15, 0.0 }
 0x55f   : > { %v3049_v22 = vpack.c.bf16 %v3015_v18, %v3013_v17 }
 0x560   : > { %v3050_v23 = vpack.c.bf16 %v3016_v21, %v3014_v19  ;;  %v2948_v0 = vpop.f32.mrb[156].mxu0 }
 0x561   : > { %v2949_v1 = vadd.f32 %v2948_v0, %v5799_v26  ;;  %v2950_v24 = vpop.f32.mrb[157].mxu0 }
 0x562   : > { %v2951_v27 = vadd.f32 %v2950_v24, %v5802_v47  ;;  %v2952_v29 = vpop.f32.mrb[158].mxu0  ;;  %3429 = vmatprep.mubr.bf16.mxu1 %v3050_v23 }
 0x563   : > { %v2953_v30 = vadd.f32 %v2952_v29, %v5799_v26  ;;  %v2954_v31 = vpop.f32.mrb[159].mxu0  ;;  %3430 = vmatmul.mubr.bf16.gmra.mrb[216].mxu1 %v3049_v22  ;;  %v3017_v34 = vmax.f32 %v2949_v1, 0.0  ;;  %v5875_v26 = vrot.slane %v3085_v43, %v5180_v5 }
 0x564   : > { %v2955_v33 = vadd.f32 %v2954_v31, %v5802_v47  ;;  %v3018_v37 = vmax.f32 %v2951_v27, 0.0 }
 0x565   : > { %v3019_v35 = vmax.f32 %v2953_v30, 0.0 }
 0x566   : > { %v3020_v38 = vmax.f32 %v2955_v33, 0.0 }
 0x567   : > { %v3051_v39 = vpack.c.bf16 %v3019_v35, %v3017_v34 }
 0x568   : > { %v3052_v41 = vpack.c.bf16 %v3020_v38, %v3018_v37 }
 0x56a   : > { %3439 = vmatprep.mubr.bf16.mxu1 %v3052_v41 }
 0x56b   : > { %3440 = vmatmul.mubr.bf16.gmra.mrb[220].mxu1 %v3051_v39 }
 0x5c6   : > { %v3291_v44 = vpop.f32.mrb[160].mxu1 }
 0x5c7   : > { %v3292_v47 = vadd.f32 %v3291_v44, %v5872_v25  ;;  %v3293_v45 = vpop.f32.mrb[161].mxu1 }
 0x5c8   : > { %v3294_v6 = vadd.f32 %v3293_v45, %v5875_v26  ;;  %v3295_v7 = vpop.f32.mrb[162].mxu1 }
 0x5c9   : > { %v3296_v36 = vadd.f32 %v3295_v7, %v5872_v25  ;;  %v3297_v40 = vpop.f32.mrb[163].mxu1  ;;  %v3450_v12 = vmax.f32 %v3292_v47, 0.0 }
 0x5ca   : > { %v3298_v8 = vadd.f32 %v3297_v40, %v5875_v26  ;;  %v3451_v46 = vmax.f32 %v3294_v6, 0.0 }
 0x5cb   : > { %v3452_v42 = vmax.f32 %v3296_v36, 0.0 }
 0x5cc   : > { %v3453_v3 = vmax.f32 %v3298_v8, 0.0 }
 0x5cd   : > { %v3514_v16 = vpack.c.bf16 %v3452_v42, %v3450_v12 }
 0x5ce   : > { %v3515_v20 = vpack.c.bf16 %v3453_v3, %v3451_v46  ;;  %v3301_v5 = vpop.f32.mrb[164].mxu1 }
 0x5cf   : > { %v3302_v52 = vadd.f32 %v3301_v5, %v5872_v25  ;;  %v3303_v32 = vpop.f32.mrb[165].mxu1 }
 0x5d0   : > { %v3304_v48 = vadd.f32 %v3303_v32, %v5875_v26  ;;  %v3305_v49 = vpop.f32.mrb[166].mxu1  ;;  %3713 = vmatprep.mubr.bf16.mxu0 %v3515_v20 }
 0x5d1   : > { %v3306_v50 = vadd.f32 %v3305_v49, %v5872_v25  ;;  %v3307_v51 = vpop.f32.mrb[167].mxu1  ;;  %3714 = vmatmul.mubr.bf16.vlgmr.msra.gmra.mrb[160].mxu0 %v3514_v16  ;;  %v3454_v54 = vmax.f32 %v3302_v52, 0.0 }
 0x5d2   : > { %v3308_v53 = vadd.f32 %v3307_v51, %v5875_v26  ;;  %v3455_v57 = vmax.f32 %v3304_v48, 0.0 }
 0x5d3   : > { %v3456_v55 = vmax.f32 %v3306_v50, 0.0 }
 0x5d4   : > { %v3457_v58 = vmax.f32 %v3308_v53, 0.0 }
 0x5d5   : > { %v3516_v59 = vpack.c.bf16 %v3456_v55, %v3454_v54 }
 0x5d6   : > { %v3517_v56 = vpack.c.bf16 %v3457_v58, %v3455_v57  ;;  %v3311_v28 = vpop.f32.mrb[168].mxu1 }
 0x5d7   : > { %v3312_v60 = vadd.f32 %v3311_v28, %v5872_v25  ;;  %v3313_v61 = vpop.f32.mrb[169].mxu1 }
 0x5d8   : > { %v3314_v62 = vadd.f32 %v3313_v61, %v5875_v26  ;;  %v3315_v63 = vpop.f32.mrb[170].mxu1  ;;  %3721 = vmatprep.mubr.bf16.mxu0 %v3517_v56 }
 0x5d9   : > { %v3316_v2 = vadd.f32 %v3315_v63, %v5872_v25  ;;  %v3317_v4 = vpop.f32.mrb[171].mxu1  ;;  %3722 = vmatmul.mubr.bf16.gmra.mrb[164].mxu0 %v3516_v59  ;;  %v3458_v10 = vmax.f32 %v3312_v60, 0.0 }
 0x5da   : > { %v3318_v9 = vadd.f32 %v3317_v4, %v5875_v26  ;;  %v3459_v13 = vmax.f32 %v3314_v62, 0.0 }
 0x5db   : > { %v3460_v11 = vmax.f32 %v3316_v2, 0.0 }
 0x5dc   : > { %v3461_v14 = vmax.f32 %v3318_v9, 0.0 }
 0x5dd   : > { %v3518_v15 = vpack.c.bf16 %v3460_v11, %v3458_v10 }
 0x5de   : > { %v3519_v17 = vpack.c.bf16 %v3461_v14, %v3459_v13  ;;  %v3321_v18 = vpop.f32.mrb[172].mxu1 }
 0x5df   : > { %v3322_v19 = vadd.f32 %v3321_v18, %v5872_v25  ;;  %v3323_v21 = vpop.f32.mrb[173].mxu1 }
 0x5e0   : > { %v3324_v22 = vadd.f32 %v3323_v21, %v5875_v26  ;;  %v3325_v23 = vpop.f32.mrb[174].mxu1  ;;  %3729 = vmatprep.mubr.bf16.mxu0 %v3519_v17 }
 0x5e1   : > { %v3326_v0 = vadd.f32 %v3325_v23, %v5872_v25  ;;  %v3327_v1 = vpop.f32.mrb[175].mxu1  ;;  %3730 = vmatmul.mubr.bf16.gmra.mrb[168].mxu0 %v3518_v15  ;;  %v3462_v27 = vmax.f32 %v3322_v19, 0.0 }
 0x5e2   : > { %v3328_v24 = vadd.f32 %v3327_v1, %v5875_v26  ;;  %v3463_v30 = vmax.f32 %v3324_v22, 0.0 }
 0x5e3   : > { %v3464_v29 = vmax.f32 %v3326_v0, 0.0 }
 0x5e4   : > { %v3465_v31 = vmax.f32 %v3328_v24, 0.0 }
 0x5e5   : > { %v3520_v33 = vpack.c.bf16 %v3464_v29, %v3462_v27 }
 0x5e6   : > { %v3521_v34 = vpack.c.bf16 %v3465_v31, %v3463_v30  ;;  %v3331_v35 = vpop.f32.mrb[176].mxu1 }
 0x5e7   : > { %v3332_v37 = vadd.f32 %v3331_v35, %v5872_v25  ;;  %v3333_v38 = vpop.f32.mrb[177].mxu1 }
 0x5e8   : > { %v3334_v39 = vadd.f32 %v3333_v38, %v5875_v26  ;;  %v3335_v41 = vpop.f32.mrb[178].mxu1  ;;  %3737 = vmatprep.mubr.bf16.mxu0 %v3521_v34 }
 0x5e9   : > { %v3336_v43 = vadd.f32 %v3335_v41, %v5872_v25  ;;  %v3337_v44 = vpop.f32.mrb[179].mxu1  ;;  %3738 = vmatmul.mubr.bf16.gmra.mrb[172].mxu0 %v3520_v33  ;;  %v3466_v45 = vmax.f32 %v3332_v37, 0.0 }
 0x5ea   : > { %v3338_v47 = vadd.f32 %v3337_v44, %v5875_v26  ;;  %v3467_v7 = vmax.f32 %v3334_v39, 0.0 }
 0x5eb   : > { %v3468_v6 = vmax.f32 %v3336_v43, 0.0 }
 0x5ec   : > { %v3469_v36 = vmax.f32 %v3338_v47, 0.0 }
 0x5ed   : > { %v3522_v40 = vpack.c.bf16 %v3468_v6, %v3466_v45 }
 0x5ee   : > { %v3523_v8 = vpack.c.bf16 %v3469_v36, %v3467_v7  ;;  %v3341_v12 = vpop.f32.mrb[180].mxu1 }
 0x5ef   : > { %v3342_v42 = vadd.f32 %v3341_v12, %v5872_v25  ;;  %v3343_v46 = vpop.f32.mrb[181].mxu1 }
 0x5f0   : > { %v3344_v3 = vadd.f32 %v3343_v46, %v5875_v26  ;;  %v3345_v16 = vpop.f32.mrb[182].mxu1  ;;  %3745 = vmatprep.mubr.bf16.mxu0 %v3523_v8 }
 0x5f1   : > { %v3346_v20 = vadd.f32 %v3345_v16, %v5872_v25  ;;  %v3347_v5 = vpop.f32.mrb[183].mxu1  ;;  %3746 = vmatmul.mubr.bf16.gmra.mrb[176].mxu0 %v3522_v40  ;;  %v3470_v32 = vmax.f32 %v3342_v42, 0.0 }
 0x5f2   : > { %v3348_v52 = vadd.f32 %v3347_v5, %v5875_v26  ;;  %v3471_v49 = vmax.f32 %v3344_v3, 0.0 }
 0x5f3   : > { %v3472_v48 = vmax.f32 %v3346_v20, 0.0 }
 0x5f4   : > { %v3473_v50 = vmax.f32 %v3348_v52, 0.0 }
 0x5f5   : > { %v3524_v51 = vpack.c.bf16 %v3472_v48, %v3470_v32 }
 0x5f6   : > { %v3525_v53 = vpack.c.bf16 %v3473_v50, %v3471_v49  ;;  %v3351_v54 = vpop.f32.mrb[184].mxu1 }
 0x5f7   : > { %v3352_v55 = vadd.f32 %v3351_v54, %v5872_v25  ;;  %v3353_v57 = vpop.f32.mrb[185].mxu1 }
 0x5f8   : > { %v3354_v58 = vadd.f32 %v3353_v57, %v5875_v26  ;;  %v3355_v59 = vpop.f32.mrb[186].mxu1  ;;  %3753 = vmatprep.mubr.bf16.mxu0 %v3525_v53 }
 0x5f9   : > { %v3356_v56 = vadd.f32 %v3355_v59, %v5872_v25  ;;  %v3357_v28 = vpop.f32.mrb[187].mxu1  ;;  %3754 = vmatmul.mubr.bf16.gmra.mrb[180].mxu0 %v3524_v51  ;;  %v3474_v61 = vmax.f32 %v3352_v55, 0.0 }
 0x5fa   : > { %v3358_v60 = vadd.f32 %v3357_v28, %v5875_v26  ;;  %v3475_v63 = vmax.f32 %v3354_v58, 0.0 }
 0x5fb   : > { %v3476_v62 = vmax.f32 %v3356_v56, 0.0 }
 0x5fc   : > { %v3477_v2 = vmax.f32 %v3358_v60, 0.0 }
 0x5fd   : > { %v3526_v4 = vpack.c.bf16 %v3476_v62, %v3474_v61 }
 0x5fe   : > { %v3527_v9 = vpack.c.bf16 %v3477_v2, %v3475_v63  ;;  %v3361_v10 = vpop.f32.mrb[188].mxu1 }
 0x5ff   : > { %v3362_v11 = vadd.f32 %v3361_v10, %v5872_v25  ;;  %v3363_v13 = vpop.f32.mrb[189].mxu1 }
 0x600   : > { %v3364_v14 = vadd.f32 %v3363_v13, %v5875_v26  ;;  %v3365_v15 = vpop.f32.mrb[190].mxu1  ;;  %3761 = vmatprep.mubr.bf16.mxu0 %v3527_v9 }
 0x601   : > { %v3366_v17 = vadd.f32 %v3365_v15, %v5872_v25  ;;  %v3367_v18 = vpop.f32.mrb[191].mxu1  ;;  %3762 = vmatmul.mubr.bf16.gmra.mrb[184].mxu0 %v3526_v4  ;;  %v3478_v21 = vmax.f32 %v3362_v11, 0.0 }
 0x602   : > { %v3368_v19 = vadd.f32 %v3367_v18, %v5875_v26  ;;  %v3479_v23 = vmax.f32 %v3364_v14, 0.0 }
 0x603   : > { %v3480_v22 = vmax.f32 %v3366_v17, 0.0 }
 0x604   : > { %v3481_v0 = vmax.f32 %v3368_v19, 0.0 }
 0x605   : > { %v3528_v1 = vpack.c.bf16 %v3480_v22, %v3478_v21 }
 0x606   : > { %v3529_v24 = vpack.c.bf16 %v3481_v0, %v3479_v23  ;;  %v3371_v27 = vpop.f32.mrb[192].mxu1 }
 0x607   : > { %v3372_v29 = vadd.f32 %v3371_v27, %v5872_v25  ;;  %v3373_v30 = vpop.f32.mrb[193].mxu1 }
 0x608   : > { %v3374_v31 = vadd.f32 %v3373_v30, %v5875_v26  ;;  %v3375_v33 = vpop.f32.mrb[194].mxu1  ;;  %3769 = vmatprep.mubr.bf16.mxu0 %v3529_v24 }
 0x609   : > { %v3376_v34 = vadd.f32 %v3375_v33, %v5872_v25  ;;  %v3377_v35 = vpop.f32.mrb[195].mxu1  ;;  %3770 = vmatmul.mubr.bf16.gmra.mrb[188].mxu0 %v3528_v1  ;;  %v3482_v38 = vmax.f32 %v3372_v29, 0.0 }
 0x60a   : > { %v3378_v37 = vadd.f32 %v3377_v35, %v5875_v26  ;;  %v3483_v41 = vmax.f32 %v3374_v31, 0.0 }
 0x60b   : > { %v3484_v39 = vmax.f32 %v3376_v34, 0.0 }
 0x60c   : > { %v3485_v43 = vmax.f32 %v3378_v37, 0.0 }
 0x60d   : > { %v3530_v44 = vpack.c.bf16 %v3484_v39, %v3482_v38 }
 0x60e   : > { %v3531_v47 = vpack.c.bf16 %v3485_v43, %v3483_v41  ;;  %v3381_v45 = vpop.f32.mrb[196].mxu1 }
 0x60f   : > { %v3382_v6 = vadd.f32 %v3381_v45, %v5872_v25  ;;  %v3383_v7 = vpop.f32.mrb[197].mxu1 }
 0x610   : > { %v3384_v36 = vadd.f32 %v3383_v7, %v5875_v26  ;;  %v3385_v40 = vpop.f32.mrb[198].mxu1  ;;  %3777 = vmatprep.mubr.bf16.mxu0 %v3531_v47 }
 0x611   : > { %v3386_v8 = vadd.f32 %v3385_v40, %v5872_v25  ;;  %v3387_v12 = vpop.f32.mrb[199].mxu1  ;;  %3778 = vmatmul.mubr.bf16.gmra.mrb[192].mxu0 %v3530_v44  ;;  %v3486_v46 = vmax.f32 %v3382_v6, 0.0 }
 0x612   : > { %v3388_v42 = vadd.f32 %v3387_v12, %v5875_v26  ;;  %v3487_v16 = vmax.f32 %v3384_v36, 0.0 }
 0x613   : > { %v3488_v3 = vmax.f32 %v3386_v8, 0.0 }
 0x614   : > { %v3489_v20 = vmax.f32 %v3388_v42, 0.0 }
 0x615   : > { %v3532_v5 = vpack.c.bf16 %v3488_v3, %v3486_v46 }
 0x616   : > { %v3533_v52 = vpack.c.bf16 %v3489_v20, %v3487_v16  ;;  %v3391_v32 = vpop.f32.mrb[200].mxu1 }
 0x617   : > { %v3392_v48 = vadd.f32 %v3391_v32, %v5872_v25  ;;  %v3393_v49 = vpop.f32.mrb[201].mxu1 }
 0x618   : > { %v3394_v50 = vadd.f32 %v3393_v49, %v5875_v26  ;;  %v3395_v51 = vpop.f32.mrb[202].mxu1  ;;  %3785 = vmatprep.mubr.bf16.mxu0 %v3533_v52 }
 0x619   : > { %v3396_v53 = vadd.f32 %v3395_v51, %v5872_v25  ;;  %v3397_v54 = vpop.f32.mrb[203].mxu1  ;;  %3786 = vmatmul.mubr.bf16.gmra.mrb[196].mxu0 %v3532_v5  ;;  %v3490_v57 = vmax.f32 %v3392_v48, 0.0 }
 0x61a   : > { %v3398_v55 = vadd.f32 %v3397_v54, %v5875_v26  ;;  %v3491_v59 = vmax.f32 %v3394_v50, 0.0 }
 0x61b   : > { %v3492_v58 = vmax.f32 %v3396_v53, 0.0 }
 0x61c   : > { %v3493_v56 = vmax.f32 %v3398_v55, 0.0 }
 0x61d   : > { %v3534_v28 = vpack.c.bf16 %v3492_v58, %v3490_v57 }
 0x61e   : > { %v3535_v60 = vpack.c.bf16 %v3493_v56, %v3491_v59  ;;  %v3401_v61 = vpop.f32.mrb[204].mxu1 }
 0x61f   : > { %v3402_v62 = vadd.f32 %v3401_v61, %v5872_v25  ;;  %v3403_v63 = vpop.f32.mrb[205].mxu1 }
 0x620   : > { %v3404_v2 = vadd.f32 %v3403_v63, %v5875_v26  ;;  %v3405_v4 = vpop.f32.mrb[206].mxu1  ;;  %3793 = vmatprep.mubr.bf16.mxu0 %v3535_v60 }
 0x621   : > { %v3406_v9 = vadd.f32 %v3405_v4, %v5872_v25  ;;  %v3407_v10 = vpop.f32.mrb[207].mxu1  ;;  %3794 = vmatmul.mubr.bf16.gmra.mrb[200].mxu0 %v3534_v28  ;;  %v3494_v13 = vmax.f32 %v3402_v62, 0.0 }
 0x622   : > { %v3408_v11 = vadd.f32 %v3407_v10, %v5875_v26  ;;  %v3495_v15 = vmax.f32 %v3404_v2, 0.0 }
 0x623   : > { %v3496_v14 = vmax.f32 %v3406_v9, 0.0 }
 0x624   : > { %v3497_v17 = vmax.f32 %v3408_v11, 0.0 }
 0x625   : > { %v3536_v18 = vpack.c.bf16 %v3496_v14, %v3494_v13  ;;  %v5945_v14 = vld [vmem:[%s6052_s19] ss:$0 sm:$0xff] }
 0x626   : > { %v3537_v19 = vpack.c.bf16 %v3497_v17, %v3495_v15  ;;  %v3411_v21 = vpop.f32.mrb[208].mxu1 }
 0x627   : > { %v3412_v22 = vadd.f32 %v3411_v21, %v5872_v25  ;;  %v3413_v23 = vpop.f32.mrb[209].mxu1 }
 0x628   : > { %v3414_v0 = vadd.f32 %v3413_v23, %v5875_v26  ;;  %v3415_v1 = vpop.f32.mrb[210].mxu1  ;;  %3801 = vmatprep.mubr.bf16.mxu0 %v3537_v19 }
 0x629   : > { %v3416_v24 = vadd.f32 %v3415_v1, %v5872_v25  ;;  %v3417_v27 = vpop.f32.mrb[211].mxu1  ;;  %3802 = vmatmul.mubr.bf16.gmra.mrb[204].mxu0 %v3536_v18  ;;  %v3498_v30 = vmax.f32 %v3412_v22, 0.0 }
 0x62a   : > { %v3418_v29 = vadd.f32 %v3417_v27, %v5875_v26  ;;  %v3499_v33 = vmax.f32 %v3414_v0, 0.0 }
 0x62b   : > { %v3500_v31 = vmax.f32 %v3416_v24, 0.0 }
 0x62c   : > { %v3501_v34 = vmax.f32 %v3418_v29, 0.0 }
 0x62d   : > { %v3538_v35 = vpack.c.bf16 %v3500_v31, %v3498_v30 }
 0x62e   : > { %v3539_v37 = vpack.c.bf16 %v3501_v34, %v3499_v33  ;;  %v3421_v38 = vpop.f32.mrb[212].mxu1 }
 0x62f   : > { %v3422_v39 = vadd.f32 %v3421_v38, %v5872_v25  ;;  %v3423_v41 = vpop.f32.mrb[213].mxu1 }
 0x630   : > { %v3424_v43 = vadd.f32 %v3423_v41, %v5875_v26  ;;  %v3425_v44 = vpop.f32.mrb[214].mxu1  ;;  %3809 = vmatprep.mubr.bf16.mxu0 %v3539_v37 }
 0x631   : > { %v3426_v47 = vadd.f32 %v3425_v44, %v5872_v25  ;;  %v3427_v45 = vpop.f32.mrb[215].mxu1  ;;  %3810 = vmatmul.mubr.bf16.gmra.mrb[208].mxu0 %v3538_v35  ;;  %v3502_v7 = vmax.f32 %v3422_v39, 0.0 }
 0x632   : > { %v3428_v6 = vadd.f32 %v3427_v45, %v5875_v26  ;;  %v3503_v40 = vmax.f32 %v3424_v43, 0.0 }
 0x633   : > { %v3504_v36 = vmax.f32 %v3426_v47, 0.0 }
 0x634   : > { %v3505_v8 = vmax.f32 %v3428_v6, 0.0 }
 0x635   : > { %v3540_v12 = vpack.c.bf16 %v3504_v36, %v3502_v7 }
 0x636   : > { %v3541_v42 = vpack.c.bf16 %v3505_v8, %v3503_v40  ;;  %v3431_v46 = vpop.f32.mrb[216].mxu1 }
 0x637   : > { %v3432_v3 = vadd.f32 %v3431_v46, %v5872_v25  ;;  %v3433_v16 = vpop.f32.mrb[217].mxu1 }
 0x638   : > { %v3434_v20 = vadd.f32 %v3433_v16, %v5875_v26  ;;  %v3435_v5 = vpop.f32.mrb[218].mxu1  ;;  %3817 = vmatprep.mubr.bf16.mxu0 %v3541_v42 }
 0x639   : > { %v3436_v52 = vadd.f32 %v3435_v5, %v5872_v25  ;;  %v3437_v32 = vpop.f32.mrb[219].mxu1  ;;  %3818 = vmatmul.mubr.bf16.gmra.mrb[212].mxu0 %v3540_v12  ;;  %v3506_v49 = vmax.f32 %v3432_v3, 0.0 }
 0x63a   : > { %v3438_v48 = vadd.f32 %v3437_v32, %v5875_v26  ;;  %v3507_v51 = vmax.f32 %v3434_v20, 0.0 }
 0x63b   : > { %v3508_v50 = vmax.f32 %v3436_v52, 0.0 }
 0x63c   : > { %v3509_v53 = vmax.f32 %v3438_v48, 0.0 }
 0x63d   : > { %v3542_v54 = vpack.c.bf16 %v3508_v50, %v3506_v49 }
 0x63e   : > { %v3543_v55 = vpack.c.bf16 %v3509_v53, %v3507_v51  ;;  %v3441_v57 = vpop.f32.mrb[220].mxu1 }
 0x63f   : > { %v3442_v58 = vadd.f32 %v3441_v57, %v5872_v25  ;;  %v3443_v59 = vpop.f32.mrb[221].mxu1 }
 0x640   : > { %v3444_v56 = vadd.f32 %v3443_v59, %v5875_v26  ;;  %v3445_v28 = vpop.f32.mrb[222].mxu1  ;;  %3825 = vmatprep.mubr.bf16.mxu0 %v3543_v55 }
 0x641   : > { %v3446_v60 = vadd.f32 %v3445_v28, %v5872_v25  ;;  %v3447_v61 = vpop.f32.mrb[223].mxu1  ;;  %3826 = vmatmul.mubr.bf16.gmra.mrb[216].mxu0 %v3542_v54  ;;  %v3510_v63 = vmax.f32 %v3442_v58, 0.0 }
 0x642   : > { %v3448_v62 = vadd.f32 %v3447_v61, %v5875_v26  ;;  %v3511_v4 = vmax.f32 %v3444_v56, 0.0 }
 0x643   : > { %v3512_v2 = vmax.f32 %v3446_v60, 0.0 }
 0x644   : > { %v3513_v9 = vmax.f32 %v3448_v62, 0.0 }
 0x645   : > { %v3544_v10 = vpack.c.bf16 %v3512_v2, %v3510_v63 }
 0x646   : > { %v3545_v11 = vpack.c.bf16 %v3513_v9, %v3511_v4 }
 0x648   : > { %3833 = vmatprep.mubr.bf16.mxu0 %v3545_v11 }
 0x649   : > { %3834 = vmatmul.mubr.bf16.gmra.mrb[220].mxu0 %v3544_v10 }
 0x6a4   : > { %v4215_v13 = vpop.f32.mrb[160].mxu0 }
 0x6a5   : > { %v4216_v25 = vpop.f32.mrb[161].mxu0 }
 0x6a6   : > { %v4217_v15 = vadd.f32 %v4216_v25, %v4215_v13  ;;  %v4218_v17 = vpop.f32.mrb[162].mxu0 }
 0x6a7   : > { %v4219_v26 = vpop.f32.mrb[163].mxu0 }
 0x6a8   : > { %v3716_v18 = vadd.f32 %v4217_v15, %v5945_v14  ;;  %v4220_v19 = vadd.f32 %v4219_v26, %v4218_v17 }
 0x6aa   : > { %3842 = vst [vmem:[%s5950_s21] sm:$0xff] %v3716_v18  ;;  %v3719_v21 = vadd.f32 %v4220_v19, %v5945_v14 }
 0x6ac   : > { %3843 = vst [vmem:[%s5950_s21 + $0x8] sm:$0xff] %v3719_v21  ;;  %v4221_v22 = vpop.f32.mrb[164].mxu0 }
 0x6ad   : > { %v4222_v23 = vpop.f32.mrb[165].mxu0 }
 0x6ae   : > { %v4223_v0 = vadd.f32 %v4222_v23, %v4221_v22  ;;  %v4224_v1 = vpop.f32.mrb[166].mxu0 }
 0x6af   : > { %v4225_v24 = vpop.f32.mrb[167].mxu0 }
 0x6b0   : > { %v3724_v27 = vadd.f32 %v4223_v0, %v5945_v14  ;;  %v4226_v29 = vadd.f32 %v4225_v24, %v4224_v1 }
 0x6b2   : > { %3844 = vst [vmem:[%s5950_s21 + $0x10] sm:$0xff] %v3724_v27  ;;  %v3727_v30 = vadd.f32 %v4226_v29, %v5945_v14 }
 0x6b4   : > { %3845 = vst [vmem:[%s5950_s21 + $0x18] sm:$0xff] %v3727_v30  ;;  %v4227_v31 = vpop.f32.mrb[168].mxu0 }
 0x6b5   : > { %v4228_v33 = vpop.f32.mrb[169].mxu0 }
 0x6b6   : > { %v4229_v34 = vadd.f32 %v4228_v33, %v4227_v31  ;;  %v4230_v35 = vpop.f32.mrb[170].mxu0 }
 0x6b7   : > { %v4231_v37 = vpop.f32.mrb[171].mxu0 }
 0x6b8   : > { %v3732_v38 = vadd.f32 %v4229_v34, %v5945_v14  ;;  %v4232_v39 = vadd.f32 %v4231_v37, %v4230_v35 }
 0x6ba   : > { %3846 = vst [vmem:[%s5950_s21 + $0x20] sm:$0xff] %v3732_v38  ;;  %v3735_v41 = vadd.f32 %v4232_v39, %v5945_v14 }
 0x6bc   : > { %3847 = vst [vmem:[%s5950_s21 + $0x28] sm:$0xff] %v3735_v41  ;;  %v4233_v43 = vpop.f32.mrb[172].mxu0 }
 0x6bd   : > { %v4234_v44 = vpop.f32.mrb[173].mxu0 }
 0x6be   : > { %v4235_v47 = vadd.f32 %v4234_v44, %v4233_v43  ;;  %v4236_v45 = vpop.f32.mrb[174].mxu0 }
 0x6bf   : > { %v4237_v6 = vpop.f32.mrb[175].mxu0 }
 0x6c0   : > { %v3740_v7 = vadd.f32 %v4235_v47, %v5945_v14  ;;  %v4238_v36 = vadd.f32 %v4237_v6, %v4236_v45 }
 0x6c2   : > { %3848 = vst [vmem:[%s5950_s21 + $0x30] sm:$0xff] %v3740_v7  ;;  %v3743_v40 = vadd.f32 %v4238_v36, %v5945_v14 }
 0x6c4   : > { %3849 = vst [vmem:[%s5950_s21 + $0x38] sm:$0xff] %v3743_v40  ;;  %v4239_v8 = vpop.f32.mrb[176].mxu0 }
 0x6c5   : > { %v4240_v12 = vpop.f32.mrb[177].mxu0 }
 0x6c6   : > { %v4241_v42 = vadd.f32 %v4240_v12, %v4239_v8  ;;  %v4242_v46 = vpop.f32.mrb[178].mxu0 }
 0x6c7   : > { %v4243_v3 = vpop.f32.mrb[179].mxu0 }
 0x6c8   : > { %v3748_v16 = vadd.f32 %v4241_v42, %v5945_v14  ;;  %v4244_v20 = vadd.f32 %v4243_v3, %v4242_v46 }
 0x6ca   : > { %3850 = vst [vmem:[%s5950_s21 + $0x40] sm:$0xff] %v3748_v16  ;;  %v3751_v5 = vadd.f32 %v4244_v20, %v5945_v14 }
 0x6cc   : > { %3851 = vst [vmem:[%s5950_s21 + $0x48] sm:$0xff] %v3751_v5  ;;  %v4245_v52 = vpop.f32.mrb[180].mxu0 }
 0x6cd   : > { %v4246_v32 = vpop.f32.mrb[181].mxu0 }
 0x6ce   : > { %v4247_v48 = vadd.f32 %v4246_v32, %v4245_v52  ;;  %v4248_v49 = vpop.f32.mrb[182].mxu0 }
 0x6cf   : > { %v4249_v50 = vpop.f32.mrb[183].mxu0 }
 0x6d0   : > { %v3756_v51 = vadd.f32 %v4247_v48, %v5945_v14  ;;  %v4250_v53 = vadd.f32 %v4249_v50, %v4248_v49 }
 0x6d2   : > { %3852 = vst [vmem:[%s5950_s21 + $0x50] sm:$0xff] %v3756_v51  ;;  %v3759_v54 = vadd.f32 %v4250_v53, %v5945_v14 }
 0x6d4   : > { %3853 = vst [vmem:[%s5950_s21 + $0x58] sm:$0xff] %v3759_v54  ;;  %v4251_v55 = vpop.f32.mrb[184].mxu0 }
 0x6d5   : > { %v4252_v57 = vpop.f32.mrb[185].mxu0 }
 0x6d6   : > { %v4253_v58 = vadd.f32 %v4252_v57, %v4251_v55  ;;  %v4254_v59 = vpop.f32.mrb[186].mxu0 }
 0x6d7   : > { %v4255_v56 = vpop.f32.mrb[187].mxu0 }
 0x6d8   : > { %v3764_v28 = vadd.f32 %v4253_v58, %v5945_v14  ;;  %v4256_v60 = vadd.f32 %v4255_v56, %v4254_v59 }
 0x6da   : > { %3854 = vst [vmem:[%s5950_s21 + $0x60] sm:$0xff] %v3764_v28  ;;  %v3767_v61 = vadd.f32 %v4256_v60, %v5945_v14 }
 0x6dc   : > { %3855 = vst [vmem:[%s5950_s21 + $0x68] sm:$0xff] %v3767_v61  ;;  %v4257_v62 = vpop.f32.mrb[188].mxu0 }
 0x6dd   : > { %v4258_v63 = vpop.f32.mrb[189].mxu0 }
 0x6de   : > { %v4259_v2 = vadd.f32 %v4258_v63, %v4257_v62  ;;  %v4260_v4 = vpop.f32.mrb[190].mxu0 }
 0x6df   : > { %v4261_v9 = vpop.f32.mrb[191].mxu0 }
 0x6e0   : > { %v3772_v10 = vadd.f32 %v4259_v2, %v5945_v14  ;;  %v4262_v11 = vadd.f32 %v4261_v9, %v4260_v4 }
 0x6e2   : > { %3856 = vst [vmem:[%s5950_s21 + $0x70] sm:$0xff] %v3772_v10  ;;  %v3775_v13 = vadd.f32 %v4262_v11, %v5945_v14 }
 0x6e4   : > { %3857 = vst [vmem:[%s5950_s21 + $0x78] sm:$0xff] %v3775_v13  ;;  %v4263_v25 = vpop.f32.mrb[192].mxu0 }
 0x6e5   : > { %v4264_v15 = vpop.f32.mrb[193].mxu0 }
 0x6e6   : > { %v4265_v17 = vadd.f32 %v4264_v15, %v4263_v25  ;;  %v4266_v26 = vpop.f32.mrb[194].mxu0 }
 0x6e7   : > { %v4267_v18 = vpop.f32.mrb[195].mxu0 }
 0x6e8   : > { %v3780_v19 = vadd.f32 %v4265_v17, %v5945_v14  ;;  %v4268_v21 = vadd.f32 %v4267_v18, %v4266_v26 }
 0x6ea   : > { %3858 = vst [vmem:[%s5950_s21 + $0x80] sm:$0xff] %v3780_v19  ;;  %v3783_v22 = vadd.f32 %v4268_v21, %v5945_v14 }
 0x6ec   : > { %3859 = vst [vmem:[%s5950_s21 + $0x88] sm:$0xff] %v3783_v22  ;;  %v4269_v23 = vpop.f32.mrb[196].mxu0 }
 0x6ed   : > { %v4270_v0 = vpop.f32.mrb[197].mxu0 }
 0x6ee   : > { %v4271_v1 = vadd.f32 %v4270_v0, %v4269_v23  ;;  %v4272_v24 = vpop.f32.mrb[198].mxu0 }
 0x6ef   : > { %v4273_v27 = vpop.f32.mrb[199].mxu0 }
 0x6f0   : > { %v3788_v29 = vadd.f32 %v4271_v1, %v5945_v14  ;;  %v4274_v30 = vadd.f32 %v4273_v27, %v4272_v24 }
 0x6f2   : > { %3860 = vst [vmem:[%s5950_s21 + $0x90] sm:$0xff] %v3788_v29  ;;  %v3791_v31 = vadd.f32 %v4274_v30, %v5945_v14 }
 0x6f4   : > { %3861 = vst [vmem:[%s5950_s21 + $0x98] sm:$0xff] %v3791_v31  ;;  %v4275_v33 = vpop.f32.mrb[200].mxu0 }
 0x6f5   : > { %v4276_v34 = vpop.f32.mrb[201].mxu0 }
 0x6f6   : > { %v4277_v35 = vadd.f32 %v4276_v34, %v4275_v33  ;;  %v4278_v37 = vpop.f32.mrb[202].mxu0 }
 0x6f7   : > { %v4279_v38 = vpop.f32.mrb[203].mxu0 }
 0x6f8   : > { %v3796_v39 = vadd.f32 %v4277_v35, %v5945_v14  ;;  %v4280_v41 = vadd.f32 %v4279_v38, %v4278_v37 }
 0x6fa   : > { %3862 = vst [vmem:[%s5950_s21 + $0xa0] sm:$0xff] %v3796_v39  ;;  %v3799_v43 = vadd.f32 %v4280_v41, %v5945_v14 }
 0x6fc   : > { %3863 = vst [vmem:[%s5950_s21 + $0xa8] sm:$0xff] %v3799_v43  ;;  %v4281_v44 = vpop.f32.mrb[204].mxu0 }
 0x6fd   : > { %v4282_v47 = vpop.f32.mrb[205].mxu0 }
 0x6fe   : > { %v4283_v45 = vadd.f32 %v4282_v47, %v4281_v44  ;;  %v4284_v6 = vpop.f32.mrb[206].mxu0 }
 0x6ff   : > { %v4285_v7 = vpop.f32.mrb[207].mxu0 }
 0x700   : > { %v3804_v36 = vadd.f32 %v4283_v45, %v5945_v14  ;;  %v4286_v40 = vadd.f32 %v4285_v7, %v4284_v6 }
 0x702   : > { %3864 = vst [vmem:[%s5950_s21 + $0xb0] sm:$0xff] %v3804_v36  ;;  %v3807_v8 = vadd.f32 %v4286_v40, %v5945_v14 }
 0x704   : > { %3865 = vst [vmem:[%s5950_s21 + $0xb8] sm:$0xff] %v3807_v8  ;;  %v4287_v12 = vpop.f32.mrb[208].mxu0 }
 0x705   : > { %v4288_v42 = vpop.f32.mrb[209].mxu0 }
 0x706   : > { %v4289_v46 = vadd.f32 %v4288_v42, %v4287_v12  ;;  %v4290_v3 = vpop.f32.mrb[210].mxu0 }
 0x707   : > { %v4291_v16 = vpop.f32.mrb[211].mxu0 }
 0x708   : > { %v3812_v20 = vadd.f32 %v4289_v46, %v5945_v14  ;;  %v4292_v5 = vadd.f32 %v4291_v16, %v4290_v3 }
 0x70a   : > { %3866 = vst [vmem:[%s5950_s21 + $0xc0] sm:$0xff] %v3812_v20  ;;  %v3815_v52 = vadd.f32 %v4292_v5, %v5945_v14 }
 0x70c   : > { %3867 = vst [vmem:[%s5950_s21 + $0xc8] sm:$0xff] %v3815_v52  ;;  %v4293_v32 = vpop.f32.mrb[212].mxu0 }
 0x70d   : > { %v4294_v48 = vpop.f32.mrb[213].mxu0 }
 0x70e   : > { %v4295_v49 = vadd.f32 %v4294_v48, %v4293_v32  ;;  %v4296_v50 = vpop.f32.mrb[214].mxu0 }
 0x70f   : > { %v4297_v51 = vpop.f32.mrb[215].mxu0 }
 0x710   : > { %v3820_v53 = vadd.f32 %v4295_v49, %v5945_v14  ;;  %v4298_v54 = vadd.f32 %v4297_v51, %v4296_v50 }
 0x712   : > { %3868 = vst [vmem:[%s5950_s21 + $0xd0] sm:$0xff] %v3820_v53  ;;  %v3823_v55 = vadd.f32 %v4298_v54, %v5945_v14 }
 0x714   : > { %3869 = vst [vmem:[%s5950_s21 + $0xd8] sm:$0xff] %v3823_v55  ;;  %v4299_v57 = vpop.f32.mrb[216].mxu0 }
 0x715   : > { %v4300_v58 = vpop.f32.mrb[217].mxu0 }
 0x716   : > { %v4301_v59 = vadd.f32 %v4300_v58, %v4299_v57  ;;  %v4302_v56 = vpop.f32.mrb[218].mxu0 }
 0x717   : > { %v4303_v28 = vpop.f32.mrb[219].mxu0 }
 0x718   : > { %v3828_v60 = vadd.f32 %v4301_v59, %v5945_v14  ;;  %v4304_v61 = vadd.f32 %v4303_v28, %v4302_v56 }
 0x71a   : > { %3870 = vst [vmem:[%s5950_s21 + $0xe0] sm:$0xff] %v3828_v60  ;;  %v3831_v62 = vadd.f32 %v4304_v61, %v5945_v14 }
 0x71c   : > { %3871 = vst [vmem:[%s5950_s21 + $0xe8] sm:$0xff] %v3831_v62  ;;  %v4305_v63 = vpop.f32.mrb[220].mxu0 }
 0x71d   : > { %v4306_v2 = vpop.f32.mrb[221].mxu0 }
 0x71e   : > { %v4307_v4 = vadd.f32 %v4306_v2, %v4305_v63  ;;  %v4308_v9 = vpop.f32.mrb[222].mxu0 }
 0x71f   : > { %v4309_v10 = vpop.f32.mrb[223].mxu0 }
 0x720   : > { %v3836_v11 = vadd.f32 %v4307_v4, %v5945_v14  ;;  %v4310_v13 = vadd.f32 %v4309_v10, %v4308_v9 }
 0x722   : > { %3872 = vst [vmem:[%s5950_s21 + $0xf0] sm:$0xff] %v3836_v11  ;;  %v3839_v25 = vadd.f32 %v4310_v13, %v5945_v14 }
 0x724   : > { %3873 = vst [vmem:[%s5950_s21 + $0xf8] sm:$0xff] %v3839_v25 }
 0x725 PF: > { %s28_s18 = sadd.s32 1, %s4807_s18  }
 0x726   : > { %p25_p3 = scmp.ge.s32.totalorder %s28_s18, 4  }
 0x728   :  { %27 = sbr.rel (!%p25_p3) target bundleno = 8 (0x8), region = 127 }
 0x72f   :  { %3896 = vsyncpa [#allocation3], 1 }
 0x730   :  { %3898 = vsyncpa [#allocation3 + $0x1], 1 }
 0x731   :  { %3899 = vsyncpa [#allocation5], 1 }
 0x732   :  { %3900 = vsyncpa [#allocation8], 1 }

</bundles_post_ra>
